<compile_context>
chip_gen: v7x
topology: tpu7x:2x2x1
jax: 0.10.0
libtpu: 0.0.40
codegen_flags: <defaults>
</compile_context>

<pallas_src>
import functools

import numpy as np
import jax
import jax.numpy as jnp
from jax import lax
from jax.experimental import pallas as pl
from jax.experimental.pallas import tpu as pltpu

ACT_SLOPE = 0.1                  # assumed LeakyReLU slope for backbone.act_layer
COMPUTE_DTYPE = jnp.bfloat16     # MXU operand / intermediate-activation dtype


def _leaky(v):
    # slope in (0,1)  =>  leaky_relu(v) == max(v, slope*v): single VPU max per element.
    return jnp.maximum(v, ACT_SLOPE * v)


# ----------------------------------------------------------------------------
# Pallas kernel: fused 3x3 conv (9-tap reduction) + bias + [residual] + LeakyReLU.
#   slab_ref : (1, TRin, Wp, C)   halo-duplicated input rows for this tile (bf16)
#   w_ref    : (9, C, Cout)       per-tap weights, BN folded (bf16, constant-indexed)
#   b_ref    : (1, Cout)          folded bias (f32, constant-indexed)
#   res_ref  : (1, TR, Wo, Cout)  optional residual (bf16)
#   out_ref  : (1, TR, Wo, Cout)
# ----------------------------------------------------------------------------
def _make_conv_kernel(TR, Wo, C, Cout, tap_offsets, act, has_residual, out_dtype):
    M = TR * Wo

    def kernel(slab_ref, w_ref, b_ref, *rest):
        if has_residual:
            res_ref, out_ref = rest
        else:
            (out_ref,) = rest
        acc = jnp.zeros((M, Cout), jnp.float32)
        for t, (ro, co) in enumerate(tap_offsets):        # 9 taps, fully unrolled
            a = slab_ref[0, pl.ds(ro, TR), pl.ds(co, Wo), :].reshape(M, C)
            acc = acc + lax.dot_general(
                a, w_ref[t],
                dimension_numbers=(((1,), (0,)), ((), ())),
                preferred_element_type=jnp.float32)
        y = acc + b_ref[...]                               # (M, Cout) + (1, Cout)
        if has_residual:
            y = y + res_ref[0].reshape(M, Cout).astype(jnp.float32)
        if act:
            y = jnp.maximum(y, ACT_SLOPE * y)              # LeakyReLU
        out_ref[0] = y.reshape(TR, Wo, Cout).astype(out_dtype)

    return kernel


@functools.lru_cache(maxsize=None)
def _build_conv(B, H, W, C, Cout, stride, act, has_res, out_dtype):
    """Builds (and jits) a conv executor for one static configuration."""
    s = stride
    Ho, Wo = H // s, W // s
    # Large M tile per grid step (amortize ~0.35us/step overhead), but keep the
    # double-buffered slab comfortably inside the 32 MiB VMEM budget.
    target_m = 8192 if s == 1 else 4096
    TR = max(8, target_m // Wo)
    TR = min(TR, Ho)
    while TR > 1 and Ho % TR != 0:
        TR //= 2
    n_rt = Ho // TR
    TRin = TR * s + (3 - s)          # slab rows per tile (TR+2 for s=1, 2TR+1 for s=2)
    Wp = W + 2

    if s == 1:
        row_rel = np.arange(TRin)
        tile_start = np.arange(n_rt) * TR
        col_perm = None
        # tap (dy, dx) reads slab rows [dy, dy+TR) and cols [dx, dx+Wo)
        tap_offsets = [(dy, dx) for dy in range(3) for dx in range(3)]
    else:
        # Even/odd reordering so that every stride-2 tap becomes a contiguous slice.
        row_rel = np.concatenate([np.arange(0, 2 * TR + 1, 2),   # TR+1 even rows
                                  np.arange(1, 2 * TR, 2)])      # TR   odd rows
        tile_start = np.arange(n_rt) * (2 * TR)
        col_perm = np.concatenate([np.arange(0, Wp, 2), np.arange(1, Wp, 2)])
        dyo = {0: 0, 1: TR + 1, 2: 1}
        dxo = {0: 0, 1: Wo + 1, 2: 1}
        tap_offsets = [(dyo[dy], dxo[dx]) for dy in range(3) for dx in range(3)]

    row_idx = (tile_start[:, None] + row_rel[None, :]).reshape(-1)
    identity_rows = (s == 1 and n_rt == 1)   # slab == padded input, skip the gather

    kernel = _make_conv_kernel(TR, Wo, C, Cout, tap_offsets, act, has_res, out_dtype)

    in_specs = [
        pl.BlockSpec((1, TRin, Wp, C), lambda b, r: (b, r, 0, 0)),
        # Weight/bias blocks are constant-indexed: Pallas keeps them resident across steps.
        pl.BlockSpec((9, C, Cout), lambda b, r: (0, 0, 0)),
        pl.BlockSpec((1, Cout), lambda b, r: (0, 0)),
    ]
    if has_res:
        in_specs.append(pl.BlockSpec((1, TR, Wo, Cout), lambda b, r: (b, r, 0, 0)))

    call = pl.pallas_call(
        kernel,
        out_shape=jax.ShapeDtypeStruct((B, Ho, Wo, Cout), out_dtype),
        grid=(B, n_rt),
        in_specs=in_specs,
        out_specs=pl.BlockSpec((1, TR, Wo, Cout), lambda b, r: (b, r, 0, 0)),
        compiler_params=pltpu.CompilerParams(
            dimension_semantics=("parallel", "parallel"),
            vmem_limit_bytes=32 * 1024 * 1024,
        ),
    )

    def f(x, w9, bias, *maybe_res):
        xb = x.astype(COMPUTE_DTYPE)
        xp = jnp.pad(xb, ((0, 0), (1, 1), (1, 1), (0, 0)))
        if col_perm is not None:
            xp = xp[:, :, col_perm, :]
        slab = xp if identity_rows else xp[:, row_idx, :, :]
        args = [slab, w9.astype(COMPUTE_DTYPE),
                bias.reshape(1, Cout).astype(jnp.float32)]
        if maybe_res:
            args.append(maybe_res[0].astype(COMPUTE_DTYPE))
        return call(*args)

    return jax.jit(f)


def conv3x3(x, w9, bias, *, stride=1, act=True, residual=None, out_dtype=COMPUTE_DTYPE):
    """3x3 conv, pad=1, given stride. x: [B,H,W,C] NHWC; w9: [9, C, Cout]; bias: [Cout].
    Optional fused residual add (LeakyReLU applied after the add)."""
    B, H, W, C = x.shape
    assert w9.shape[:2] == (9, C)
    Cout = w9.shape[2]
    assert stride in (1, 2) and H % stride == 0 and W % stride == 0
    assert (W // stride) % 8 == 0, "output width must be a multiple of 8"
    fn = _build_conv(B, H, W, C, Cout, stride, bool(act), residual is not None, out_dtype)
    if residual is None:
        return fn(x, w9, bias)
    assert residual.shape == (B, H // stride, W // stride, Cout)
    return fn(x, w9, bias, residual)


# ----------------------------------------------------------------------------
# XLA glue (kept outside Pallas on purpose): bilinear resize (align_corners=True),
# bilinear point sampling, tiny SE attention, and the Cout=3 aux heads.
# ----------------------------------------------------------------------------
def resize_bilinear_ac(x, oh, ow):
    """x: [B,H,W,C] -> [B,oh,ow,C], bilinear, align_corners=True. Returns x.dtype."""
    B, H, W, C = x.shape
    if (H, W) == (oh, ow):
        return x
    ys = jnp.linspace(0.0, H - 1.0, oh)
    xs = jnp.linspace(0.0, W - 1.0, ow)
    y0 = jnp.floor(ys).astype(jnp.int32)
    y1 = jnp.minimum(y0 + 1, H - 1)
    wy = (ys - y0.astype(jnp.float32))[None, :, None, None]
    x0 = jnp.floor(xs).astype(jnp.int32)
    x1 = jnp.minimum(x0 + 1, W - 1)
    wx = (xs - x0.astype(jnp.float32))[None, None, :, None]
    r0, r1 = x[:, y0], x[:, y1]
    row = r0 * (1.0 - wy) + r1 * wy
    c0, c1 = row[:, :, x0], row[:, :, x1]
    return (c0 * (1.0 - wx) + c1 * wx).astype(x.dtype)


def bilinear_point_sample(feat, coord, scale):
    """feat: [B,H,W,C]; coord: [B,N,2,1] pixel coords (x, y). Returns [B, C, N, 1] f32."""
    # TODO(synk): exact backbone.BilinearSample coord convention unknown; assume (x, y)
    # pixel coordinates scaled by scale_rate, border-clamped bilinear sampling.
    B, H, W, C = feat.shape
    x = jnp.clip(coord[:, :, 0, 0] * scale, 0.0, W - 1.0)
    y = jnp.clip(coord[:, :, 1, 0] * scale, 0.0, H - 1.0)
    x0 = jnp.floor(x).astype(jnp.int32)
    y0 = jnp.floor(y).astype(jnp.int32)
    x1 = jnp.minimum(x0 + 1, W - 1)
    y1 = jnp.minimum(y0 + 1, H - 1)
    wx = (x - x0.astype(jnp.float32))[..., None]
    wy = (y - y0.astype(jnp.float32))[..., None]

    def gather(yi, xi):
        return jax.vmap(lambda f, yy, xx: f[yy, xx])(feat, yi, xi)  # [B, N, C]

    v00, v01 = gather(y0, x0), gather(y0, x1)
    v10, v11 = gather(y1, x0), gather(y1, x1)
    out = (1.0 - wy) * ((1.0 - wx) * v00 + wx * v01) + wy * ((1.0 - wx) * v10 + wx * v11)
    return jnp.transpose(out, (0, 2, 1))[..., None]  # [B, C, N, 1] (f32)


def aux_head(x, w, b):
    """1x1 conv with Cout=3 — done in XLA (too narrow to be worth an MXU kernel).
    bf16 operands, f32 accumulation."""
    y = jnp.einsum('bhwc,co->bhwo', x.astype(COMPUTE_DTYPE), w.astype(COMPUTE_DTYPE),
                   preferred_element_type=jnp.float32)
    return y + b


# ----------------------------------------------------------------------------
# Deterministic parameter construction (BN folded, eval mode).
# ----------------------------------------------------------------------------
class ParamGen:
    def __init__(self, key):
        self.key = key

    def next(self):
        self.key, k = jax.random.split(self.key)
        return k


def init_conv3x3_bn(pg, cin, cout):
    w = jax.random.normal(pg.next(), (cout, cin, 3, 3), jnp.float32) * (1.0 / (9 * cin) ** 0.5)
    gamma = 1.0 + 0.1 * jax.random.normal(pg.next(), (cout,), jnp.float32)
    beta = 0.1 * jax.random.normal(pg.next(), (cout,), jnp.float32)
    mean = 0.05 * jax.random.normal(pg.next(), (cout,), jnp.float32)
    var = jnp.abs(0.1 * jax.random.normal(pg.next(), (cout,), jnp.float32)) + 1.0
    scale = gamma / jnp.sqrt(var + 1e-5)
    w_eff = w * scale[:, None, None, None]
    b_eff = beta - mean * scale
    # per-tap layout [9, Cin, Cout], tap index t = dy*3 + dx
    w9 = jnp.transpose(w_eff, (2, 3, 1, 0)).reshape(9, cin, cout).astype(jnp.bfloat16)
    return w9, b_eff


def init_linear(pg, cin, cout):
    w = jax.random.normal(pg.next(), (cout, cin), jnp.float32) * (1.0 / cin ** 0.5)
    b = 0.1 * jax.random.normal(pg.next(), (cout,), jnp.float32)
    return jnp.transpose(w), b  # [cin, cout]


def init_basic_block(pg, planes, use_att):
    p = {}
    p["w1"], p["b1"] = init_conv3x3_bn(pg, planes, planes)
    p["w2"], p["b2"] = init_conv3x3_bn(pg, planes, planes)
    if use_att:
        # TODO(synk): exact backbone BasicBlock attention unknown; assume SE-style
        # channel attention: sigmoid(Linear(GAP(out))) * out.
        p["att_w"], p["att_b"] = init_linear(pg, planes, planes)
    return p


def init_layer(pg, cin, cout, num_blocks):
    lp = {"blocks": []}
    lp["down_w"], lp["down_b"] = init_conv3x3_bn(pg, cin, cout)  # DownSample2D (stride 2)
    for _ in range(num_blocks):
        lp["blocks"].append(init_basic_block(pg, cout, use_att=False))
    lp["blocks"].append(init_basic_block(pg, cout, use_att=True))
    return lp


def init_branch(pg):
    P = {}
    P["header"] = init_layer(pg, 192, 32, 2)
    P["res1"] = init_layer(pg, 32, 64, 3)
    P["res2"] = init_layer(pg, 64, 128, 4)
    P["conv1_w"], P["conv1_b"] = init_conv3x3_bn(pg, 224, 128)   # BasicConv2d(224,128,3,pad=1)
    P["conv2_w"], P["conv2_b"] = init_conv3x3_bn(pg, 128, 64)    # BasicConv2d(128,64,3,pad=1)
    P["aux0_w"], P["aux0_b"] = init_linear(pg, 32, 3)            # Conv2d(32,3,1)
    P["aux1_w"], P["aux1_b"] = init_linear(pg, 64, 3)            # Conv2d(64,3,1)
    P["aux2_w"], P["aux2_b"] = init_linear(pg, 128, 3)           # Conv2d(128,3,1)
    return P


def init_bevnet(key):
    pg = ParamGen(key)
    return {"cart": init_branch(pg), "polar": init_branch(pg)}


# ----------------------------------------------------------------------------
# Forward pass.
# ----------------------------------------------------------------------------
def basic_block(x, p):
    h = conv3x3(x, p["w1"], p["b1"], stride=1, act=True)
    if "att_w" in p:
        out = conv3x3(h, p["w2"], p["b2"], stride=1, act=False)
        gap = jnp.mean(out.astype(jnp.float32), axis=(1, 2))                 # [B, C]
        att = jax.nn.sigmoid(gap @ p["att_w"] + p["att_b"])                  # [B, C]
        y = out.astype(jnp.float32) * att[:, None, None, :] + x.astype(jnp.float32)
        return _leaky(y).astype(COMPUTE_DTYPE)
    # residual add + final LeakyReLU fused into the second conv's Pallas epilogue
    return conv3x3(h, p["w2"], p["b2"], stride=1, act=True, residual=x)


def run_layer(x, lp):
    x = conv3x3(x, lp["down_w"], lp["down_b"], stride=2, act=True)   # DownSample2D
    for bp in lp["blocks"]:
        x = basic_block(x, bp)
    return x


def branch_forward(x, P, coord):
    x0 = run_layer(x, P["header"])                 # [B, H/2,  W/2,  32]
    x1 = run_layer(x0, P["res1"])                  # [B, H/4,  W/4,  64]
    x1_point = bilinear_point_sample(x1, coord, 0.25)
    x2 = run_layer(x1, P["res2"])                  # [B, H/8,  W/8, 128]

    H0, W0 = x0.shape[1], x0.shape[2]
    r0 = x0                                        # interpolate to own size -> identity (bf16)
    r1 = resize_bilinear_ac(x1, H0, W0)            # align_corners=True (bf16)
    r2 = resize_bilinear_ac(x2, H0, W0)

    out = jnp.concatenate([r0, r1, r2], axis=-1)   # [B, H0, W0, 224] (bf16)
    out = conv3x3(out, P["conv1_w"], P["conv1_b"], act=True)
    out = conv3x3(out, P["conv2_w"], P["conv2_b"], act=True)
    out_point = bilinear_point_sample(out, coord, 0.5)

    a0 = aux_head(r0, P["aux0_w"], P["aux0_b"])
    a1 = aux_head(r1, P["aux1_w"], P["aux1_b"])
    a2 = aux_head(r2, P["aux2_w"], P["aux2_b"])
    to_nchw = lambda t: jnp.transpose(t, (0, 3, 1, 2))
    return out_point, x1_point, to_nchw(a0), to_nchw(a1), to_nchw(a2)


def bevnet_forward(params, c, p, c_coord, p_coord):
    """c, p: NCHW [B, 192, H, W]; coords: [B, N, 2, 1]."""
    c_nhwc = jnp.transpose(c, (0, 2, 3, 1))
    p_nhwc = jnp.transpose(p, (0, 2, 3, 1))
    c_out_point, c1_point, c_a0, c_a1, c_a2 = branch_forward(c_nhwc, params["cart"], c_coord)
    p_out_point, p1_point, p_a0, p_a1, p_a2 = branch_forward(p_nhwc, params["polar"], p_coord)
    return ((c_out_point, p_out_point), (c1_point, p1_point),
            (c_a0, p_a0), (c_a1, p_a1), (c_a2, p_a2))


# ----------------------------------------------------------------------------
# Driver.
# ----------------------------------------------------------------------------
if __name__ == "__main__":
    key = jax.random.PRNGKey(0)
    k_param, k_c, k_p, k_cc, k_pc, k_cx, k_cw = jax.random.split(key, 7)

    # --- quick correctness self-check of the Pallas conv against XLA's conv (bf16 tol) ---
    def conv_ref(x, w9, bias, stride):
        C, Cout = x.shape[-1], w9.shape[-1]
        w = w9.astype(jnp.float32).reshape(3, 3, C, Cout)
        y = lax.conv_general_dilated(
            x.astype(jnp.bfloat16).astype(jnp.float32), w,
            window_strides=(stride, stride), padding=((1, 1), (1, 1)),
            dimension_numbers=("NHWC", "HWIO", "NHWC"),
            preferred_element_type=jnp.float32) + bias
        return _leaky(y)

    xc = jax.random.normal(k_cx, (2, 16, 16, 24), jnp.float32)
    wc = (jax.random.normal(k_cw, (9, 24, 32), jnp.float32) * 0.07).astype(jnp.bfloat16)
    bc = jnp.linspace(-0.5, 0.5, 32, dtype=jnp.float32)
    for st in (1, 2):
        got = conv3x3(xc, wc, bc, stride=st, act=True, out_dtype=jnp.float32)
        want = conv_ref(xc, wc, bc, st)
        err = float(jnp.max(jnp.abs(got - want)))
        assert err < 5e-2, f"conv self-check failed (stride={st}, max err={err})"

    # --- BEVNet forward at reduced size ---
    B, C_IN, H, W = 2, 192, 64, 64   # small stand-in for [BS, 192, 512, 512]
    N_PTS = 64                       # small stand-in for 160000 points

    params = init_bevnet(k_param)
    c = jax.random.normal(k_c, (B, C_IN, H, W), jnp.float32)
    p = jax.random.normal(k_p, (B, C_IN, H, W), jnp.float32)
    c_coord = jax.random.uniform(k_cc, (B, N_PTS, 2, 1), jnp.float32, 0.0, float(H - 1))
    p_coord = jax.random.uniform(k_pc, (B, N_PTS, 2, 1), jnp.float32, 0.0, float(H - 1))

    bevnet_forward_jit = jax.jit(bevnet_forward)
    outs = bevnet_forward_jit(params, c, p, c_coord, p_coord)
    outs = jax.block_until_ready(outs)

    (c_op, p_op), (c1p, p1p), (ca0, pa0), (ca1, pa1), (ca2, pa2) = outs
    assert c_op.shape == (B, 64, N_PTS, 1) and p_op.shape == (B, 64, N_PTS, 1)
    assert c1p.shape == (B, 64, N_PTS, 1) and p1p.shape == (B, 64, N_PTS, 1)
    assert ca0.shape == (B, 3, H // 2, W // 2)
    assert ca1.shape == (B, 3, H // 2, W // 2)
    assert ca2.shape == (B, 3, H // 2, W // 2)
    for t in (c_op, p_op, c1p, p1p, ca0, pa0, ca1, pa1, ca2, pa2):
        assert bool(jnp.all(jnp.isfinite(t)))

    print("KERNEL_OK")
</pallas_src>

<mosaic_0001>
module attributes {stable_mosaic.version = 11 : i64} {
  func.func @kernel(%arg0: i32, %arg1: i32, %arg2: memref<1x18x18x24xbf16, #tpu.memory_space<vmem>>, %arg3: memref<9x24x32xbf16, #tpu.memory_space<vmem>>, %arg4: memref<1x32xf32, #tpu.memory_space<vmem>>, %arg5: memref<1x16x16x32xf32, #tpu.memory_space<vmem>>) attributes {dimension_semantics = [#tpu.dimension_semantics<parallel>, #tpu.dimension_semantics<parallel>], iteration_bounds = array<i64: 2, 1>, scalar_prefetch = 0 : i64, scratch_operands = 0 : i64, tpu.core_type = #tpu.core_type<tc>, window_params = [{transform_indices = @transform_0, window_bounds = array<i64: 1, 18, 18, 24>}, {pipeline_mode = #tpu.pipeline_mode<synchronous>, transform_indices = @transform_1, window_bounds = array<i64: 9, 24, 32>}, {pipeline_mode = #tpu.pipeline_mode<synchronous>, transform_indices = @transform_2, window_bounds = array<i64: 1, 32>}, {transform_indices = @transform_3, window_bounds = array<i64: 1, 16, 16, 32>}]} {
    %cst = arith.constant 0.000000e+00 : f32
    %0 = vector.broadcast %cst : f32 to vector<256x32xf32>
    %c0 = arith.constant 0 : index
    %c0_0 = arith.constant 0 : index
    %c0_1 = arith.constant 0 : index
    %c0_2 = arith.constant 0 : index
    %1 = vector.load %arg2[%c0, %c0_0, %c0_1, %c0_2] : memref<1x18x18x24xbf16, #tpu.memory_space<vmem>>, vector<1x16x16x24xbf16>
    %2 = vector.shape_cast %1 : vector<1x16x16x24xbf16> to vector<16x16x24xbf16>
    %3 = vector.shape_cast %2 : vector<16x16x24xbf16> to vector<256x24xbf16>
    %c0_3 = arith.constant 0 : index
    %c0_4 = arith.constant 0 : index
    %c0_5 = arith.constant 0 : index
    %4 = vector.load %arg3[%c0_3, %c0_4, %c0_5] : memref<9x24x32xbf16, #tpu.memory_space<vmem>>, vector<1x24x32xbf16>
    %5 = vector.shape_cast %4 : vector<1x24x32xbf16> to vector<24x32xbf16>
    %cst_6 = arith.constant dense<0.000000e+00> : vector<256x32xf32>
    %6 = tpu.matmul %3, %5, %cst_6 {dimension_numbers = #tpu.dot_dimension_numbers<[1], [0], [0], [1], [0, 0, 1, 1], [], []>} : vector<256x24xbf16>, vector<24x32xbf16>, vector<256x32xf32> -> vector<256x32xf32>
    %7 = arith.addf %0, %6 : vector<256x32xf32>
    %c0_7 = arith.constant 0 : index
    %c0_8 = arith.constant 0 : index
    %c1 = arith.constant 1 : index
    %c0_9 = arith.constant 0 : index
    %8 = vector.load %arg2[%c0_7, %c0_8, %c1, %c0_9] : memref<1x18x18x24xbf16, #tpu.memory_space<vmem>>, vector<1x16x16x24xbf16>
    %9 = vector.shape_cast %8 : vector<1x16x16x24xbf16> to vector<16x16x24xbf16>
    %10 = vector.shape_cast %9 : vector<16x16x24xbf16> to vector<256x24xbf16>
    %c1_10 = arith.constant 1 : index
    %c0_11 = arith.constant 0 : index
    %c0_12 = arith.constant 0 : index
    %11 = vector.load %arg3[%c1_10, %c0_11, %c0_12] : memref<9x24x32xbf16, #tpu.memory_space<vmem>>, vector<1x24x32xbf16>
    %12 = vector.shape_cast %11 : vector<1x24x32xbf16> to vector<24x32xbf16>
    %cst_13 = arith.constant dense<0.000000e+00> : vector<256x32xf32>
    %13 = tpu.matmul %10, %12, %cst_13 {dimension_numbers = #tpu.dot_dimension_numbers<[1], [0], [0], [1], [0, 0, 1, 1], [], []>} : vector<256x24xbf16>, vector<24x32xbf16>, vector<256x32xf32> -> vector<256x32xf32>
    %14 = arith.addf %7, %13 : vector<256x32xf32>
    %c0_14 = arith.constant 0 : index
    %c0_15 = arith.constant 0 : index
    %c2 = arith.constant 2 : index
    %c0_16 = arith.constant 0 : index
    %15 = vector.load %arg2[%c0_14, %c0_15, %c2, %c0_16] : memref<1x18x18x24xbf16, #tpu.memory_space<vmem>>, vector<1x16x16x24xbf16>
    %16 = vector.shape_cast %15 : vector<1x16x16x24xbf16> to vector<16x16x24xbf16>
    %17 = vector.shape_cast %16 : vector<16x16x24xbf16> to vector<256x24xbf16>
    %c2_17 = arith.constant 2 : index
    %c0_18 = arith.constant 0 : index
    %c0_19 = arith.constant 0 : index
    %18 = vector.load %arg3[%c2_17, %c0_18, %c0_19] : memref<9x24x32xbf16, #tpu.memory_space<vmem>>, vector<1x24x32xbf16>
    %19 = vector.shape_cast %18 : vector<1x24x32xbf16> to vector<24x32xbf16>
    %cst_20 = arith.constant dense<0.000000e+00> : vector<256x32xf32>
    %20 = tpu.matmul %17, %19, %cst_20 {dimension_numbers = #tpu.dot_dimension_numbers<[1], [0], [0], [1], [0, 0, 1, 1], [], []>} : vector<256x24xbf16>, vector<24x32xbf16>, vector<256x32xf32> -> vector<256x32xf32>
    %21 = arith.addf %14, %20 : vector<256x32xf32>
    %c0_21 = arith.constant 0 : index
    %c1_22 = arith.constant 1 : index
    %c0_23 = arith.constant 0 : index
    %c0_24 = arith.constant 0 : index
    %22 = vector.load %arg2[%c0_21, %c1_22, %c0_23, %c0_24] : memref<1x18x18x24xbf16, #tpu.memory_space<vmem>>, vector<1x16x16x24xbf16>
    %23 = vector.shape_cast %22 : vector<1x16x16x24xbf16> to vector<16x16x24xbf16>
    %24 = vector.shape_cast %23 : vector<16x16x24xbf16> to vector<256x24xbf16>
    %c3 = arith.constant 3 : index
    %c0_25 = arith.constant 0 : index
    %c0_26 = arith.constant 0 : index
    %25 = vector.load %arg3[%c3, %c0_25, %c0_26] : memref<9x24x32xbf16, #tpu.memory_space<vmem>>, vector<1x24x32xbf16>
    %26 = vector.shape_cast %25 : vector<1x24x32xbf16> to vector<24x32xbf16>
    %cst_27 = arith.constant dense<0.000000e+00> : vector<256x32xf32>
    %27 = tpu.matmul %24, %26, %cst_27 {dimension_numbers = #tpu.dot_dimension_numbers<[1], [0], [0], [1], [0, 0, 1, 1], [], []>} : vector<256x24xbf16>, vector<24x32xbf16>, vector<256x32xf32> -> vector<256x32xf32>
    %28 = arith.addf %21, %27 : vector<256x32xf32>
    %c0_28 = arith.constant 0 : index
    %c1_29 = arith.constant 1 : index
    %c1_30 = arith.constant 1 : index
    %c0_31 = arith.constant 0 : index
    %29 = vector.load %arg2[%c0_28, %c1_29, %c1_30, %c0_31] : memref<1x18x18x24xbf16, #tpu.memory_space<vmem>>, vector<1x16x16x24xbf16>
    %30 = vector.shape_cast %29 : vector<1x16x16x24xbf16> to vector<16x16x24xbf16>
    %31 = vector.shape_cast %30 : vector<16x16x24xbf16> to vector<256x24xbf16>
    %c4 = arith.constant 4 : index
    %c0_32 = arith.constant 0 : index
    %c0_33 = arith.constant 0 : index
    %32 = vector.load %arg3[%c4, %c0_32, %c0_33] : memref<9x24x32xbf16, #tpu.memory_space<vmem>>, vector<1x24x32xbf16>
    %33 = vector.shape_cast %32 : vector<1x24x32xbf16> to vector<24x32xbf16>
    %cst_34 = arith.constant dense<0.000000e+00> : vector<256x32xf32>
    %34 = tpu.matmul %31, %33, %cst_34 {dimension_numbers = #tpu.dot_dimension_numbers<[1], [0], [0], [1], [0, 0, 1, 1], [], []>} : vector<256x24xbf16>, vector<24x32xbf16>, vector<256x32xf32> -> vector<256x32xf32>
    %35 = arith.addf %28, %34 : vector<256x32xf32>
    %c0_35 = arith.constant 0 : index
    %c1_36 = arith.constant 1 : index
    %c2_37 = arith.constant 2 : index
    %c0_38 = arith.constant 0 : index
    %36 = vector.load %arg2[%c0_35, %c1_36, %c2_37, %c0_38] : memref<1x18x18x24xbf16, #tpu.memory_space<vmem>>, vector<1x16x16x24xbf16>
    %37 = vector.shape_cast %36 : vector<1x16x16x24xbf16> to vector<16x16x24xbf16>
    %38 = vector.shape_cast %37 : vector<16x16x24xbf16> to vector<256x24xbf16>
    %c5 = arith.constant 5 : index
    %c0_39 = arith.constant 0 : index
    %c0_40 = arith.constant 0 : index
    %39 = vector.load %arg3[%c5, %c0_39, %c0_40] : memref<9x24x32xbf16, #tpu.memory_space<vmem>>, vector<1x24x32xbf16>
    %40 = vector.shape_cast %39 : vector<1x24x32xbf16> to vector<24x32xbf16>
    %cst_41 = arith.constant dense<0.000000e+00> : vector<256x32xf32>
    %41 = tpu.matmul %38, %40, %cst_41 {dimension_numbers = #tpu.dot_dimension_numbers<[1], [0], [0], [1], [0, 0, 1, 1], [], []>} : vector<256x24xbf16>, vector<24x32xbf16>, vector<256x32xf32> -> vector<256x32xf32>
    %42 = arith.addf %35, %41 : vector<256x32xf32>
    %c0_42 = arith.constant 0 : index
    %c2_43 = arith.constant 2 : index
    %c0_44 = arith.constant 0 : index
    %c0_45 = arith.constant 0 : index
    %43 = vector.load %arg2[%c0_42, %c2_43, %c0_44, %c0_45] : memref<1x18x18x24xbf16, #tpu.memory_space<vmem>>, vector<1x16x16x24xbf16>
    %44 = vector.shape_cast %43 : vector<1x16x16x24xbf16> to vector<16x16x24xbf16>
    %45 = vector.shape_cast %44 : vector<16x16x24xbf16> to vector<256x24xbf16>
    %c6 = arith.constant 6 : index
    %c0_46 = arith.constant 0 : index
    %c0_47 = arith.constant 0 : index
    %46 = vector.load %arg3[%c6, %c0_46, %c0_47] : memref<9x24x32xbf16, #tpu.memory_space<vmem>>, vector<1x24x32xbf16>
    %47 = vector.shape_cast %46 : vector<1x24x32xbf16> to vector<24x32xbf16>
    %cst_48 = arith.constant dense<0.000000e+00> : vector<256x32xf32>
    %48 = tpu.matmul %45, %47, %cst_48 {dimension_numbers = #tpu.dot_dimension_numbers<[1], [0], [0], [1], [0, 0, 1, 1], [], []>} : vector<256x24xbf16>, vector<24x32xbf16>, vector<256x32xf32> -> vector<256x32xf32>
    %49 = arith.addf %42, %48 : vector<256x32xf32>
    %c0_49 = arith.constant 0 : index
    %c2_50 = arith.constant 2 : index
    %c1_51 = arith.constant 1 : index
    %c0_52 = arith.constant 0 : index
    %50 = vector.load %arg2[%c0_49, %c2_50, %c1_51, %c0_52] : memref<1x18x18x24xbf16, #tpu.memory_space<vmem>>, vector<1x16x16x24xbf16>
    %51 = vector.shape_cast %50 : vector<1x16x16x24xbf16> to vector<16x16x24xbf16>
    %52 = vector.shape_cast %51 : vector<16x16x24xbf16> to vector<256x24xbf16>
    %c7 = arith.constant 7 : index
    %c0_53 = arith.constant 0 : index
    %c0_54 = arith.constant 0 : index
    %53 = vector.load %arg3[%c7, %c0_53, %c0_54] : memref<9x24x32xbf16, #tpu.memory_space<vmem>>, vector<1x24x32xbf16>
    %54 = vector.shape_cast %53 : vector<1x24x32xbf16> to vector<24x32xbf16>
    %cst_55 = arith.constant dense<0.000000e+00> : vector<256x32xf32>
    %55 = tpu.matmul %52, %54, %cst_55 {dimension_numbers = #tpu.dot_dimension_numbers<[1], [0], [0], [1], [0, 0, 1, 1], [], []>} : vector<256x24xbf16>, vector<24x32xbf16>, vector<256x32xf32> -> vector<256x32xf32>
    %56 = arith.addf %49, %55 : vector<256x32xf32>
    %c0_56 = arith.constant 0 : index
    %c2_57 = arith.constant 2 : index
    %c2_58 = arith.constant 2 : index
    %c0_59 = arith.constant 0 : index
    %57 = vector.load %arg2[%c0_56, %c2_57, %c2_58, %c0_59] : memref<1x18x18x24xbf16, #tpu.memory_space<vmem>>, vector<1x16x16x24xbf16>
    %58 = vector.shape_cast %57 : vector<1x16x16x24xbf16> to vector<16x16x24xbf16>
    %59 = vector.shape_cast %58 : vector<16x16x24xbf16> to vector<256x24xbf16>
    %c8 = arith.constant 8 : index
    %c0_60 = arith.constant 0 : index
    %c0_61 = arith.constant 0 : index
    %60 = vector.load %arg3[%c8, %c0_60, %c0_61] : memref<9x24x32xbf16, #tpu.memory_space<vmem>>, vector<1x24x32xbf16>
    %61 = vector.shape_cast %60 : vector<1x24x32xbf16> to vector<24x32xbf16>
    %cst_62 = arith.constant dense<0.000000e+00> : vector<256x32xf32>
    %62 = tpu.matmul %59, %61, %cst_62 {dimension_numbers = #tpu.dot_dimension_numbers<[1], [0], [0], [1], [0, 0, 1, 1], [], []>} : vector<256x24xbf16>, vector<24x32xbf16>, vector<256x32xf32> -> vector<256x32xf32>
    %63 = arith.addf %56, %62 : vector<256x32xf32>
    %c0_63 = arith.constant 0 : index
    %c0_64 = arith.constant 0 : index
    %64 = vector.load %arg4[%c0_63, %c0_64] : memref<1x32xf32, #tpu.memory_space<vmem>>, vector<1x32xf32>
    %65 = vector.broadcast %64 : vector<1x32xf32> to vector<256x32xf32>
    %66 = arith.addf %63, %65 : vector<256x32xf32>
    %cst_65 = arith.constant 1.000000e-01 : f32
    %67 = vector.broadcast %cst_65 : f32 to vector<256x32xf32>
    %68 = arith.mulf %67, %66 : vector<256x32xf32>
    %69 = arith.maximumf %66, %68 : vector<256x32xf32>
    %70 = vector.shape_cast %69 : vector<256x32xf32> to vector<16x16x32xf32>
    %c0_66 = arith.constant 0 : index
    %c0_67 = arith.constant 0 : index
    %c0_68 = arith.constant 0 : index
    %c0_69 = arith.constant 0 : index
    %71 = vector.load %arg5[%c0_66, %c0_67, %c0_68, %c0_69] : memref<1x16x16x32xf32, #tpu.memory_space<vmem>>, vector<1x16x16x32xf32>
    %72 = vector.shape_cast %71 : vector<1x16x16x32xf32> to vector<16x16x32xf32>
    %73 = vector.shape_cast %70 : vector<16x16x32xf32> to vector<1x16x16x32xf32>
    tpu.vector_store %arg5[%c0_66, %c0_67, %c0_68, %c0_69], %73 {strides = array<i32>} : memref<1x16x16x32xf32, #tpu.memory_space<vmem>>, vector<1x16x16x32xf32>,
    return
  }
  func.func @transform_0(%arg0: i32, %arg1: i32) -> (i32, i32, i32, i32) {
    %c0_i32 = arith.constant 0 : i32
    %c0_i32_0 = arith.constant 0 : i32
    %c0_i32_1 = arith.constant 0 : i32
    return %arg0, %arg1, %c0_i32, %c0_i32_0 : i32, i32, i32, i32
  }
  func.func @transform_1(%arg0: i32, %arg1: i32) -> (i32, i32, i32) {
    %c0_i32 = arith.constant 0 : i32
    %c0_i32_0 = arith.constant 0 : i32
    %c0_i32_1 = arith.constant 0 : i32
    %c0_i32_2 = arith.constant 0 : i32
    return %c0_i32, %c0_i32_0, %c0_i32_1 : i32, i32, i32
  }
  func.func @transform_2(%arg0: i32, %arg1: i32) -> (i32, i32) {
    %c0_i32 = arith.constant 0 : i32
    %c0_i32_0 = arith.constant 0 : i32
    %c0_i32_1 = arith.constant 0 : i32
    return %c0_i32, %c0_i32_0 : i32, i32
  }
  func.func @transform_3(%arg0: i32, %arg1: i32) -> (i32, i32, i32, i32) {
    %c0_i32 = arith.constant 0 : i32
    %c0_i32_0 = arith.constant 0 : i32
    %c0_i32_1 = arith.constant 0 : i32
    return %arg0, %arg1, %c0_i32, %c0_i32_0 : i32, i32, i32, i32
  }
}

</mosaic_0001>

<bundles_post_ra>
// kernel: f.1
= control target key start
LH: loop header
LB: loop body
LE: loop exit
PB: predicated region body
PF: predicated region fallthrough
CT: control target
= control target key end

     0   :  { %8 = vsyncpa [#allocation3], 0  ;;  %s8724_s0 = inlined_call_operand.vmem [shape: bf16[2,18,18,24], index: 0, kind: input, shape index: {}]   ;;  %s8725_s1 = inlined_call_operand.vmem [shape: bf16[9,24,32], index: 1, kind: input, shape index: {}]   ;;  %s8726_s2 = inlined_call_operand.vmem [shape: f32[1,32], index: 2, kind: input, shape index: {}]   ;;  %s8727_s3 = inlined_call_operand.hbm [shape: f32[2,16,16,32], index: 3, kind: output, shape index: {}]  }
   0x1   :  { %10 = vsyncpa [#allocation3 + $0x1], 0  ;;  %s6724_s12 = smov 0   ;;  %s6726_s13 = smov 0  }
   0x2   :  { %s6728_s14 = smov 0   ;;  %s6730_s15 = smov 0  }
   0x3   :  { %s6732_s16 = smov 0   ;;  %s6734_s17 = smov 0  }
   0x4 LB: > { %s5097_s18 = sadd.s32 4294967295, %s6699_s17   ;;  %s5098_s19 = sadd.s32 4294967294, %s6699_s17   ;;  %s6699_s17 = sphi %s6734_s17, %s16_s17   ;;  %s6695_s16 = sphi %s6732_s16, %s8807_s16   ;;  %s6691_s15 = sphi %s6730_s15, %s8806_s15   ;;  %s6687_s14 = sphi %s6728_s14, %s8805_s14   ;;  %s6683_s13 = sphi %s6726_s13, %s8804_s13   ;;  %s6679_s12 = sphi %s6724_s12, %s8803_s12  }
   0x5   : > { %s28_s20 = sadd.s32 1, %s6695_s16  ;;  %s107_s21 = sadd.s32 1, %s6687_s14 }
   0x6   : > { %p30_p0 = scmp.ge.s32.totalorder %s28_s20, 2  ;;  %p117_p1 = scmp.ne.s32.totalorder %s6687_s14, %s6683_s13 }
   0x7   : > { %p118_p2 = scmp.eq.s32.totalorder %s5097_s18, 1  ;;  %p123_p3 = scmp.ne.s32.totalorder %s6683_s13, %s6679_s12 }
   0x8   : > { %s8809_s20 = smov (%p30_p0, %s28_s20), 0  ;;  %p124_p5 = scmp.eq.s32.totalorder %s5098_s19, 1 }
   0x9   : > { %p6764_p4 = por %p118_p2, %p117_p1  ;;  %s102_s23 = ssub.s32 %s6695_s16, %s8809_s20 }
   0xa   : > { %p5101_p6 = scmp.ge.s32.totalorder %s6699_s17, 1  ;;  %p105_p7 = scmp.eq.s32.totalorder %s102_s23, 0 }
   0xb   : > { %p6771_p8 = por %p124_p5, %p123_p3  ;;  %p162_p9 = scmp.lt.s32.totalorder %s6699_s17, 3 }
   0xc   : > { %s6777_s25 = scalar_select %p105_p7, %s6687_s14, %s107_s21  }
   0xd   : > { %p163_p10 = pnand %p5101_p6, %p162_p9 }
   0xf   : > { %166 = sbr.rel (%p163_p10) target bundleno = 614 (0x266), region = 32 }
  0x16   : > { %v6495_v0 = vld [vmem:[%s8725_s1 + $0xc] sm:$0xff]   ;;  %vm752_vm0 = vcmask 1043456   ;;  %p192_p11 = scmp.lt.s32.totalorder %s6691_s15, 1  ;;  %v6497_v2 = vld [vmem:[%s8725_s1 + $0x14] ss:$0 sps:$4 sm:$0xff]   ;;  %v6798_v5 = vld [vmem:[%s8725_s1] sm:$0xff]  }
  0x17   : > { %v6496_v1 = vld [vmem:[%s8725_s1 + $0x30] sm:$0xff]   ;;  %5843 = vmatprep.subr.bf16.mxu1 %v6495_v0  ;;  %v6498_v3 = vld [vmem:[%s8725_s1 + $0x38] ss:$0 sps:$4 sm:$0xff]   ;;  %v754_v4 = vsel %vm752_vm0, %v6497_v2, 0  ;;  %v6807_v7 = vld [vmem:[%s8725_s1 + $0x3c] sm:$0xff]   ;;  %vm703_vm4 = vcmask 195584  }
  0x18   : > { %5987 = vmatprep.subr.bf16.mxu0 %v6496_v1  ;;  %5844 = vmatpush3.bf16.msra.mxu1 %v6495_v0  ;;  %s193_s7 = scalar_select %p192_p11, %s6691_s15, 1  ;;  %v6802_v6 = vsel %vm752_vm0, %v6498_v3, 0  ;;  %vm255_vm1 = vsmask.f32 3328  ;;  %vm256_vm2 = vsmask.f32 7440 }
  0x19   : > { %5988 = vmatpush3.bf16.msra.mxu0 %v6496_v1  ;;  %6427 = vmatprep.subr.msk.bf16.mxu1 %vm752_vm0, %v6497_v2  ;;  %8746 = vst [vmem:[#allocation5_spill] sm:$0xff] %v6802_v6  ;;  %vm6833_vm3 = vmor %vm255_vm1, %vm256_vm2  ;;  %vm1266_vm5 = vcmask 1042432   ;;  %vm1267_vm6 = vcmask 1046532   ;;  %vm4965_vm8 = vcmask 261120   ;;  %s5680_s26 = sshll.u32 %s6691_s15, 12  ;;  %s6701_s5 = smov [#allocation2]  }
  0x1a   : > { %6431 = vmatprep.subr.msk.bf16.mxu0 %vm752_vm0, %v6498_v3  ;;  %s6437_s10 = smul.u32 216, %s193_s7  ;;  %vm7073_vm7 = vmor %vm1266_vm5, %vm1267_vm6  ;;  %s8666_s30 = scalar_lea.hbm %s8727_s3, %s5680_s26 }
  0x1b   : > { %s6625_s6 = sshll.u32 %s6701_s5, 4  ;;  %s6626_s6 = int_to_ptr.vmem [resolvable:$false] %s6625_s6 }
  0x1c   : > { %5846 = vmatpush3.bf16.msra.mxu1 %v754_v4  ;;  %s6812_s23 = scalar_lea.vmem %s8724_s0, %s6437_s10  ;;  %s6627_s7 = scalar_lea.vmem %s6626_s6, 8192 }
  0x1d   : > { %5990 = vmatpush3.bf16.msra.mxu0 %v6802_v6  ;;  %v204_v8 = vld [vmem:[%s6812_s23] sm:$0xf]  ;;  %v205_v9 = vld [vmem:[%s6812_s23 + $0x4] sm:$0xf]  ;;  %v239_v10 = vld [vmem:[%s6812_s23 + $0x8] sm:$0x1]  ;;  %5879 = vmatprep.subr.bf16.mxu1 %v6798_v5 }
  0x1e   : > { %v259_v11 = vshrl.u32 %v204_v8, 16  ;;  %v262_v12 = vshll.u32 %v204_v8, 16  ;;  %v268_v13 = vshll.u32 %v205_v9, 16  ;;  %v272_v14 = vshrl.u32 %v205_v9, 16  ;;  %v5297_v15 = vld [vmem:[%s6812_s23 + $0xc] sm:$0xf]  ;;  %6023 = vmatprep.subr.bf16.mxu0 %v6807_v7 }
  0x1f   : > { %v278_v16 = vshll.u32 %v239_v10, 16  ;;  %v6822_v17 = vld [vmem:[%s6812_s23 + $0x10] sm:$0xf]  ;;  %v6825_v18 = vld [vmem:[%s6812_s23 + $0x14] sm:$0x1]  ;;  %v2105_v24 = vshrl.u32 %v5297_v15, 16 }
  0x20   : > { %v261_v19 = vrot.slane %v259_v11, 4  ;;  %v264_v20 = vrot.slane %v262_v12, 5  ;;  %v270_v21 = vrot.slane %v268_v13, 5  ;;  %v274_v22 = vrot.slane %v272_v14, 4  ;;  %v206_v31 = vld [vmem:[%s6812_s23 + $0xc] sm:$0xf] }
  0x21   : > { %v280_v23 = vrot.slane %v278_v16, 5  ;;  %v2108_v25 = vshll.u32 %v5297_v15, 16  ;;  %v2114_v26 = vshll.u32 %v6822_v17, 16  ;;  %v2118_v29 = vshrl.u32 %v6822_v17, 16  ;;  %v207_v36 = vld [vmem:[%s6812_s23 + $0x10] sm:$0xf] }
  0x22   : > { %v265_v27 = vor.u32 %v264_v20, %v261_v19  ;;  %v275_v28 = vor.u32 %v274_v22, %v270_v21  ;;  %v2124_v30 = vshll.u32 %v6825_v18, 16  ;;  %v2107_v33 = vrot.slane %v2105_v24, 4  ;;  %v240_v42 = vld [vmem:[%s6812_s23 + $0x14] sm:$0x1]  ;;  %v5300_v53 = vld [vmem:[%s6812_s23 + $0x18] sm:$0xf] }
  0x23   : > { %v2110_v34 = vrot.slane %v2108_v25, 5  ;;  %v2116_v35 = vrot.slane %v2114_v26, 5  ;;  %v2120_v39 = vrot.slane %v2118_v29, 4  ;;  %v283_v43 = vshrl.u32 %v206_v31, 16  ;;  %v6845_v58 = vld [vmem:[%s6812_s23 + $0x1c] sm:$0xf] }
  0x24   : > { %v266_v37 = vrot.slane %v265_v27, 4  ;;  %v276_v38 = vrot.slane %v275_v28, 4  ;;  %v2126_v41 = vrot.slane %v2124_v30, 5  ;;  %v286_v44 = vshll.u32 %v206_v31, 16  ;;  %v6853_v63 = vld [vmem:[%s6812_s23 + $0x20] sm:$0x1] }
  0x25   : > { %v2111_v40 = vor.u32 %v2110_v34, %v2107_v33  ;;  %v2121_v47 = vor.u32 %v2120_v39, %v2116_v35  ;;  %v292_v48 = vshll.u32 %v207_v36, 16  ;;  %v285_v51 = vrot.slane %v283_v43, 4  ;;  %v208_v15 = vld [vmem:[%s6812_s23 + $0x18] sm:$0xf]  ;;  %v209_v22 = vld [vmem:[%s6812_s23 + $0x1c] sm:$0xf] }
  0x26   : > { %v271_v45 = vsel %vm6833_vm3, %v266_v37, %v270_v21  ;;  %v281_v46 = vsel %vm6833_vm3, %v276_v38, %v280_v23  ;;  %v288_v52 = vrot.slane %v286_v44, 5  ;;  %v296_v56 = vshrl.u32 %v207_v36, 16  ;;  %v241_v29 = vld [vmem:[%s6812_s23 + $0x20] sm:$0x1]  ;;  %v5303_v37 = vld [vmem:[%s6812_s23 + $0x24] sm:$0xf] }
  0x27   : > { %v5107_v49 = vcombine.low %v271_v45, %v281_v46  ;;  %v2112_v50 = vrot.slane %v2111_v40, 4  ;;  %v2122_v54 = vrot.slane %v2121_v47, 4  ;;  %v294_v55 = vrot.slane %v292_v48, 5  ;;  %v6878_v38 = vld [vmem:[%s8725_s1 + $0x8] ss:$0 sps:$4 sm:$0xff]  }
  0x28   : > { %v302_v57 = vshll.u32 %v240_v42, 16  ;;  %v2859_v60 = vrot.slane %v6822_v17, 5  ;;  %v2862_v61 = vrot.slane %v6825_v18, 5  ;;  %v289_v62 = vor.u32 %v288_v52, %v285_v51  ;;  %v6881_v43 = vld [vmem:[%s6812_s23 + $0x28] sm:$0xf]  ;;  %v7101_v18 = vld [vmem:[%s8725_s1 + $0x18] sm:$0xff]  }
  0x29   : > { %5847 = vmatprep.mubr.msk.bf16.mxu1 %vm703_vm4, %v5107_v49  ;;  %v2117_v59 = vsel %vm6833_vm3, %v2112_v50, %v2116_v35  ;;  %v2127_v0 = vsel %vm6833_vm3, %v2122_v54, %v2126_v41  ;;  %v298_v1 = vrot.slane %v296_v56, 4  ;;  %v2129_v3 = vshrl.u32 %v5300_v53, 16  ;;  %v6887_v50 = vld [vmem:[%s6812_s23 + $0x2c] sm:$0x1] }
  0x2a   : > { %v304_v2 = vrot.slane %v302_v57, 5  ;;  %v5348_v4 = vcombine.low %v2117_v59, %v2127_v0  ;;  %v290_v8 = vrot.slane %v289_v62, 4  ;;  %v2132_v9 = vshll.u32 %v5300_v53, 16  ;;  %v210_v57 = vld [vmem:[%s6812_s23 + $0x24] sm:$0xf] }
  0x2b   : > { %v2138_v10 = vshll.u32 %v6845_v58, 16  ;;  %v299_v11 = vor.u32 %v298_v1, %v294_v55  ;;  %v2131_v12 = vrot.slane %v2129_v3, 4  ;;  %v2142_v13 = vshrl.u32 %v6845_v58, 16  ;;  %v6897_v59 = vld [vmem:[%s8725_s1 + $0x44] ss:$0 sps:$4 sm:$0xff]  }
  0x2c   : > { %v2148_v14 = vshll.u32 %v6853_v63, 16  ;;  %5991 = vmatprep.mubr.msk.bf16.mxu0 %vm703_vm4, %v5348_v4  ;;  %v295_v16 = vsel %vm6833_vm3, %v290_v8, %v294_v55  ;;  %v2134_v19 = vrot.slane %v2132_v9, 5  ;;  %v2866_v21 = vrot.slane %v6845_v58, 5  ;;  %v211_v3 = vld [vmem:[%s6812_s23 + $0x28] sm:$0xf] }
  0x2d   : > { %v2140_v20 = vrot.slane %v2138_v10, 5  ;;  %v300_v23 = vrot.slane %v299_v11, 4  ;;  %v2144_v24 = vrot.slane %v2142_v13, 4  ;;  %v2869_v26 = vrot.slane %v6853_v63, 5 }
  0x2e   : > { %v2150_v25 = vrot.slane %v2148_v14, 5  ;;  %v2135_v27 = vor.u32 %v2134_v19, %v2131_v12  ;;  %v6869_v28 = vrot.slane %v2866_v21, 4  ;;  %v307_v30 = vshrl.u32 %v208_v15, 16  ;;  %v242_v12 = vld [vmem:[%s6812_s23 + $0x2c] sm:$0x1] }
  0x2f   : > { %v310_v31 = vshll.u32 %v208_v15, 16  ;;  %v305_v33 = vsel %vm6833_vm3, %v300_v23, %v304_v2  ;;  %v2145_v34 = vor.u32 %v2144_v24, %v2140_v20  ;;  %v316_v35 = vshll.u32 %v209_v22, 16 }
  0x30   : > { %v320_v36 = vshrl.u32 %v209_v22, 16  ;;  %v5108_v39 = vcombine.low %v295_v16, %v305_v33  ;;  %v2136_v40 = vrot.slane %v2135_v27, 4  ;;  %v309_v41 = vrot.slane %v307_v30, 4  ;;  %v5306_v22 = vld [vmem:[%s6812_s23 + $0x30] sm:$0xf] }
  0x31   : > { %v312_v42 = vrot.slane %v310_v31, 5  ;;  %v2146_v44 = vrot.slane %v2145_v34, 4  ;;  %v318_v45 = vrot.slane %v316_v35, 5  ;;  %v326_v47 = vshll.u32 %v241_v29, 16  ;;  %v6913_v29 = vld [vmem:[%s6812_s23 + $0x34] sm:$0xf] }
  0x32   : > { %v322_v46 = vrot.slane %v320_v36, 4  ;;  %5848 = vmatmul.mubr.msk.bf16.vlgmr.msra.gmra.mrb[0].mxu1 %vm703_vm4, %v5108_v39  ;;  %v2141_v48 = vsel %vm6833_vm3, %v2136_v40, %v2140_v20  ;;  %v2153_v51 = vshrl.u32 %v5303_v37, 16  ;;  %v2156_v52 = vshll.u32 %v5303_v37, 16  ;;  %v6921_v36 = vld [vmem:[%s6812_s23 + $0x38] sm:$0x1] }
  0x33   : > { %v313_v49 = vor.u32 %v312_v42, %v309_v41  ;;  %5880 = vmatpush3.bf16.msra.mxu1 %v6798_v5  ;;  %v2151_v53 = vsel %vm6833_vm3, %v2146_v44, %v2150_v25  ;;  %v328_v55 = vrot.slane %v326_v47, 5  ;;  %v2162_v56 = vshll.u32 %v6881_v43, 16 }
  0x34   : > { %v323_v54 = vor.u32 %v322_v46, %v318_v45  ;;  %v5349_v62 = vcombine.low %v2141_v48, %v2151_v53  ;;  %v2155_v1 = vrot.slane %v2153_v51, 4  ;;  %v2158_v2 = vrot.slane %v2156_v52, 5  ;;  %6428 = vmatprep.subr.msk.bf16.mxu1 %vm752_vm0, %v6878_v38 }
  0x35   : > { %v314_v0 = vrot.slane %v313_v49, 4  ;;  %v2164_v4 = vrot.slane %v2162_v56, 5  ;;  %v2166_v8 = vshrl.u32 %v6881_v43, 16  ;;  %v2172_v9 = vshll.u32 %v6887_v50, 16  ;;  %v212_v49 = vld [vmem:[%s6812_s23 + $0x30] sm:$0xf] }
  0x36   : > { %v324_v5 = vrot.slane %v323_v54, 4  ;;  %5992 = vmatmul.mubr.msk.bf16.vlgmr.msra.gmra.mrb[0].mxu0 %vm703_vm4, %v5349_v62  ;;  %v2159_v11 = vor.u32 %v2158_v2, %v2155_v1  ;;  %v331_v13 = vshrl.u32 %v210_v57, 16  ;;  %v334_v14 = vshll.u32 %v210_v57, 16  ;;  %v243_v1 = vld [vmem:[%s6812_s23 + $0x38] sm:$0x1] }
  0x37   : > { %v319_v10 = vsel %vm6833_vm3, %v314_v0, %v318_v45  ;;  %6024 = vmatpush3.bf16.msra.mxu0 %v6807_v7  ;;  %v2168_v16 = vrot.slane %v2166_v8, 4  ;;  %v2174_v19 = vrot.slane %v2172_v9, 5  ;;  %v340_v20 = vshll.u32 %v211_v3, 16 }
  0x38   : > { %v329_v15 = vsel %vm6833_vm3, %v324_v5, %v328_v55  ;;  %v2160_v24 = vrot.slane %v2159_v11, 4  ;;  %v333_v25 = vrot.slane %v331_v13, 4  ;;  %v336_v27 = vrot.slane %v334_v14, 5  ;;  %6433 = vmatprep.subr.msk.bf16.mxu0 %vm752_vm0, %v6897_v59  ;;  %v213_v55 = vld [vmem:[%s6812_s23 + $0x34] sm:$0xf] }
  0x39   : > { %v5109_v23 = vcombine.low %v319_v10, %v329_v15  ;;  %v2169_v30 = vor.u32 %v2168_v16, %v2164_v4  ;;  %v342_v31 = vrot.slane %v340_v20, 5  ;;  %v344_v7 = vshrl.u32 %v211_v3, 16 }
  0x3a   : > { %v350_v33 = vshll.u32 %v242_v12, 16  ;;  %v2165_v34 = vsel %vm6833_vm3, %v2160_v24, %v2164_v4  ;;  %v337_v35 = vor.u32 %v336_v27, %v333_v25  ;;  %v2177_v37 = vshrl.u32 %v5306_v22, 16  ;;  %v5309_v12 = vld [vmem:[%s6812_s23 + $0x3c] sm:$0xf]  ;;  %v6943_v25 = vld [vmem:[%s6812_s23 + $0x44] sm:$0x1] }
  0x3b   : > { %5851 = vmatprep.mubr.msk.bf16.mxu1 %vm703_vm4, %v5109_v23  ;;  %v2180_v39 = vshll.u32 %v5306_v22, 16  ;;  %v2170_v40 = vrot.slane %v2169_v30, 4  ;;  %v346_v41 = vrot.slane %v344_v7, 4  ;;  %v2186_v44 = vshll.u32 %v6913_v29, 16 }
  0x3c   : > { %v352_v42 = vrot.slane %v350_v33, 5  ;;  %v338_v45 = vrot.slane %v337_v35, 4  ;;  %v2179_v46 = vrot.slane %v2177_v37, 4  ;;  %v2190_v48 = vshrl.u32 %v6913_v29, 16 }
  0x3d   : > { %v2182_v47 = vrot.slane %v2180_v39, 5  ;;  %v2175_v51 = vsel %vm6833_vm3, %v2170_v40, %v2174_v19  ;;  %v347_v52 = vor.u32 %v346_v41, %v342_v31  ;;  %v2188_v53 = vrot.slane %v2186_v44, 5  ;;  %v6938_v19 = vld [vmem:[%s6812_s23 + $0x40] sm:$0xf]  ;;  %v214_v39 = vld [vmem:[%s6812_s23 + $0x3c] sm:$0xf] }
  0x3e   : > { %v2196_v54 = vshll.u32 %v6921_v36, 16  ;;  %v5350_v56 = vcombine.low %v2165_v34, %v2175_v51  ;;  %v343_v57 = vsel %vm6833_vm3, %v338_v45, %v342_v31  ;;  %v2192_v0 = vrot.slane %v2190_v48, 4  ;;  %v215_v45 = vld [vmem:[%s6812_s23 + $0x40] sm:$0xf] }
  0x3f   : > { %v2183_v62 = vor.u32 %v2182_v47, %v2179_v46  ;;  %v348_v2 = vrot.slane %v347_v52, 4  ;;  %v355_v5 = vshrl.u32 %v212_v49, 16  ;;  %v358_v4 = vshll.u32 %v212_v49, 16 }
  0x40   : > { %v2198_v3 = vrot.slane %v2196_v54, 5  ;;  %5995 = vmatprep.mubr.msk.bf16.mxu0 %vm703_vm4, %v5350_v56  ;;  %v2193_v9 = vor.u32 %v2192_v0, %v2188_v53  ;;  %v364_v10 = vshll.u32 %v213_v55, 16  ;;  %v368_v11 = vshrl.u32 %v213_v55, 16 }
  0x41   : > { %v2184_v8 = vrot.slane %v2183_v62, 4  ;;  %v353_v13 = vsel %vm6833_vm3, %v348_v2, %v352_v42  ;;  %v357_v14 = vrot.slane %v355_v5, 4  ;;  %v360_v15 = vrot.slane %v358_v4, 5  ;;  %v244_v62 = vld [vmem:[%s6812_s23 + $0x44] sm:$0x1] }
  0x42   : > { %v374_v16 = vshll.u32 %v243_v1, 16  ;;  %v5110_v20 = vcombine.low %v343_v57, %v353_v13  ;;  %v2194_v23 = vrot.slane %v2193_v9, 4  ;;  %v366_v24 = vrot.slane %v364_v10, 5  ;;  %v5312_v1 = vld [vmem:[%s6812_s23 + $0x48] sm:$0xf] }
  0x43   : > { %v2189_v22 = vsel %vm6833_vm3, %v2184_v8, %v2188_v53  ;;  %v361_v27 = vor.u32 %v360_v15, %v357_v14  ;;  %v370_v30 = vrot.slane %v368_v11, 4  ;;  %v2201_v7 = vshrl.u32 %v5309_v12, 16  ;;  %v6961_v8 = vld [vmem:[%s6812_s23 + $0x4c] sm:$0xf] }
  0x44   : > { %v376_v31 = vrot.slane %v374_v16, 5  ;;  %5852 = vmatmul.mubr.msk.bf16.gmra.mrb[4].mxu1 %vm703_vm4, %v5110_v20  ;;  %v2199_v33 = vsel %vm6833_vm3, %v2194_v23, %v2198_v3  ;;  %v2204_v34 = vshll.u32 %v5309_v12, 16  ;;  %v2210_v35 = vshll.u32 %v6938_v19, 16  ;;  %v6969_v23 = vld [vmem:[%s6812_s23 + $0x50] sm:$0x1] }
  0x45   : > { %v2214_v37 = vshrl.u32 %v6938_v19, 16  ;;  %v5351_v40 = vcombine.low %v2189_v22, %v2199_v33  ;;  %v362_v41 = vrot.slane %v361_v27, 4  ;;  %v371_v42 = vor.u32 %v370_v30, %v366_v24 }
  0x46   : > { %v2203_v44 = vrot.slane %v2201_v7, 4  ;;  %v2206_v46 = vrot.slane %v2204_v34, 5  ;;  %v2212_v47 = vrot.slane %v2210_v35, 5  ;;  %v2220_v49 = vshll.u32 %v6943_v25, 16  ;;  %v6973_v34 = vld [vmem:[%s6812_s23 + $0x48] sm:$0xf] }
  0x47   : > { %v2216_v48 = vrot.slane %v2214_v37, 4  ;;  %5996 = vmatmul.mubr.msk.bf16.gmra.mrb[4].mxu0 %vm703_vm4, %v5351_v40  ;;  %v367_v51 = vsel %vm6833_vm3, %v362_v41, %v366_v24  ;;  %v372_v52 = vrot.slane %v371_v42, 4  ;;  %v379_v53 = vshrl.u32 %v214_v39, 16  ;;  %v6978_v35 = vld [vmem:[%s8725_s1 + $0x48] sm:$0xff]  }
  0x48   : > { %v382_v54 = vshll.u32 %v214_v39, 16  ;;  %v2207_v55 = vor.u32 %v2206_v46, %v2203_v44  ;;  %v2222_v57 = vrot.slane %v2220_v49, 5  ;;  %v388_v0 = vshll.u32 %v215_v45, 16  ;;  %v6982_v42 = vld [vmem:[%s6812_s23 + $0x4c] sm:$0xf] }
  0x49   : > { %v2217_v56 = vor.u32 %v2216_v48, %v2212_v47  ;;  %v377_v2 = vsel %vm6833_vm3, %v372_v52, %v376_v31  ;;  %v381_v3 = vrot.slane %v379_v53, 4  ;;  %v392_v4 = vshrl.u32 %v215_v45, 16 }
  0x4a   : > { %v384_v5 = vrot.slane %v382_v54, 5  ;;  %v5111_v9 = vcombine.low %v367_v51, %v377_v2  ;;  %v2208_v10 = vrot.slane %v2207_v55, 4  ;;  %v390_v12 = vrot.slane %v388_v0, 5  ;;  %v245_v51 = vld [vmem:[%s6812_s23 + $0x50] sm:$0x1] }
  0x4b   : > { %v2218_v11 = vrot.slane %v2217_v56, 4  ;;  %v394_v14 = vrot.slane %v392_v4, 4  ;;  %v398_v15 = vshll.u32 %v244_v62, 16  ;;  %v2225_v16 = vshrl.u32 %v5312_v1, 16  ;;  %v5315_v62 = vld [vmem:[%s6812_s23 + $0x54] sm:$0xf] }
  0x4c   : > { %v385_v13 = vor.u32 %v384_v5, %v381_v3  ;;  %5855 = vmatprep.mubr.msk.bf16.mxu1 %vm703_vm4, %v5111_v9  ;;  %v2213_v20 = vsel %vm6833_vm3, %v2208_v10, %v2212_v47  ;;  %v2228_v24 = vshll.u32 %v5312_v1, 16  ;;  %v2234_v27 = vshll.u32 %v6961_v8, 16  ;;  %v7000_v3 = vld [vmem:[%s6812_s23 + $0x58] sm:$0xf] }
  0x4d   : > { %v2223_v22 = vsel %vm6833_vm3, %v2218_v11, %v2222_v57  ;;  %v395_v7 = vor.u32 %v394_v14, %v390_v12  ;;  %v400_v33 = vrot.slane %v398_v15, 5  ;;  %v2227_v37 = vrot.slane %v2225_v16, 4 }
  0x4e   : > { %v5352_v30 = vcombine.low %v2213_v20, %v2223_v22  ;;  %v386_v31 = vrot.slane %v385_v13, 4  ;;  %v2230_v39 = vrot.slane %v2228_v24, 5  ;;  %v2236_v40 = vrot.slane %v2234_v27, 5  ;;  %v7006_v22 = vld [vmem:[%s6812_s23 + $0x5c] sm:$0x1] }
  0x4f   : > { %v2238_v41 = vshrl.u32 %v6961_v8, 16  ;;  %v396_v45 = vrot.slane %v395_v7, 4  ;;  %v2244_v46 = vshll.u32 %v6969_v23, 16  ;;  %v3079_v47 = vsel %vm752_vm0, %v6897_v59, 0  ;;  %v7010_v27 = vld [vmem:[%s6812_s23 + $0x54] sm:$0xf] }
  0x50   : > { %5999 = vmatprep.mubr.msk.bf16.mxu0 %vm703_vm4, %v5352_v30  ;;  %v391_v44 = vsel %vm6833_vm3, %v386_v31, %v390_v12  ;;  %v2231_v48 = vor.u32 %v2230_v39, %v2227_v37  ;;  %6026 = vmatpush3.bf16.msra.mxu0 %v3079_v47  ;;  %v403_v52 = vshrl.u32 %v6973_v34, 16  ;;  %v406_v53 = vshll.u32 %v6973_v34, 16  ;;  %v7016_v37 = vld [vmem:[%s6812_s23 + $0x58] sm:$0xf] }
  0x51   : > { %v2240_v49 = vrot.slane %v2238_v41, 4  ;;  %v401_v54 = vsel %vm6833_vm3, %v396_v45, %v400_v33  ;;  %v2246_v55 = vrot.slane %v2244_v46, 5  ;;  %v412_v56 = vshll.u32 %v6982_v42, 16  ;;  %6059 = vmatprep.subr.bf16.mxu0 %v6978_v35 }
  0x52   : > { %v416_v57 = vshrl.u32 %v6982_v42, 16  ;;  %v5112_v59 = vcombine.low %v391_v44, %v401_v54  ;;  %v2232_v0 = vrot.slane %v2231_v48, 4  ;;  %v405_v2 = vrot.slane %v403_v52, 4  ;;  %v246_v48 = vld [vmem:[%s6812_s23 + $0x5c] sm:$0x1] }
  0x53   : > { %v2241_v1 = vor.u32 %v2240_v49, %v2236_v40  ;;  %v408_v5 = vrot.slane %v406_v53, 5  ;;  %v414_v4 = vrot.slane %v412_v56, 5  ;;  %v422_v10 = vshll.u32 %v245_v51, 16 }
  0x54   : > { %v418_v9 = vrot.slane %v416_v57, 4  ;;  %5856 = vmatmul.mubr.msk.bf16.gmra.mrb[8].mxu1 %vm703_vm4, %v5112_v59  ;;  %v2237_v11 = vsel %vm6833_vm3, %v2232_v0, %v2236_v40  ;;  %v2249_v13 = vshrl.u32 %v5315_v62, 16  ;;  %v2252_v14 = vshll.u32 %v5315_v62, 16  ;;  %v7030_v0 = vld [vmem:[%s6812_s23 + $0x64] sm:$0xf] }
  0x55   : > { %v2242_v12 = vrot.slane %v2241_v1, 4  ;;  %v409_v15 = vor.u32 %v408_v5, %v405_v2  ;;  %v424_v20 = vrot.slane %v422_v10, 5  ;;  %v2258_v24 = vshll.u32 %v7000_v3, 16 }
  0x56   : > { %v419_v16 = vor.u32 %v418_v9, %v414_v4  ;;  %v2251_v31 = vrot.slane %v2249_v13, 4  ;;  %v2254_v7 = vrot.slane %v2252_v14, 5  ;;  %v2262_v33 = vshrl.u32 %v7000_v3, 16  ;;  %v7034_v9 = vld [vmem:[%s6812_s23 + $0x68] sm:$0x1] }
  0x57   : > { %v2247_v30 = vsel %vm6833_vm3, %v2242_v12, %v2246_v55  ;;  %v410_v40 = vrot.slane %v409_v15, 4  ;;  %v2260_v44 = vrot.slane %v2258_v24, 5  ;;  %v2268_v47 = vshll.u32 %v7006_v22, 16  ;;  %v5318_v55 = vld [vmem:[%s6812_s23 + $0x60] sm:$0xf] }
  0x58   : > { %v5353_v39 = vcombine.low %v2237_v11, %v2247_v30  ;;  %v420_v41 = vrot.slane %v419_v16, 4  ;;  %v2255_v45 = vor.u32 %v2254_v7, %v2251_v31  ;;  %v2264_v46 = vrot.slane %v2262_v33, 4  ;;  %v7040_v14 = vld [vmem:[%s6812_s23 + $0x60] sm:$0xf] }
  0x59   : > { %v427_v49 = vshrl.u32 %v7010_v27, 16  ;;  %v415_v51 = vsel %vm6833_vm3, %v410_v40, %v414_v4  ;;  %v430_v53 = vshll.u32 %v7010_v27, 16  ;;  %v436_v54 = vshll.u32 %v7016_v37, 16 }
  0x5a   : > { %6000 = vmatmul.mubr.msk.bf16.gmra.mrb[8].mxu0 %vm703_vm4, %v5353_v39  ;;  %v425_v52 = vsel %vm6833_vm3, %v420_v41, %v424_v20  ;;  %v2256_v57 = vrot.slane %v2255_v45, 4  ;;  %v2265_v62 = vor.u32 %v2264_v46, %v2260_v44  ;;  %v2270_v59 = vrot.slane %v2268_v47, 5  ;;  %v7047_v45 = vld [vmem:[%s6812_s23 + $0x64] sm:$0xf] }
  0x5b   : > { %v5113_v56 = vcombine.low %v415_v51, %v425_v52  ;;  %v429_v1 = vrot.slane %v427_v49, 4  ;;  %v432_v2 = vrot.slane %v430_v53, 5  ;;  %v438_v5 = vrot.slane %v436_v54, 5  ;;  %v247_v54 = vld [vmem:[%s6812_s23 + $0x68] sm:$0x1] }
  0x5c   : > { %v440_v4 = vshrl.u32 %v7016_v37, 16  ;;  %v2261_v10 = vsel %vm6833_vm3, %v2256_v57, %v2260_v44  ;;  %v2266_v11 = vrot.slane %v2265_v62, 4  ;;  %v446_v12 = vshll.u32 %v246_v48, 16 }
  0x5d   : > { %5859 = vmatprep.mubr.msk.bf16.mxu1 %vm703_vm4, %v5113_v56  ;;  %v2273_v13 = vshrl.u32 %v5318_v55, 16  ;;  %v433_v15 = vor.u32 %v432_v2, %v429_v1  ;;  %v2276_v20 = vshll.u32 %v5318_v55, 16  ;;  %v2282_v24 = vshll.u32 %v7030_v0, 16 }
  0x5e   : > { %v442_v16 = vrot.slane %v440_v4, 4  ;;  %v2271_v30 = vsel %vm6833_vm3, %v2266_v11, %v2270_v59  ;;  %v448_v31 = vrot.slane %v446_v12, 5  ;;  %v2286_v33 = vshrl.u32 %v7030_v0, 16 }
  0x5f   : > { %v2275_v7 = vrot.slane %v2273_v13, 4  ;;  %v5354_v39 = vcombine.low %v2261_v10, %v2271_v30  ;;  %v434_v40 = vrot.slane %v433_v15, 4  ;;  %v2278_v44 = vrot.slane %v2276_v20, 5 }
  0x60   : > { %v443_v41 = vor.u32 %v442_v16, %v438_v5  ;;  %v2284_v46 = vrot.slane %v2282_v24, 5  ;;  %v2288_v47 = vrot.slane %v2286_v33, 4  ;;  %v2292_v48 = vshll.u32 %v7034_v9, 16  ;;  %v7062_v16 = vld [vmem:[%s6812_s23 + $0x6c] sm:$0xf] }
  0x61   : > { %v451_v49 = vshrl.u32 %v7040_v14, 16  ;;  %6003 = vmatprep.mubr.msk.bf16.mxu0 %vm703_vm4, %v5354_v39  ;;  %v439_v51 = vsel %vm6833_vm3, %v434_v40, %v438_v5  ;;  %v2279_v53 = vor.u32 %v2278_v44, %v2275_v7  ;;  %v454_v55 = vshll.u32 %v7040_v14, 16  ;;  %v5382_v5 = vld [vmem:[%s6812_s23 + $0xc] sm:$0xe]  ;;  %v7067_v7 = vld [vmem:[%s6812_s23 + $0x70] sm:$0xf] }
  0x62   : > { %v444_v52 = vrot.slane %v443_v41, 4  ;;  %v2289_v56 = vor.u32 %v2288_v47, %v2284_v46  ;;  %v2294_v57 = vrot.slane %v2292_v48, 5  ;;  %v460_v59 = vshll.u32 %v7047_v45, 16  ;;  %v248_v48 = vld [vmem:[%s6812_s23 + $0x74] sm:$0x1] }
  0x63   : > { %v453_v62 = vrot.slane %v451_v49, 4  ;;  %v2280_v2 = vrot.slane %v2279_v53, 4  ;;  %v456_v4 = vrot.slane %v454_v55, 5  ;;  %v464_v10 = vshrl.u32 %v7047_v45, 16  ;;  %v5383_v55 = vld [vmem:[%s6812_s23 + $0x18] sm:$0xe] }
  0x64   : > { %v449_v1 = vsel %vm6833_vm3, %v444_v52, %v448_v31  ;;  %v2290_v12 = vrot.slane %v2289_v56, 4  ;;  %v462_v13 = vrot.slane %v460_v59, 5  ;;  %v470_v15 = vshll.u32 %v247_v54, 16 }
  0x65   : > { %v5114_v11 = vcombine.low %v439_v51, %v449_v1  ;;  %v2285_v20 = vsel %vm6833_vm3, %v2280_v2, %v2284_v46  ;;  %v457_v24 = vor.u32 %v456_v4, %v453_v62  ;;  %v466_v30 = vrot.slane %v464_v10, 4  ;;  %v7096_v62 = vld [vmem:[%s6812_s23 + $0x78] sm:$0xf]  ;;  %v7105_v4 = vld [vmem:[%s6812_s23 + $0x7c] sm:$0xf] }
  0x66   : > { %v2295_v31 = vsel %vm6833_vm3, %v2290_v12, %v2294_v57  ;;  %v472_v33 = vrot.slane %v470_v15, 5  ;;  %v8749_v39 = vmov 0  ;;  %v5398_v40 = vrot.slane %v5382_v5, 9 }
  0x67   : > { %5860 = vmatmul.mubr.msk.bf16.gmra.mrb[12].mxu1 %vm703_vm4, %v5114_v11  ;;  %v8750_v39 = vsel %vm7073_vm7, 4294967295, %v8749_v39  ;;  %v2861_v41 = vrot.slane %v2859_v60, 4  ;;  %v5355_v44 = vcombine.low %v2285_v20, %v2295_v31  ;;  %v458_v46 = vrot.slane %v457_v24, 4  ;;  %v5384_v31 = vld [vmem:[%s6812_s23 + $0x24] sm:$0xe] }
  0x68   : > { %8751 = vst [vmem:[#allocation6_spill] sm:$0xff] %v8750_v39  ;;  %v467_v47 = vor.u32 %v466_v30, %v462_v13  ;;  %v475_v49 = vshrl.u32 %v7062_v16, 16  ;;  %v2860_v51 = vsel %vm7073_vm7, %v5398_v40, %v2859_v60  ;;  %v478_v53 = vshll.u32 %v7062_v16, 16 }
  0x69   : > { %v2863_v52 = vsel %vm7073_vm7, %v2861_v41, %v2862_v61  ;;  %v484_v54 = vshll.u32 %v7067_v7, 16  ;;  %6004 = vmatmul.mubr.msk.bf16.gmra.mrb[12].mxu0 %vm703_vm4, %v5355_v44  ;;  %v463_v56 = vsel %vm6833_vm3, %v458_v46, %v462_v13  ;;  %v488_v1 = vshrl.u32 %v7067_v7, 16  ;;  %v249_v13 = vld [vmem:[%s6812_s23 + $0x80] sm:$0x1] }
  0x6a   : > { %v468_v17 = vrot.slane %v467_v47, 4  ;;  %v5417_v57 = vcombine.low %v2860_v51, %v2863_v52  ;;  %v477_v60 = vrot.slane %v475_v49, 4  ;;  %v480_v61 = vrot.slane %v478_v53, 5  ;;  %v7138_v51 = vld [vmem:[%s6812_s23 + $0x88] sm:$0xf] }
  0x6b   : > { %v486_v59 = vrot.slane %v484_v54, 5  ;;  %v494_v2 = vshll.u32 %v248_v48, 16  ;;  %v1055_v5 = vsel %vm752_vm0, %v6878_v38, 0  ;;  %v5399_v11 = vrot.slane %v5383_v55, 9 }
  0x6c   : > { %v473_v10 = vsel %vm6833_vm3, %v468_v17, %v472_v33  ;;  %6027 = vmatprep.mubr.msk.bf16.mxu0 %vm703_vm4, %v5417_v57  ;;  %v2870_v12 = vsel %vm7073_vm7, %v6869_v28, %v2869_v26  ;;  %v481_v20 = vor.u32 %v480_v61, %v477_v60  ;;  %v490_v24 = vrot.slane %v488_v1, 4  ;;  %5882 = vmatpush3.bf16.msra.mxu1 %v1055_v5  ;;  %v7127_v26 = vld [vmem:[%s6812_s23 + $0x84] sm:$0xf]  ;;  %v7133_v28 = vld [vmem:[%s8725_s1 + $0x50] ss:$0 sps:$4 sm:$0xff]  }
  0x6d   : > { %v5115_v15 = vcombine.low %v463_v56, %v473_v10  ;;  %v496_v30 = vrot.slane %v494_v2, 5  ;;  %v2867_v33 = vsel %vm7073_vm7, %v5399_v11, %v2866_v21  ;;  %v499_v38 = vshrl.u32 %v7096_v62, 16  ;;  %5915 = vmatprep.subr.bf16.mxu1 %v7101_v18  ;;  %v250_v56 = vld [vmem:[%s6812_s23 + $0x8c] sm:$0x1]  ;;  %v5385_v5 = vld [vmem:[%s6812_s23 + $0x30] sm:$0xe] }
  0x6e   : > { %v502_v63 = vshll.u32 %v7096_v62, 16  ;;  %v508_v40 = vshll.u32 %v7105_v4, 16  ;;  %v482_v58 = vrot.slane %v481_v20, 4  ;;  %v491_v21 = vor.u32 %v490_v24, %v486_v59 }
  0x6f   : > { %5863 = vmatprep.mubr.msk.bf16.mxu1 %vm703_vm4, %v5115_v15  ;;  %v5418_v41 = vcombine.low %v2867_v33, %v2870_v12  ;;  %v512_v44 = vshrl.u32 %v7105_v4, 16  ;;  %v501_v46 = vrot.slane %v499_v38, 4  ;;  %v518_v49 = vshll.u32 %v249_v13, 16  ;;  %v7155_v15 = vld [vmem:[%s6812_s23 + $0x90] sm:$0xf] }
  0x70   : > { %v504_v47 = vrot.slane %v502_v63, 5  ;;  %v510_v48 = vrot.slane %v508_v40, 5  ;;  %v487_v52 = vsel %vm6833_vm3, %v482_v58, %v486_v59  ;;  %v492_v53 = vrot.slane %v491_v21, 4 }
  0x71   : > { %v514_v54 = vrot.slane %v512_v44, 4  ;;  %v5400_v55 = vrot.slane %v5384_v31, 9  ;;  %6028 = vmatmul.mubr.msk.bf16.vlgmr.msra.gmra.mrb[0].mxu0 %vm703_vm4, %v5418_v41  ;;  %v520_v57 = vrot.slane %v518_v49, 5  ;;  %v2873_v60 = vrot.slane %v6881_v43, 5 }
  0x72   : > { %v505_v17 = vor.u32 %v504_v47, %v501_v46  ;;  %v2876_v61 = vrot.slane %v6887_v50, 5  ;;  %v497_v1 = vsel %vm6833_vm3, %v492_v53, %v496_v30  ;;  %6060 = vmatpush3.bf16.msra.mxu0 %v6978_v35  ;;  %v523_v2 = vshrl.u32 %v7127_v26, 16  ;;  %v7161_v30 = vld [vmem:[%s6812_s23 + $0x94] sm:$0xf]  ;;  %v5386_v53 = vld [vmem:[%s6812_s23 + $0x3c] sm:$0xe] }
  0x73   : > { %v515_v59 = vor.u32 %v514_v54, %v510_v48  ;;  %v526_v10 = vshll.u32 %v7127_v26, 16  ;;  %v5116_v11 = vcombine.low %v487_v52, %v497_v1  ;;  %v2874_v13 = vsel %vm7073_vm7, %v5400_v55, %v2873_v60  ;;  %6434 = vmatprep.subr.msk.bf16.mxu0 %vm752_vm0, %v7133_v28  ;;  %v251_v52 = vld [vmem:[%s6812_s23 + $0x98] sm:$0x1] }
  0x74   : > { %v506_v12 = vrot.slane %v505_v17, 4  ;;  %v2875_v43 = vrot.slane %v2873_v60, 4  ;;  %v525_v20 = vrot.slane %v523_v2, 4  ;;  %v532_v24 = vshll.u32 %v7138_v51, 16  ;;  %v7186_v2 = vld [vmem:[%s6812_s23 + $0x9c] sm:$0xf] }
  0x75   : > { %v516_v50 = vrot.slane %v515_v59, 4  ;;  %v528_v35 = vrot.slane %v526_v10, 5  ;;  %5864 = vmatmul.mubr.msk.bf16.gmra.mrb[16].mxu1 %vm703_vm4, %v5116_v11  ;;  %v536_v38 = vshrl.u32 %v7138_v51, 16  ;;  %v542_v63 = vshll.u32 %v250_v56, 16 }
  0x76   : > { %v511_v31 = vsel %vm6833_vm3, %v506_v12, %v510_v48  ;;  %v2877_v33 = vsel %vm7073_vm7, %v2875_v43, %v2876_v61  ;;  %v534_v41 = vrot.slane %v532_v24, 5  ;;  %v5401_v49 = vrot.slane %v5385_v5, 9  ;;  %v252_v43 = vld [vmem:[%s6812_s23 + $0xa4] sm:$0x1] }
  0x77   : > { %v521_v40 = vsel %vm6833_vm3, %v516_v50, %v520_v57  ;;  %v5419_v58 = vcombine.low %v2874_v13, %v2877_v33  ;;  %v529_v21 = vor.u32 %v528_v35, %v525_v20  ;;  %v538_v46 = vrot.slane %v536_v38, 4  ;;  %v7189_v13 = vld [vmem:[%s6812_s23 + $0xa0] sm:$0xf] }
  0x78   : > { %v5117_v44 = vcombine.low %v511_v31, %v521_v40  ;;  %v544_v47 = vrot.slane %v542_v63, 5  ;;  %v2880_v54 = vrot.slane %v6913_v29, 5  ;;  %v2883_v55 = vrot.slane %v6921_v36, 5 }
  0x79   : > { %6031 = vmatprep.mubr.msk.bf16.mxu0 %vm703_vm4, %v5419_v58  ;;  %v530_v48 = vrot.slane %v529_v21, 4  ;;  %v547_v56 = vshrl.u32 %v7155_v15, 16  ;;  %v539_v17 = vor.u32 %v538_v46, %v534_v41  ;;  %v550_v57 = vshll.u32 %v7155_v15, 16 }
  0x7a   : > { %5867 = vmatprep.mubr.msk.bf16.mxu1 %vm703_vm4, %v5117_v44  ;;  %v556_v60 = vshll.u32 %v7161_v30, 16  ;;  %v560_v61 = vshrl.u32 %v7161_v30, 16  ;;  %v2881_v29 = vsel %vm7073_vm7, %v5401_v49, %v2880_v54  ;;  %v2882_v36 = vrot.slane %v2880_v54, 4  ;;  %v5387_v44 = vld [vmem:[%s6812_s23 + $0x48] sm:$0xe] }
  0x7b   : > { %v535_v1 = vsel %vm6833_vm3, %v530_v48, %v534_v41  ;;  %v549_v59 = vrot.slane %v547_v56, 4  ;;  %v540_v10 = vrot.slane %v539_v17, 4  ;;  %v552_v5 = vrot.slane %v550_v57, 5 }
  0x7c   : > { %v558_v11 = vrot.slane %v556_v60, 5  ;;  %v562_v12 = vrot.slane %v560_v61, 4  ;;  %v2884_v50 = vsel %vm7073_vm7, %v2882_v36, %v2883_v55  ;;  %v566_v20 = vshll.u32 %v251_v52, 16  ;;  %v7217_v60 = vld [vmem:[%s6812_s23 + $0xac] sm:$0xf] }
  0x7d   : > { %v5402_v35 = vrot.slane %v5386_v53, 9  ;;  %v2887_v24 = vrot.slane %v6938_v19, 5  ;;  %v545_v31 = vsel %vm6833_vm3, %v540_v10, %v544_v47  ;;  %v5420_v33 = vcombine.low %v2881_v29, %v2884_v50  ;;  %v7204_v47 = vld [vmem:[%s6812_s23 + $0xa8] sm:$0xf] }
  0x7e   : > { %v553_v38 = vor.u32 %v552_v5, %v549_v59  ;;  %v563_v63 = vor.u32 %v562_v12, %v558_v11  ;;  %v5118_v40 = vcombine.low %v535_v1, %v545_v31  ;;  %v568_v58 = vrot.slane %v566_v20, 5  ;;  %v253_v59 = vld [vmem:[%s6812_s23 + $0xb0] sm:$0x1] }
  0x7f   : > { %v2888_v21 = vsel %vm7073_vm7, %v5402_v35, %v2887_v24  ;;  %v2889_v41 = vrot.slane %v2887_v24, 4  ;;  %6032 = vmatmul.mubr.msk.bf16.gmra.mrb[4].mxu0 %vm703_vm4, %v5420_v33  ;;  %v2890_v19 = vrot.slane %v6943_v25, 5  ;;  %v571_v52 = vshrl.u32 %v7186_v2, 16 }
  0x80   : > { %v554_v46 = vrot.slane %v553_v38, 4  ;;  %v564_v49 = vrot.slane %v563_v63, 4  ;;  %5868 = vmatmul.mubr.msk.bf16.gmra.mrb[20].mxu1 %vm703_vm4, %v5118_v40  ;;  %v574_v53 = vshll.u32 %v7186_v2, 16  ;;  %v580_v48 = vshll.u32 %v7189_v13, 16  ;;  %v5388_v38 = vld [vmem:[%s6812_s23 + $0x54] sm:$0xe] }
  0x81   : > { %v584_v54 = vshrl.u32 %v7189_v13, 16  ;;  %v590_v55 = vshll.u32 %v252_v43, 16  ;;  %v2891_v17 = vsel %vm7073_vm7, %v2889_v41, %v2890_v19  ;;  %v573_v57 = vrot.slane %v571_v52, 4  ;;  %v7237_v19 = vld [vmem:[%s6812_s23 + $0xb8] sm:$0xf] }
  0x82   : > { %v559_v56 = vsel %vm6833_vm3, %v554_v46, %v558_v11  ;;  %v569_v25 = vsel %vm6833_vm3, %v564_v49, %v568_v58  ;;  %v5421_v1 = vcombine.low %v2888_v21, %v2891_v17  ;;  %v576_v29 = vrot.slane %v574_v53, 5 }
  0x83   : > { %v5119_v61 = vcombine.low %v559_v56, %v569_v25  ;;  %v582_v36 = vrot.slane %v580_v48, 5  ;;  %v586_v10 = vrot.slane %v584_v54, 4  ;;  %v592_v5 = vrot.slane %v590_v55, 5 }
  0x84   : > { %v5403_v12 = vrot.slane %v5387_v44, 9  ;;  %v2894_v11 = vrot.slane %v6961_v8, 5  ;;  %6035 = vmatprep.mubr.msk.bf16.mxu0 %vm703_vm4, %v5421_v1  ;;  %v577_v43 = vor.u32 %v576_v29, %v573_v57  ;;  %v2897_v50 = vrot.slane %v6969_v23, 5  ;;  %v7232_v23 = vld [vmem:[%s6812_s23 + $0xb4] sm:$0xf] }
  0x85   : > { %5871 = vmatprep.mubr.msk.bf16.mxu1 %vm703_vm4, %v5119_v61  ;;  %v595_v20 = vshrl.u32 %v7204_v47, 16  ;;  %v598_v35 = vshll.u32 %v7204_v47, 16  ;;  %v587_v24 = vor.u32 %v586_v10, %v582_v36  ;;  %v604_v8 = vshll.u32 %v7217_v60, 16  ;;  %v254_v57 = vld [vmem:[%s6812_s23 + $0xbc] sm:$0x1] }
  0x86   : > { %v2895_v31 = vsel %vm7073_vm7, %v5403_v12, %v2894_v11  ;;  %v2896_v33 = vrot.slane %v2894_v11, 4  ;;  %v578_v63 = vrot.slane %v577_v43, 4  ;;  %v608_v21 = vshrl.u32 %v7217_v60, 16 }
  0x87   : > { %v597_v40 = vrot.slane %v595_v20, 4  ;;  %v600_v58 = vrot.slane %v598_v35, 5  ;;  %v588_v41 = vrot.slane %v587_v24, 4  ;;  %v606_v46 = vrot.slane %v604_v8, 5  ;;  %v5322_v35 = vld [vmem:[%s6812_s23 + $0x70] sm:$0xf] }
  0x88   : > { %v2898_v44 = vsel %vm7073_vm7, %v2896_v33, %v2897_v50  ;;  %v614_v49 = vshll.u32 %v253_v59, 16  ;;  %v583_v52 = vsel %vm6833_vm3, %v578_v63, %v582_v36  ;;  %v610_v54 = vrot.slane %v608_v21, 4  ;;  %v5389_v59 = vld [vmem:[%s6812_s23 + $0x60] sm:$0xe]  ;;  %v5323_v21 = vld [vmem:[%s6812_s23 + $0x74] sm:$0x1] }
  0x89   : > { %v5422_v53 = vcombine.low %v2895_v31, %v2898_v44  ;;  %v601_v48 = vor.u32 %v600_v58, %v597_v40  ;;  %v593_v55 = vsel %vm6833_vm3, %v588_v41, %v592_v5  ;;  %v5404_v25 = vrot.slane %v5388_v38, 9 }
  0x8a   : > { %v616_v56 = vrot.slane %v614_v49, 5  ;;  %v2901_v17 = vrot.slane %v7000_v3, 5  ;;  %v5120_v61 = vcombine.low %v583_v52, %v593_v55  ;;  %v611_v29 = vor.u32 %v610_v54, %v606_v46  ;;  %v5390_v3 = vld [vmem:[%s6812_s23 + $0x6c] sm:$0xe] }
  0x8b   : > { %6036 = vmatmul.mubr.msk.bf16.gmra.mrb[8].mxu0 %vm703_vm4, %v5422_v53  ;;  %v602_v1 = vrot.slane %v601_v48, 4  ;;  %v2904_v36 = vrot.slane %v7006_v22, 5  ;;  %v619_v5 = vshrl.u32 %v7232_v23, 16  ;;  %v622_v11 = vshll.u32 %v7232_v23, 16 }
  0x8c   : > { %v2902_v10 = vsel %vm7073_vm7, %v5404_v25, %v2901_v17  ;;  %v2903_v12 = vrot.slane %v2901_v17, 4  ;;  %5872 = vmatmul.mubr.msk.bf16.gmra.mrb[24].mxu1 %vm703_vm4, %v5120_v61  ;;  %v612_v50 = vrot.slane %v611_v29, 4  ;;  %v628_v20 = vshll.u32 %v7237_v19, 16 }
  0x8d   : > { %v607_v43 = vsel %vm6833_vm3, %v602_v1, %v606_v46  ;;  %v632_v22 = vshrl.u32 %v7237_v19, 16  ;;  %v621_v31 = vrot.slane %v619_v5, 4  ;;  %v624_v33 = vrot.slane %v622_v11, 5  ;;  %v7271_v1 = vld [vmem:[%s6812_s23 + $0x7c] sm:$0xf] }
  0x8e   : > { %v2905_v24 = vsel %vm7073_vm7, %v2903_v12, %v2904_v36  ;;  %v638_v8 = vshll.u32 %v254_v57, 16  ;;  %v617_v38 = vsel %vm6833_vm3, %v612_v50, %v616_v56  ;;  %v630_v40 = vrot.slane %v628_v20, 5  ;;  %v5391_v36 = vld [vmem:[%s6812_s23 + $0x78] sm:$0xe]  ;;  %v6561_v12 = vld [vmem:[%s6812_s23] sm:$0xf] }
  0x8f   : > { %v5423_v63 = vcombine.low %v2902_v10, %v2905_v24  ;;  %v634_v58 = vrot.slane %v632_v22, 4  ;;  %v5121_v41 = vcombine.low %v607_v43, %v617_v38  ;;  %v625_v44 = vor.u32 %v624_v33, %v621_v31  ;;  %v7284_v5 = vld [vmem:[%s6812_s23 + $0x4] sm:$0xf]  ;;  %v5328_v22 = vld [vmem:[%s6812_s23 + $0x88] sm:$0xf]  ;;  %v7299_v38 = vld [vmem:[%s8725_s1 + $0x54] sm:$0xff]  }
  0x90   : > { %v640_v46 = vrot.slane %v638_v8, 5  ;;  %v5405_v49 = vrot.slane %v5389_v59, 9  ;;  %v2908_v53 = vrot.slane %v7030_v0, 5  ;;  %v2911_v48 = vrot.slane %v7034_v9, 5  ;;  %v5329_v8 = vld [vmem:[%s6812_s23 + $0x8c] sm:$0x1] }
  0x91   : > { %6039 = vmatprep.mubr.msk.bf16.mxu0 %vm703_vm4, %v5423_v63  ;;  %v635_v52 = vor.u32 %v634_v58, %v630_v40  ;;  %v5406_v54 = vrot.slane %v5390_v3, 9  ;;  %5875 = vmatprep.mubr.msk.bf16.mxu1 %vm703_vm4, %v5121_v41  ;;  %v626_v55 = vrot.slane %v625_v44, 4  ;;  %v2915_v56 = vrot.slane %v5322_v35, 5  ;;  %v7288_v3 = vld [vmem:[%s6812_s23 + $0x80] sm:$0x1] }
  0x92   : > { %v2918_v25 = vrot.slane %v5323_v21, 5  ;;  %v2909_v57 = vsel %vm7073_vm7, %v5405_v49, %v2908_v53  ;;  %v2910_v61 = vrot.slane %v2908_v53, 4  ;;  %v5141_v11 = vcombine.low %v6561_v12, %v7284_v5  ;;  %v5392_v35 = vld [vmem:[%s6812_s23 + $0x84] sm:$0xe]  ;;  %v5331_v58 = vld [vmem:[%s6812_s23 + $0x94] sm:$0xf] }
  0x93   : > { %v636_v17 = vrot.slane %v635_v52, 4  ;;  %v631_v0 = vsel %vm6833_vm3, %v626_v55, %v630_v40  ;;  %v2916_v9 = vsel %vm7073_vm7, %v5406_v54, %v2915_v56  ;;  %v2917_v29 = vrot.slane %v2915_v56, 4  ;;  %v5393_v49 = vld [vmem:[%s6812_s23 + $0x90] sm:$0xe]  ;;  %v5332_v52 = vld [vmem:[%s6812_s23 + $0x98] sm:$0x1] }
  0x94   : > { %v2912_v10 = vsel %vm7073_vm7, %v2910_v61, %v2911_v48  ;;  %v5407_v31 = vrot.slane %v5391_v36, 9  ;;  %v2922_v33 = vrot.slane %v7271_v1, 5  ;;  %v2925_v63 = vrot.slane %v7288_v3, 5  ;;  %v5334_v53 = vld [vmem:[%s6812_s23 + $0xa0] sm:$0xf] }
  0x95   : > { %v641_v59 = vsel %vm6833_vm3, %v636_v17, %v640_v46  ;;  %v5424_v50 = vcombine.low %v2909_v57, %v2912_v10  ;;  %v2919_v20 = vsel %vm7073_vm7, %v2917_v29, %v2918_v25  ;;  %v3449_v40 = vsel %vm752_vm0, %v7133_v28, 0  ;;  %v5335_v25 = vld [vmem:[%s6812_s23 + $0xa4] sm:$0x1]  ;;  %v5394_v17 = vld [vmem:[%s6812_s23 + $0x9c] sm:$0xe] }
  0x96   : > { %v5122_v43 = vcombine.low %v631_v0, %v641_v59  ;;  %v5425_v24 = vcombine.low %v2916_v9, %v2919_v20  ;;  %v2923_v21 = vsel %vm7073_vm7, %v5407_v31, %v2922_v33  ;;  %v2924_v41 = vrot.slane %v2922_v33, 4  ;;  %6062 = vmatpush3.bf16.msra.mxu0 %v3449_v40  ;;  %v6563_v57 = vld [vmem:[%s6812_s23 + $0xc] sm:$0xf]  ;;  %v7323_v61 = vld [vmem:[%s6812_s23 + $0x10] sm:$0xf] }
  0x97   : > { %6040 = vmatmul.mubr.msk.bf16.gmra.mrb[12].mxu0 %vm703_vm4, %v5424_v50  ;;  %v5408_v44 = vrot.slane %v5392_v35, 9  ;;  %v2929_v46 = vrot.slane %v5328_v22, 5  ;;  %v2932_v28 = vrot.slane %v5329_v8, 5  ;;  %v2936_v56 = vrot.slane %v5331_v58, 5  ;;  %6095 = vmatprep.subr.bf16.mxu0 %v7299_v38  ;;  %v6565_v29 = vld [vmem:[%s6812_s23 + $0x18] sm:$0xf] }
  0x98   : > { %5876 = vmatmul.mubr.msk.bf16.gmra.mrb[28].mxu1 %vm703_vm4, %v5122_v43  ;;  %6043 = vmatprep.mubr.msk.bf16.mxu0 %vm703_vm4, %v5425_v24  ;;  %v2926_v48 = vsel %vm7073_vm7, %v2924_v41, %v2925_v63  ;;  %v5142_v0 = vcombine.low %v6563_v57, %v7323_v61  ;;  %v7328_v36 = vld [vmem:[%s6812_s23 + $0x1c] sm:$0xf]  ;;  %v5409_v10 = vrot.slane %v5393_v49, 9  ;;  %v2939_v43 = vrot.slane %v5332_v52, 5  ;;  %v5337_v24 = vld [vmem:[%s6812_s23 + $0xac] sm:$0xf] }
  0x99   : > { %5883 = vmatprep.mubr.msk.bf16.mxu1 %vm703_vm4, %v5141_v11  ;;  %v2930_v54 = vsel %vm7073_vm7, %v5408_v44, %v2929_v46  ;;  %v2931_v55 = vrot.slane %v2929_v46, 4  ;;  %v5426_v9 = vcombine.low %v2923_v21, %v2926_v48  ;;  %v5143_v59 = vcombine.low %v6565_v29, %v7328_v36  ;;  %v6515_v31 = vld [vmem:[%s8725_s1 + $0x20] ss:$0 sps:$4 sm:$0xff]   ;;  %v5340_v8 = vld [vmem:[%s6812_s23 + $0xb8] sm:$0xf]  ;;  %v7359_v52 = vld [vmem:[%s8725_s1 + $0x24] sm:$0xff]  }
  0x9a   : > { %v2938_v11 = vrot.slane %v2936_v56, 4  ;;  %v2943_v50 = vrot.slane %v5334_v53, 5  ;;  %v5410_v22 = vrot.slane %v5394_v17, 9  ;;  %v2946_v35 = vrot.slane %v5335_v25, 5  ;;  %v5395_v58 = vld [vmem:[%s6812_s23 + $0xa8] sm:$0xe] }
  0x9b   : > { %v2933_v12 = vsel %vm7073_vm7, %v2931_v55, %v2932_v28  ;;  %v2937_v63 = vsel %vm7073_vm7, %v5409_v10, %v2936_v56  ;;  %v2950_v21 = vrot.slane %v5337_v24, 5  ;;  %v5338_v44 = vld [vmem:[%s6812_s23 + $0xb0] sm:$0x1]  ;;  %v2957_v46 = vrot.slane %v5340_v8, 5  ;;  %v5341_v49 = vld [vmem:[%s6812_s23 + $0xbc] sm:$0x1] }
  0x9c   : > { %v5427_v20 = vcombine.low %v2930_v54, %v2933_v12  ;;  %v2945_v33 = vrot.slane %v2943_v50, 4  ;;  %v2940_v40 = vsel %vm7073_vm7, %v2938_v11, %v2939_v43  ;;  %v2944_v41 = vsel %vm7073_vm7, %v5410_v22, %v2943_v50  ;;  %v5396_v28 = vld [vmem:[%s6812_s23 + $0xb4] sm:$0xe]  ;;  %v6567_v53 = vld [vmem:[%s6812_s23 + $0x24] sm:$0xf] }
  0x9d   : > { %v7363_v48 = vld [vmem:[%s6812_s23 + $0x28] sm:$0xf]  ;;  %v5428_v55 = vcombine.low %v2937_v63, %v2940_v40  ;;  %v6569_v56 = vld [vmem:[%s6812_s23 + $0x30] sm:$0xf]  ;;  %v7368_v25 = vld [vmem:[%s6812_s23 + $0x34] sm:$0xf] }
  0x9e   : > { %v5144_v54 = vcombine.low %v6567_v53, %v7363_v48  ;;  %v5145_v17 = vcombine.low %v6569_v56, %v7368_v25  ;;  %v5411_v57 = vrot.slane %v5395_v58, 9  ;;  %v2953_v29 = vrot.slane %v5338_v44, 5  ;;  %v5344_v22 = vld [vmem:[%s6812_s23 + $0xc8] sm:$0x1]  ;;  %v6571_v8 = vld [vmem:[%s6812_s23 + $0x3c] sm:$0xf] }
  0x9f   : > { %6044 = vmatmul.mubr.msk.bf16.gmra.mrb[16].mxu0 %vm703_vm4, %v5426_v9  ;;  %v2952_v9 = vrot.slane %v2950_v21, 4  ;;  %v1491_v10 = vsel %vm752_vm0, %v6515_v31, 0  ;;  %v5412_v12 = vrot.slane %v5396_v28, 9  ;;  %v2959_v11 = vrot.slane %v2957_v46, 4  ;;  %v7390_v63 = vld [vmem:[%s6812_s23 + $0x40] sm:$0xf] }
  0xa0   : > { %5884 = vmatmul.mubr.msk.bf16.vlgmr.msra.gmra.mrb[0].mxu1 %vm703_vm4, %v5142_v0  ;;  %6047 = vmatprep.mubr.msk.bf16.mxu0 %vm703_vm4, %v5427_v20  ;;  %v2960_v43 = vrot.slane %v5341_v49, 5  ;;  %v2951_v50 = vsel %vm7073_vm7, %v5411_v57, %v2950_v21  ;;  %v5146_v40 = vcombine.low %v6571_v8, %v7390_v63  ;;  %v5147_v21 = vcombine.low %v6973_v34, %v6982_v42  ;;  %v6516_v56 = vld [vmem:[%s6812_s23 + $0x18] sm:$0xff]  }
  0xa1   : > { %5916 = vmatpush3.bf16.msra.mxu1 %v7101_v18  ;;  %5887 = vmatprep.mubr.msk.bf16.mxu1 %vm703_vm4, %v5143_v59  ;;  %v2947_v18 = vsel %vm7073_vm7, %v2945_v33, %v2946_v35  ;;  %v5343_v59 = vld [vmem:[%s6812_s23 + $0xc4] sm:$0xf]  ;;  %v2954_v20 = vsel %vm7073_vm7, %v2952_v9, %v2953_v29  ;;  %v2958_v24 = vsel %vm7073_vm7, %v5412_v12, %v2957_v46  ;;  %v5397_v33 = vld [vmem:[%s6812_s23 + $0xc0] sm:$0xe]  ;;  %v2967_v49 = vrot.slane %v5344_v22, 5 }
  0xa2   : > { %6429 = vmatprep.subr.msk.bf16.mxu1 %vm752_vm0, %v6515_v31  ;;  %v5429_v0 = vcombine.low %v2944_v41, %v2947_v18  ;;  %v2964_v35 = vrot.slane %v5343_v59, 5  ;;  %v2961_v31 = vsel %vm7073_vm7, %v2959_v11, %v2960_v43  ;;  %v5430_v58 = vcombine.low %v2951_v50, %v2954_v20  ;;  %v1219_v29 = vld [vmem:[%s6812_s23 + $0xc] sm:$0xe]  ;;  %v6534_v43 = vld [vmem:[%s8725_s1 + $0x5c] ss:$0 sps:$4 sm:$0xff]   ;;  %v6521_v20 = vld [vmem:[%s6812_s23 + $0x30] sm:$0xff]  }
  0xa3   : > { %v5431_v41 = vcombine.low %v2958_v24, %v2961_v31  ;;  %v5413_v18 = vrot.slane %v5397_v33, 9  ;;  %v2330_v42 = vshll.u32 %v7271_v1, 16  ;;  %v2334_v28 = vshrl.u32 %v7271_v1, 16  ;;  %v1220_v50 = vld [vmem:[%s6812_s23 + $0x18] sm:$0xe] }
  0xa4   : > { %v2966_v44 = vrot.slane %v2964_v35, 4  ;;  %v5148_v53 = vcombine.low %v7010_v27, %v7016_v37  ;;  %v1278_v37 = vrot.slane %v7323_v61, 5  ;;  %v2340_v9 = vshll.u32 %v7288_v3, 16  ;;  %v6519_v61 = vld [vmem:[%s6812_s23 + $0x24] sm:$0xff]   ;;  %v1223_v8 = vld [vmem:[%s6812_s23 + $0x3c] sm:$0xe] }
  0xa5   : > { %5918 = vmatpush3.bf16.msra.mxu1 %v1491_v10  ;;  %v2965_v46 = vsel %vm7073_vm7, %v5413_v18, %v2964_v35  ;;  %v7412_v57 = vrot.slane %v2334_v28, 4  ;;  %v5150_v10 = vcombine.low %v7062_v16, %v7067_v7  ;;  %v5151_v12 = vcombine.low %v7096_v62, %v7105_v4  ;;  %v1221_v4 = vld [vmem:[%s6812_s23 + $0x24] sm:$0xe] }
  0xa6   : > { %5951 = vmatprep.subr.bf16.mxu1 %v7359_v52  ;;  %v2968_v34 = vsel %vm7073_vm7, %v2966_v44, %v2967_v49  ;;  %v1271_v11 = vrot.slane %v7284_v5, 5  ;;  %v5152_v22 = vcombine.low %v7127_v26, %v7138_v51  ;;  %v5153_v16 = vcombine.low %v7155_v15, %v7161_v30  ;;  %v1222_v5 = vld [vmem:[%s6812_s23 + $0x30] sm:$0xe]  ;;  %v6582_v51 = vld [vmem:[%s6812_s23 + $0x5c] sm:$0x1] }
  0xa7   : > { %6048 = vmatmul.mubr.msk.bf16.gmra.mrb[20].mxu0 %vm703_vm4, %v5428_v55  ;;  %v5149_v55 = vcombine.low %v7040_v14, %v7047_v45  ;;  %v7424_v14 = vld [vmem:[%s6812_s23] sm:$0xe]  ;;  %v6574_v45 = vld [vmem:[%s6812_s23 + $0x14] sm:$0x1]  ;;  %v5154_v7 = vcombine.low %v7186_v2, %v7189_v13  ;;  %v1285_v62 = vrot.slane %v7328_v36, 5  ;;  %v5176_v24 = vrot.slane %v1219_v29, 9 }
  0xa8   : > { %5888 = vmatmul.mubr.msk.bf16.gmra.mrb[4].mxu1 %vm703_vm4, %v5144_v54  ;;  %6051 = vmatprep.mubr.msk.bf16.mxu0 %vm703_vm4, %v5429_v0  ;;  %v5432_v54 = vcombine.low %v2965_v46, %v2968_v34  ;;  %v7417_v0 = vld [vmem:[%s6812_s23 + $0x8] sm:$0x1]  ;;  %v1281_v1 = vrot.slane %v6574_v45, 5  ;;  %v5175_v35 = vrot.slane %v7424_v14, 9  ;;  %v1292_v31 = vrot.slane %v7363_v48, 5 }
  0xa9   : > { %5891 = vmatprep.mubr.msk.bf16.mxu1 %vm703_vm4, %v5145_v17  ;;  %v7410_v17 = vrot.slane %v2330_v42, 5  ;;  %v1274_v27 = vrot.slane %v7417_v0, 5  ;;  %v1299_v33 = vrot.slane %v7368_v25, 5  ;;  %v1280_v36 = vrot.slane %v1278_v37, 4  ;;  %v6575_v48 = vld [vmem:[%s6812_s23 + $0x4c] sm:$0xf] }
  0xaa   : > { %v1273_v18 = vrot.slane %v1271_v11, 4  ;;  %v4186_v44 = vsel %vm752_vm0, %v6534_v43, 0  ;;  %v5177_v49 = vrot.slane %v1220_v50, 9  ;;  %v1313_v46 = vrot.slane %v6575_v48, 5  ;;  %v6576_v34 = vld [vmem:[%s6812_s23 + $0x20] sm:$0x1] }
  0xab   : > { %v1287_v25 = vrot.slane %v1285_v62, 4  ;;  %v1288_v42 = vrot.slane %v6576_v34, 5  ;;  %v5178_v28 = vrot.slane %v1221_v4, 9  ;;  %v6578_v14 = vld [vmem:[%s6812_s23 + $0x38] sm:$0x1]  ;;  %v7481_v4 = vld [vmem:[%s8725_s1 + $0x60] sm:$0xff]   ;;  %v7492_v34 = vsel %vm7073_vm7, %v5175_v35, %v1271_v11 }
  0xac   : > { %v1302_v45 = vrot.slane %v6578_v14, 5  ;;  %v1225_v29 = vld [vmem:[%s6812_s23 + $0x54] sm:$0xe]  ;;  %v6580_v48 = vld [vmem:[%s6812_s23 + $0x50] sm:$0x1] }
  0xad   : > { %v7510_v11 = vsel %vm7073_vm7, %v5178_v28, %v1292_v31  ;;  %v1226_v35 = vld [vmem:[%s6812_s23 + $0x60] sm:$0xe]  ;;  %v6581_v28 = vld [vmem:[%s6812_s23 + $0x58] sm:$0xf] }
  0xaf   : > { %6052 = vmatmul.mubr.msk.bf16.gmra.mrb[24].mxu0 %vm703_vm4, %v5430_v58  ;;  %v6585_v58 = vld [vmem:[%s6812_s23 + $0x70] sm:$0xf] }
  0xb0   : > { %5892 = vmatmul.mubr.msk.bf16.gmra.mrb[8].mxu1 %vm703_vm4, %v5146_v40  ;;  %6055 = vmatprep.mubr.msk.bf16.mxu0 %vm703_vm4, %v5431_v41  ;;  %v5155_v40 = vcombine.low %v7204_v47, %v7217_v60  ;;  %v1224_v41 = vld [vmem:[%s6812_s23 + $0x48] sm:$0xe]  ;;  %v5528_v47 = vld [vmem:[%s6812_s23 + $0x38] sm:$0x1] }
  0xb1   : > { %5895 = vmatprep.mubr.msk.bf16.mxu1 %vm703_vm4, %v5147_v21  ;;  %v1306_v21 = vrot.slane %v7390_v63, 5 }
  0xb7   : > { %6056 = vmatmul.mubr.msk.bf16.gmra.mrb[28].mxu0 %vm703_vm4, %v5432_v54  ;;  %v1294_v54 = vrot.slane %v1292_v31, 4 }
  0xb8   : > { %5896 = vmatmul.mubr.msk.bf16.gmra.mrb[12].mxu1 %vm703_vm4, %v5148_v53  ;;  %6063 = vmatprep.mubr.msk.bf16.mxu0 %vm703_vm4, %v6516_v56  ;;  %v6577_v53 = vld [vmem:[%s6812_s23 + $0x2c] sm:$0x1]  ;;  %v1301_v56 = vrot.slane %v1299_v33, 4 }
  0xb9   : > { %5899 = vmatprep.mubr.msk.bf16.mxu1 %vm703_vm4, %v5149_v55  ;;  %v1295_v63 = vrot.slane %v6577_v53, 5  ;;  %v5179_v55 = vrot.slane %v1222_v5, 9  ;;  %v7485_v5 = vsel %vm7073_vm7, %v1280_v36, %v1281_v1  ;;  %v7498_v53 = vsel %vm7073_vm7, %v1273_v18, %v1274_v27 }
  0xba   : > { %v7502_v1 = vsel %vm7073_vm7, %v5177_v49, %v1285_v62  ;;  %v7506_v36 = vsel %vm7073_vm7, %v1287_v25, %v1288_v42  ;;  %v7522_v62 = vsel %vm7073_vm7, %v1301_v56, %v1302_v45  ;;  %v5521_v49 = vld [vmem:[%s6812_s23 + $0x1c] sm:$0xf] }
  0xbb   : > { %v7514_v0 = vsel %vm7073_vm7, %v1294_v54, %v1295_v63  ;;  %v7518_v27 = vsel %vm7073_vm7, %v5179_v55, %v1299_v33  ;;  %v5182_v33 = vrot.slane %v1225_v29, 9  ;;  %v1320_v63 = vrot.slane %v6581_v28, 5  ;;  %v5523_v54 = vld [vmem:[%s6812_s23 + $0x24] sm:$0xf]  ;;  %v5526_v29 = vld [vmem:[%s6812_s23 + $0x30] sm:$0xf] }
  0xbc   : > { %v7552_v55 = vrot.slane %v2340_v9, 5  ;;  %v5524_v9 = vld [vmem:[%s6812_s23 + $0x28] sm:$0xf]  ;;  %v1227_v28 = vld [vmem:[%s6812_s23 + $0x6c] sm:$0xe]  ;;  %v3720_v59 = vshll.u32 %v5523_v54, 16 }
  0xbd   : > { %v7580_v30 = vsel %vm7073_vm7, %v5182_v33, %v1320_v63  ;;  %v3726_v15 = vshll.u32 %v5524_v9, 16  ;;  %v3730_v26 = vshrl.u32 %v5524_v9, 16  ;;  %v3744_v56 = vshll.u32 %v5526_v29, 16  ;;  %v5525_v9 = vld [vmem:[%s6812_s23 + $0x2c] sm:$0x1] }
  0xbe   : > { %8752 = vst [vmem:[#allocation7_spill] sm:$0xff] %v7552_v55  ;;  %v5184_v13 = vrot.slane %v1227_v28, 9 }
  0xbf   : > { %6064 = vmatmul.mubr.msk.bf16.vlgmr.msra.gmra.mrb[0].mxu0 %vm703_vm4, %v6519_v61  ;;  %v1308_v61 = vrot.slane %v1306_v21, 4 }
  0xc0   : > { %5900 = vmatmul.mubr.msk.bf16.gmra.mrb[16].mxu1 %vm703_vm4, %v5150_v10  ;;  %6096 = vmatpush3.bf16.msra.mxu0 %v7299_v38  ;;  %v7475_v10 = vsel %vm7073_vm7, %v5176_v24, %v1278_v37  ;;  %v5180_v38 = vrot.slane %v1223_v8, 9  ;;  %v1316_v37 = vrot.slane %v6580_v48, 5  ;;  %v6523_v24 = vld [vmem:[%s6812_s23 + $0x3c] sm:$0xff]   ;;  %v6525_v8 = vld [vmem:[%s6812_s23 + $0x48] sm:$0xff]   ;;  %v1322_v48 = vrot.slane %v1320_v63, 4 }
  0xc1   : > { %5903 = vmatprep.mubr.msk.bf16.mxu1 %vm703_vm4, %v5151_v12  ;;  %6067 = vmatprep.mubr.msk.bf16.mxu0 %vm703_vm4, %v6521_v20  ;;  %v6579_v12 = vld [vmem:[%s6812_s23 + $0x44] sm:$0x1]  ;;  %v5181_v20 = vrot.slane %v1224_v41, 9  ;;  %v5520_v41 = vld [vmem:[%s6812_s23 + $0x18] sm:$0xf] }
  0xc2   : > { %6435 = vmatprep.subr.msk.bf16.mxu0 %vm752_vm0, %v6534_v43  ;;  %v1309_v50 = vrot.slane %v6579_v12, 5  ;;  %v1315_v43 = vrot.slane %v1313_v46, 4  ;;  %v7530_v31 = vsel %vm7073_vm7, %v5180_v38, %v1306_v21  ;;  %v3693_v14 = vshrl.u32 %v5520_v41, 16  ;;  %v6527_v38 = vld [vmem:[%s6812_s23 + $0x54] sm:$0xff]  }
  0xc3   : > { %v7542_v42 = vsel %vm7073_vm7, %v5181_v20, %v1313_v46  ;;  %v3696_v45 = vshll.u32 %v5520_v41, 16  ;;  %v5527_v20 = vld [vmem:[%s6812_s23 + $0x34] sm:$0xf]  ;;  %v3706_v41 = vshrl.u32 %v5521_v49, 16 }
  0xc4   : > { %6098 = vmatpush3.bf16.msra.mxu0 %v4186_v44  ;;  %v7534_v44 = vsel %vm7073_vm7, %v1308_v61, %v1309_v50  ;;  %v7546_v21 = vsel %vm7073_vm7, %v1315_v43, %v1316_v37  ;;  %v6583_v61 = vld [vmem:[%s6812_s23 + $0x64] sm:$0xf]  ;;  %v5522_v50 = vld [vmem:[%s6812_s23 + $0x20] sm:$0x1]  ;;  %v6584_v37 = vld [vmem:[%s6812_s23 + $0x68] sm:$0x1] }
  0xc5   : > { %6131 = vmatprep.subr.bf16.mxu0 %v7481_v4  ;;  %v1327_v12 = vrot.slane %v6583_v61, 5  ;;  %v6529_v43 = vld [vmem:[%s6812_s23 + $0x60] sm:$0xff]   ;;  %v3695_v33 = vrot.slane %v3693_v14, 4  ;;  %v3698_v3 = vrot.slane %v3696_v45, 5  ;;  %v3750_v46 = vshll.u32 %v5527_v20, 16 }
  0xc6   : > { %v3712_v25 = vshll.u32 %v5522_v50, 16  ;;  %v3722_v45 = vrot.slane %v3720_v59, 5  ;;  %v6531_v50 = vld [vmem:[%s6812_s23 + $0x6c] sm:$0xff]  }
  0xc7   : > { %6068 = vmatmul.mubr.msk.bf16.gmra.mrb[4].mxu0 %vm703_vm4, %v6523_v24  ;;  %v1330_v24 = vrot.slane %v6584_v37, 5  ;;  %v1329_v63 = vrot.slane %v1327_v12, 4  ;;  %v3754_v37 = vshrl.u32 %v5527_v20, 16  ;;  %v3699_v2 = vor.u32 %v3698_v3, %v3695_v33 }
  0xc8   : > { %5904 = vmatmul.mubr.msk.bf16.gmra.mrb[20].mxu1 %vm703_vm4, %v5152_v22  ;;  %6071 = vmatprep.mubr.msk.bf16.mxu0 %vm703_vm4, %v6525_v8  ;;  %v1323_v22 = vrot.slane %v6582_v51, 5  ;;  %v3702_v8 = vshll.u32 %v5521_v49, 16  ;;  %v3717_v51 = vshrl.u32 %v5523_v54, 16  ;;  %v3708_v49 = vrot.slane %v3706_v41, 4  ;;  %v6533_v41 = vld [vmem:[%s6812_s23 + $0x78] sm:$0xff]  }
  0xc9   : > { %5907 = vmatprep.mubr.msk.bf16.mxu1 %vm703_vm4, %v5153_v16  ;;  %v5183_v16 = vrot.slane %v1226_v35, 9  ;;  %v3741_v35 = vshrl.u32 %v5526_v29, 16  ;;  %v1334_v54 = vrot.slane %v6585_v58, 5  ;;  %v7601_v29 = vrot.slane %v3726_v15, 5  ;;  %v6586_v15 = vld [vmem:[%s6812_s23 + $0x74] sm:$0x1] }
  0xca   : > { %v7592_v18 = vrot.slane %v3702_v8, 5  ;;  %v3719_v14 = vrot.slane %v3717_v51, 4  ;;  %v3746_v58 = vrot.slane %v3744_v56, 5  ;;  %v7610_v59 = vsel %vm7073_vm7, %v1322_v48, %v1323_v22  ;;  %v5529_v22 = vld [vmem:[%s6812_s23 + $0x3c] sm:$0xf] }
  0xcb   : > { %v7590_v61 = vsel %vm7073_vm7, %v5183_v16, %v1327_v12  ;;  %v3732_v16 = vrot.slane %v3730_v26, 4  ;;  %v7614_v26 = vsel %vm7073_vm7, %v1329_v63, %v1330_v24  ;;  %v7617_v60 = vrot.slane %v3750_v46, 5  ;;  %v1228_v24 = vld [vmem:[%s6812_s23 + $0x78] sm:$0xe]  ;;  %v6587_v8 = vld [vmem:[%s6812_s23 + $0x7c] sm:$0xf] }
  0xcc   : > { %v3709_v3 = vor.u32 %v3708_v49, %v7592_v18  ;;  %v1337_v56 = vrot.slane %v6586_v15, 5  ;;  %v3736_v12 = vshll.u32 %v5525_v9, 16  ;;  %v7623_v20 = vrot.slane %v3712_v25, 5  ;;  %v1229_v25 = vld [vmem:[%s6812_s23 + $0x84] sm:$0xe] }
  0xcd   : > { %v3733_v48 = vor.u32 %v3732_v16, %v7601_v29  ;;  %v1341_v46 = vrot.slane %v6587_v8, 5  ;;  %v7629_v28 = vrot.slane %v3699_v2, 4  ;;  %v7633_v51 = vsel %vm7073_vm7, %v5184_v13, %v1334_v54  ;;  %v6535_v8 = vld [vmem:[%s6812_s23 + $0x84] sm:$0xff]  }
  0xce   : > { %v3765_v9 = vshrl.u32 %v5529_v22, 16  ;;  %v3738_v2 = vrot.slane %v3736_v12, 5  ;;  %v5185_v15 = vrot.slane %v1228_v24, 9 }
  0xcf   : > { %6072 = vmatmul.mubr.msk.bf16.gmra.mrb[8].mxu0 %vm703_vm4, %v6527_v38  ;;  %v1336_v38 = vrot.slane %v1334_v54, 4  ;;  %v8753_v54 = vcombine.low %v7232_v23, %v7237_v19  ;;  %v5186_v19 = vrot.slane %v1229_v25, 9 }
  0xd0   : > { %5908 = vmatmul.mubr.msk.bf16.gmra.mrb[24].mxu1 %vm703_vm4, %v5154_v7  ;;  %6075 = vmatprep.mubr.msk.bf16.mxu0 %vm703_vm4, %v6529_v43  ;;  %v3743_v7 = vrot.slane %v3741_v35, 4  ;;  %v3723_v43 = vor.u32 %v3722_v45, %v3719_v14  ;;  %v3760_v35 = vshll.u32 %v5528_v47, 16  ;;  %v3768_v14 = vshll.u32 %v5529_v22, 16  ;;  %v6589_v47 = vld [vmem:[%s6812_s23 + $0x80] sm:$0x1] }
  0xd1   : > { %5911 = vmatprep.mubr.msk.bf16.mxu1 %vm703_vm4, %v5155_v40  ;;  %v3756_v40 = vrot.slane %v3754_v37, 4  ;;  %v6588_v37 = vld [vmem:[%s6812_s23 + $0x88] sm:$0xf]  ;;  %v3710_v45 = vrot.slane %v3709_v3, 4  ;;  %v7640_v16 = vsel %vm7073_vm7, %v1336_v38, %v1337_v56  ;;  %v8754_v3 = vcombine.low %v7492_v34, %v7498_v53  ;;  %v6590_v56 = vld [vmem:[%s6812_s23 + $0x8c] sm:$0x1] }
  0xd2   : > { %v3747_v33 = vor.u32 %v3746_v58, %v3743_v7  ;;  %v1348_v49 = vrot.slane %v6588_v37, 5  ;;  %v3724_v13 = vrot.slane %v3723_v43, 4  ;;  %v3734_v7 = vrot.slane %v3733_v48, 4  ;;  %v7655_v43 = vld [vmem:[%s6812_s23 + $0x40] sm:$0xf] }
  0xd3   : > { %v3757_v63 = vor.u32 %v3756_v40, %v7617_v60  ;;  %v1343_v58 = vrot.slane %v1341_v46, 4  ;;  %v1344_v40 = vrot.slane %v6589_v47, 5  ;;  %v3762_v23 = vrot.slane %v3760_v35, 5  ;;  %8755 = vst [vmem:[#allocation8_spill] sm:$0xff] %v7655_v43  ;;  %v6542_v35 = vld [vmem:[%s8725_s1 + $0x2c] ss:$0 sps:$4 sm:$0xff]  }
  0xd4   : > { %v3748_v38 = vrot.slane %v3747_v33, 4  ;;  %v1351_v12 = vrot.slane %v6590_v56, 5  ;;  %v3767_v48 = vrot.slane %v3765_v9, 4  ;;  %v3770_v24 = vrot.slane %v3768_v14, 5  ;;  %v7687_v37 = vld [vmem:[%s6812_s23 + $0x4c] sm:$0xf] }
  0xd5   : > { %v3758_v22 = vrot.slane %v3757_v63, 4  ;;  %v3715_v33 = vsel %vm6833_vm3, %v3710_v45, %v7623_v20  ;;  %v3729_v25 = vsel %vm6833_vm3, %v3724_v13, %v7601_v29  ;;  %v7683_v20 = vsel %vm7073_vm7, %v1343_v58, %v1344_v40  ;;  %8756 = vst [vmem:[#allocation9_spill] sm:$0xff] %v7687_v37  ;;  %v7708_v13 = vld [vmem:[%s6812_s23 + $0x44] sm:$0x1]  ;;  %v6594_v56 = vld [vmem:[%s6812_s23 + $0xa0] sm:$0xf] }
  0xd6   : > { %v3739_v9 = vsel %vm6833_vm3, %v3734_v7, %v3738_v2  ;;  %v7693_v14 = vsel %vm7073_vm7, %v5186_v19, %v1348_v49  ;;  %v3774_v29 = vshll.u32 %v7655_v43, 16  ;;  %v3778_v45 = vshrl.u32 %v7655_v43, 16  ;;  %8757 = vst [vmem:[#allocation10_spill] sm:$0xff] %v7708_v13  ;;  %v1230_v7 = vld [vmem:[%s6812_s23 + $0x90] sm:$0xe] }
  0xd7   : > { %6076 = vmatmul.mubr.msk.bf16.gmra.mrb[12].mxu0 %vm703_vm4, %v6531_v50  ;;  %v1350_v50 = vrot.slane %v1348_v49, 4  ;;  %v3771_v49 = vor.u32 %v3770_v24, %v3767_v48  ;;  %v3798_v40 = vshll.u32 %v7687_v37, 16  ;;  %v7721_v19 = vcombine.low %v3729_v25, %v3739_v9  ;;  %v7735_v24 = vld [vmem:[%s6812_s23 + $0x58] sm:$0xf]  ;;  %v7787_v53 = vld [vmem:[%s6812_s23 + $0x5c] sm:$0x1] }
  0xd8   : > { %5912 = vmatmul.mubr.msk.bf16.gmra.mrb[28].mxu1 %vm703_vm4, %v8753_v54  ;;  %6079 = vmatprep.mubr.msk.bf16.mxu0 %vm703_vm4, %v6533_v41  ;;  %v3705_v41 = vsel %vm6833_vm3, %v7629_v28, %v7592_v18  ;;  %v7679_v18 = vsel %vm7073_vm7, %v5185_v15, %v1341_v46  ;;  %v5532_v28 = vld [vmem:[%s6812_s23 + $0x48] sm:$0xf]  ;;  %v6536_v46 = vld [vmem:[%s6812_s23 + $0x90] sm:$0xff]   ;;  %v3753_v15 = vsel %vm6833_vm3, %v3748_v38, %v7617_v60  ;;  %v5187_v48 = vrot.slane %v1230_v7, 9 }
  0xd9   : > { %5919 = vmatprep.mubr.msk.bf16.mxu1 %vm703_vm4, %v8754_v3  ;;  %v3763_v54 = vsel %vm6833_vm3, %v3758_v22, %v3762_v23  ;;  %v7705_v2 = vsel %vm7073_vm7, %v1350_v50, %v1351_v12  ;;  %v3789_v58 = vshrl.u32 %v5532_v28, 16  ;;  %v3792_v47 = vshll.u32 %v5532_v28, 16  ;;  %v5535_v12 = vld [vmem:[%s6812_s23 + $0x54] sm:$0xf]  ;;  %v6538_v7 = vld [vmem:[%s6812_s23 + $0xa8] sm:$0xff]  }
  0xda   : > { %v3802_v3 = vshrl.u32 %v7687_v37, 16  ;;  %v8758_v60 = vcombine.low %v7475_v10, %v7485_v5  ;;  %v7718_v38 = vcombine.low %v3705_v41, %v3715_v33  ;;  %v1861_v23 = vsel %vm752_vm0, %v6542_v35, 0  ;;  %v7747_v33 = vld [vmem:[%s6812_s23 + $0x50] sm:$0x1] }
  0xdb   : > { %v8759_v10 = vcombine.low %v7502_v1, %v7506_v36  ;;  %v7731_v5 = vrot.slane %v3774_v29, 5  ;;  %v3780_v22 = vrot.slane %v3778_v45, 4  ;;  %v3784_v50 = vshll.u32 %v7708_v13, 16  ;;  %8760 = vst [vmem:[#allocation11_spill] sm:$0xff] %v7747_v33  ;;  %v6537_v45 = vld [vmem:[%s6812_s23 + $0x9c] sm:$0xff]  }
  0xdc   : > { %v7743_v36 = vrot.slane %v3771_v49, 4  ;;  %v3791_v25 = vrot.slane %v3789_v58, 4  ;;  %v3794_v28 = vrot.slane %v3792_v47, 5  ;;  %v7749_v9 = vrot.slane %v3798_v40, 5  ;;  %v6592_v40 = vld [vmem:[%s6812_s23 + $0x98] sm:$0x1] }
  0xdd   : > { %v3804_v29 = vrot.slane %v3802_v3, 4  ;;  %v3826_v49 = vshrl.u32 %v7735_v24, 16  ;;  %v7757_v58 = vrot.slane %v3784_v50, 5  ;;  %v1358_v3 = vrot.slane %v6592_v40, 5  ;;  %v1231_v40 = vld [vmem:[%s6812_s23 + $0x9c] sm:$0xe] }
  0xde   : > { %v8762_v63 = vcombine.low %v7510_v11, %v7514_v0  ;;  %v1232_v0 = vld [vmem:[%s6812_s23 + $0xa8] sm:$0xe]  ;;  %v6596_v13 = vld [vmem:[%s6812_s23 + $0xa4] sm:$0x1]  ;;  %v3832_v43 = vshll.u32 %v7787_v53, 16 }
  0xdf   : > { %6080 = vmatmul.mubr.msk.bf16.gmra.mrb[16].mxu0 %vm703_vm4, %v6535_v8  ;;  %v6591_v8 = vld [vmem:[%s6812_s23 + $0x94] sm:$0xf]  ;;  %v5189_v6 = vrot.slane %v1232_v0, 9 }
  0xe0   : > { %5920 = vmatmul.mubr.msk.bf16.vlgmr.msra.gmra.mrb[0].mxu1 %vm703_vm4, %v8758_v60  ;;  %6083 = vmatprep.mubr.msk.bf16.mxu0 %vm703_vm4, %v6536_v46  ;;  %v1355_v41 = vrot.slane %v6591_v8, 5  ;;  %v3813_v46 = vshrl.u32 %v5535_v12, 16  ;;  %v3781_v60 = vor.u32 %v3780_v22, %v7731_v5  ;;  %v7766_v8 = vld [vmem:[%s6812_s23 + $0x64] sm:$0xf]  ;;  %v7771_v22 = vld [vmem:[%s8725_s1 + $0x30] sm:$0xff]  }
  0xe1   : > { %5952 = vmatpush3.bf16.msra.mxu1 %v7359_v52  ;;  %5923 = vmatprep.mubr.msk.bf16.mxu1 %vm703_vm4, %v8759_v10  ;;  %v7739_v52 = vcombine.low %v3753_v15, %v3763_v54  ;;  %v3816_v15 = vshll.u32 %v5535_v12, 16  ;;  %v3822_v54 = vshll.u32 %v7735_v24, 16  ;;  %v3808_v10 = vshll.u32 %v7747_v33, 16  ;;  %8761 = vst [vmem:[#allocation12_spill] sm:$0xff] %v7771_v22  ;;  %v1233_v0 = vld [vmem:[%s6812_s23 + $0xb4] sm:$0xe] }
  0xe2   : > { %6430 = vmatprep.subr.msk.bf16.mxu1 %vm752_vm0, %v6542_v35  ;;  %v5538_v35 = vld [vmem:[%s6812_s23 + $0x60] sm:$0xf]  ;;  %v7761_v47 = vsel %vm7073_vm7, %v5187_v48, %v1355_v41  ;;  %v1357_v12 = vrot.slane %v1355_v41, 4  ;;  %v3795_v48 = vor.u32 %v3794_v28, %v3791_v25  ;;  %v3805_v41 = vor.u32 %v3804_v29, %v7749_v9 }
  0xe3   : > { %v3837_v1 = vshrl.u32 %v5538_v35, 16  ;;  %v3815_v34 = vrot.slane %v3813_v46, 4  ;;  %v3818_v33 = vrot.slane %v3816_v15, 5  ;;  %v7789_v50 = vrot.slane %v3822_v54, 5 }
  0xe4   : > { %v3828_v25 = vrot.slane %v3826_v49, 4  ;;  %v8763_v28 = vcombine.low %v7518_v27, %v7522_v62  ;;  %v3782_v11 = vrot.slane %v3781_v60, 4  ;;  %v3846_v29 = vshll.u32 %v7766_v8, 16  ;;  %v6539_v60 = vld [vmem:[%s6812_s23 + $0xb4] sm:$0xff]  }
  0xe5   : > { %5954 = vmatpush3.bf16.msra.mxu1 %v1861_v23  ;;  %v3840_v23 = vshll.u32 %v5538_v35, 16  ;;  %v1362_v35 = vrot.slane %v6594_v56, 5  ;;  %v3810_v46 = vrot.slane %v3808_v10, 5  ;;  %v5188_v15 = vrot.slane %v1231_v40, 9  ;;  %v6540_v10 = vld [vmem:[%s6812_s23 + $0xc0] sm:$0xff]  }
  0xe6   : > { %6167 = vmatprep.subr.bf16.mxu1 %v7771_v22  ;;  %v3839_v54 = vrot.slane %v3837_v1, 4  ;;  %v3796_v62 = vrot.slane %v3795_v48, 4  ;;  %v3806_v49 = vrot.slane %v3805_v41, 4  ;;  %v3819_v37 = vor.u32 %v3818_v33, %v3815_v34  ;;  %v6597_v1 = vld [vmem:[%s6812_s23 + $0xb0] sm:$0x1] }
  0xe7   : > { %6084 = vmatmul.mubr.msk.bf16.gmra.mrb[20].mxu0 %vm703_vm4, %v6537_v45  ;;  %v3850_v45 = vshrl.u32 %v7766_v8, 16  ;;  %v3842_v27 = vrot.slane %v3840_v23, 5  ;;  %v1372_v23 = vrot.slane %v6597_v1, 5  ;;  %v7806_v48 = vrot.slane %v3846_v29, 5  ;;  %v7820_v40 = vld [vmem:[%s6812_s23 + $0x68] sm:$0x1] }
  0xe8   : > { %5924 = vmatmul.mubr.msk.bf16.gmra.mrb[4].mxu1 %vm703_vm4, %v8762_v63  ;;  %6087 = vmatprep.mubr.msk.bf16.mxu0 %vm703_vm4, %v6538_v7  ;;  %v6595_v63 = vld [vmem:[%s6812_s23 + $0xac] sm:$0xf]  ;;  %v1365_v7 = vrot.slane %v6596_v13, 5  ;;  %v3787_v13 = vsel %vm6833_vm3, %v3782_v11, %v7757_v58  ;;  %v7813_v34 = vsel %vm7073_vm7, %v1357_v12, %v1358_v3  ;;  %v7817_v33 = vsel %vm7073_vm7, %v5188_v15, %v1362_v35  ;;  %v6598_v3 = vld [vmem:[%s6812_s23 + $0xb8] sm:$0xf] }
  0xe9   : > { %5927 = vmatprep.mubr.msk.bf16.mxu1 %vm703_vm4, %v8763_v28  ;;  %v1369_v56 = vrot.slane %v6595_v63, 5  ;;  %v1364_v28 = vrot.slane %v1362_v35, 4  ;;  %v3829_v63 = vor.u32 %v3828_v25, %v7789_v50  ;;  %v3852_v41 = vrot.slane %v3850_v45, 4  ;;  %8764 = vst [vmem:[#allocation13_spill] sm:$0xff] %v7820_v40  ;;  %v5541_v35 = vld [vmem:[%s6812_s23 + $0x6c] sm:$0xf] }
  0xea   : > { %v3843_v25 = vor.u32 %v3842_v27, %v3839_v54  ;;  %v3801_v29 = vsel %vm6833_vm3, %v3796_v62, %v7749_v9  ;;  %v3811_v45 = vsel %vm6833_vm3, %v3806_v49, %v3810_v46  ;;  %v1376_v12 = vrot.slane %v6598_v3, 5  ;;  %v6541_v49 = vld [vmem:[%s6812_s23 + $0xcc] sm:$0xff]   ;;  %v7879_v1 = vld [vmem:[%s6812_s23 + $0x74] sm:$0x1] }
  0xeb   : > { %v1371_v22 = vrot.slane %v1369_v56, 4  ;;  %v7830_v58 = vsel %vm7073_vm7, %v1364_v28, %v1365_v7  ;;  %v8765_v11 = vcombine.low %v7530_v31, %v7534_v44  ;;  %v7839_v9 = vrot.slane %v3819_v37, 4  ;;  %8771 = vst [vmem:[#allocation17_spill] sm:$0xff] %v7879_v1 }
  0xec   : > { %v7841_v15 = vrot.slane %v3829_v63, 4  ;;  %v7843_v46 = vrot.slane %v3832_v43, 5  ;;  %v7847_v54 = vsel %vm7073_vm7, %v5189_v6, %v1369_v56  ;;  %v8767_v27 = vcombine.low %v7542_v42, %v7546_v21  ;;  %v7865_v21 = vld [vmem:[%s6812_s23 + $0x70] sm:$0xf]  ;;  %v6599_v63 = vld [vmem:[%s6812_s23 + $0xbc] sm:$0x1] }
  0xed   : > { %8766 = vst [vmem:[#allocation14_spill] sm:$0xff] %v7847_v54  ;;  %v7856_v31 = vsel %vm7073_vm7, %v1371_v22, %v1372_v23  ;;  %v3853_v44 = vor.u32 %v3852_v41, %v7806_v48  ;;  %v3856_v43 = vshll.u32 %v7820_v40, 16  ;;  %v5190_v37 = vrot.slane %v1233_v0, 9  ;;  %8769 = vst [vmem:[#allocation16_spill] sm:$0xff] %v7865_v21  ;;  %v5547_v0 = vld [vmem:[%s6812_s23 + $0x84] sm:$0xf] }
  0xee   : > { %8768 = vst [vmem:[#allocation15_spill] sm:$0xff] %v7856_v31  ;;  %v7862_v42 = vrot.slane %v3843_v25, 4  ;;  %v3861_v56 = vshrl.u32 %v5541_v35, 16  ;;  %v3864_v62 = vshll.u32 %v5541_v35, 16  ;;  %v8770_v22 = vsel %vm6833_vm3, %v7743_v36, %v7731_v5  ;;  %v7895_v25 = vld [vmem:[%s6812_s23 + $0x7c] sm:$0xf] }
  0xef   : > { %6088 = vmatmul.mubr.msk.bf16.gmra.mrb[24].mxu0 %vm703_vm4, %v6539_v60  ;;  %v7873_v28 = vcombine.low %v8770_v22, %v3787_v13  ;;  %v1378_v60 = vrot.slane %v1376_v12, 4  ;;  %v7881_v23 = vcombine.low %v3801_v29, %v3811_v45  ;;  %v5544_v13 = vld [vmem:[%s6812_s23 + $0x78] sm:$0xf]  ;;  %8772 = vst [vmem:[#allocation18_spill] sm:$0xff] %v7895_v25  ;;  %v7898_v29 = vrot.slane %v3853_v44, 4 }
  0xf0   : > { %5928 = vmatmul.mubr.msk.bf16.gmra.mrb[8].mxu1 %vm703_vm4, %v8765_v11  ;;  %6091 = vmatprep.mubr.msk.bf16.mxu0 %vm703_vm4, %v6540_v10  ;;  %v1379_v10 = vrot.slane %v6599_v63, 5  ;;  %v7900_v45 = vrot.slane %v3856_v43, 5  ;;  %v7904_v3 = vsel %vm7073_vm7, %v5190_v37, %v1376_v12  ;;  %v3870_v35 = vshll.u32 %v7865_v21, 16  ;;  %v7908_v11 = vld [vmem:[%s6812_s23 + $0x88] sm:$0xf] }
  0xf1   : > { %5931 = vmatprep.mubr.msk.bf16.mxu1 %vm703_vm4, %v8767_v27  ;;  %8773 = vst [vmem:[#allocation19_spill] sm:$0xff] %v7908_v11  ;;  %v3863_v22 = vrot.slane %v3861_v56, 4  ;;  %v3866_v63 = vrot.slane %v3864_v62, 5  ;;  %v3874_v44 = vshrl.u32 %v7865_v21, 16  ;;  %v5550_v36 = vld [vmem:[%s6812_s23 + $0x90] sm:$0xf]  ;;  %v8775_v5 = vcombine.low %v7580_v30, %v7610_v59 }
  0xf2   : > { %v7918_v43 = vsel %vm7073_vm7, %v1378_v60, %v1379_v10  ;;  %v3880_v12 = vshll.u32 %v7879_v1, 16  ;;  %v3885_v37 = vshrl.u32 %v5544_v13, 16  ;;  %v3888_v7 = vshll.u32 %v5544_v13, 16  ;;  %v7922_v41 = vld [vmem:[%s6812_s23 + $0x94] sm:$0xf] }
  0xf3   : > { %8774 = vst [vmem:[#allocation20_spill] sm:$0xff] %v7922_v41  ;;  %v3894_v56 = vshll.u32 %v7895_v25, 16  ;;  %v3898_v62 = vshrl.u32 %v7895_v25, 16  ;;  %v3909_v60 = vshrl.u32 %v5547_v0, 16  ;;  %v3912_v10 = vshll.u32 %v5547_v0, 16 }
  0xf4   : > { %v8776_v27 = vcombine.low %v7590_v61, %v7614_v26  ;;  %v3918_v30 = vshll.u32 %v7908_v11, 16  ;;  %v3922_v59 = vshrl.u32 %v7908_v11, 16  ;;  %v3867_v13 = vor.u32 %v3866_v63, %v3863_v22  ;;  %v7942_v0 = vld [vmem:[%s6812_s23 + $0x80] sm:$0x1]  ;;  %v5553_v1 = vld [vmem:[%s6812_s23 + $0x9c] sm:$0xf] }
  0xf5   : > { %v7939_v6 = vrot.slane %v3870_v35, 5  ;;  %v3942_v61 = vshll.u32 %v7922_v41, 16  ;;  %v3946_v26 = vshrl.u32 %v7922_v41, 16  ;;  %v7946_v55 = vrot.slane %v3880_v12, 5  ;;  %v6545_v35 = vld [vmem:[%s8725_s1 + $0x68] ss:$0 sps:$4 sm:$0xff]  }
  0xf6   : > { %v3890_v25 = vrot.slane %v3888_v7, 5  ;;  %v7949_v11 = vrot.slane %v3894_v56, 5  ;;  %v3911_v22 = vrot.slane %v3909_v60, 4  ;;  %v3914_v63 = vrot.slane %v3912_v10, 5  ;;  %v7955_v21 = vld [vmem:[%s6812_s23 + $0x8c] sm:$0x1] }
  0xf7   : > { %6092 = vmatmul.mubr.msk.bf16.gmra.mrb[28].mxu0 %vm703_vm4, %v6541_v49  ;;  %v3933_v49 = vshrl.u32 %v5550_v36, 16  ;;  %v7957_v41 = vrot.slane %v3918_v30, 5  ;;  %v3948_v7 = vrot.slane %v3946_v26, 4  ;;  %v7962_v56 = vld [vmem:[%s6812_s23 + $0xa0] sm:$0xf]  ;;  %v3960_v39 = vshll.u32 %v5553_v1, 16 }
  0xf8   : > { %5932 = vmatmul.mubr.msk.bf16.gmra.mrb[12].mxu1 %vm703_vm4, %v8775_v5  ;;  %6099 = vmatprep.mubr.msk.bf16.mxu0 %vm703_vm4, %v7718_v38  ;;  %v3936_v5 = vshll.u32 %v5550_v36, 16  ;;  %v3887_v38 = vrot.slane %v3885_v37, 4  ;;  %v3900_v36 = vrot.slane %v3898_v62, 4  ;;  %v7959_v37 = vrot.slane %v3942_v61, 5  ;;  %v7969_v30 = vld [vmem:[%s6812_s23 + $0x98] sm:$0x1] }
  0xf9   : > { %5935 = vmatprep.mubr.msk.bf16.mxu1 %vm703_vm4, %v8776_v27  ;;  %v3876_v27 = vrot.slane %v3874_v44, 4  ;;  %v3924_v44 = vrot.slane %v3922_v59, 4  ;;  %v3935_v12 = vrot.slane %v3933_v49, 4  ;;  %v3957_v62 = vshrl.u32 %v5553_v1, 16 }
  0xfa   : > { %v3938_v40 = vrot.slane %v3936_v5, 5  ;;  %v7964_v31 = vrot.slane %v3867_v13, 4  ;;  %v3891_v10 = vor.u32 %v3890_v25, %v3887_v38  ;;  %v3904_v54 = vshll.u32 %v7942_v0, 16  ;;  %v5556_v25 = vld [vmem:[%s6812_s23 + $0xa8] sm:$0xf] }
  0xfb   : > { %v3877_v60 = vor.u32 %v3876_v27, %v7939_v6  ;;  %v8777_v59 = vcombine.low %v7633_v51, %v7640_v16  ;;  %v3901_v49 = vor.u32 %v3900_v36, %v7949_v11  ;;  %v3915_v1 = vor.u32 %v3914_v63, %v3911_v22 }
  0xfc   : > { %v3928_v5 = vshll.u32 %v7955_v21, 16  ;;  %v4667_v13 = vsel %vm752_vm0, %v6545_v35, 0  ;;  %v8778_v61 = vcombine.low %v7679_v18, %v7683_v20  ;;  %v3925_v51 = vor.u32 %v3924_v44, %v7957_v41 }
  0xfd   : > { %v3939_v16 = vor.u32 %v3938_v40, %v3935_v12  ;;  %v3970_v26 = vshrl.u32 %v7962_v56, 16  ;;  %v3949_v27 = vor.u32 %v3948_v7, %v7959_v37  ;;  %v3959_v38 = vrot.slane %v3957_v62, 4 }
  0xfe   : > { %v3962_v18 = vrot.slane %v3960_v39, 5  ;;  %v3878_v20 = vrot.slane %v3877_v60, 4  ;;  %v3906_v36 = vrot.slane %v3904_v54, 5  ;;  %v3981_v22 = vshrl.u32 %v5556_v25, 16  ;;  %v8001_v60 = vld [vmem:[%s6812_s23 + $0xa4] sm:$0x1] }
  0xff   : > { %6100 = vmatmul.mubr.msk.bf16.vlgmr.msra.gmra.mrb[0].mxu0 %vm703_vm4, %v7721_v19  ;;  %v3966_v19 = vshll.u32 %v7962_v56, 16  ;;  %v3984_v40 = vshll.u32 %v5556_v25, 16  ;;  %v3892_v63 = vrot.slane %v3891_v10, 4  ;;  %v3902_v44 = vrot.slane %v3901_v49, 4 }
 0x100   : > { %5936 = vmatmul.mubr.msk.bf16.gmra.mrb[16].mxu1 %vm703_vm4, %v8777_v59  ;;  %6132 = vmatpush3.bf16.msra.mxu0 %v7481_v4  ;;  %v3952_v4 = vshll.u32 %v7969_v30, 16  ;;  %v3916_v12 = vrot.slane %v3915_v1, 4  ;;  %v3930_v59 = vrot.slane %v3928_v5, 5  ;;  %v3972_v7 = vrot.slane %v3970_v26, 4  ;;  %v8011_v5 = vld [vmem:[%s6812_s23 + $0xac] sm:$0xf] }
 0x101   : > { %5939 = vmatprep.mubr.msk.bf16.mxu1 %vm703_vm4, %v8778_v61  ;;  %6103 = vmatprep.mubr.msk.bf16.mxu0 %vm703_vm4, %v7739_v52  ;;  %v3926_v61 = vrot.slane %v3925_v51, 4  ;;  %v3940_v52 = vrot.slane %v3939_v16, 4  ;;  %v3859_v39 = vsel %vm6833_vm3, %v7898_v29, %v7900_v45  ;;  %v3950_v62 = vrot.slane %v3949_v27, 4 }
 0x102   : > { %6436 = vmatprep.subr.msk.bf16.mxu0 %vm752_vm0, %v6545_v35  ;;  %v7994_v35 = vrot.slane %v3966_v19, 5  ;;  %v3954_v54 = vrot.slane %v3952_v4, 5  ;;  %v3963_v10 = vor.u32 %v3962_v18, %v3959_v38  ;;  %v3873_v49 = vsel %vm6833_vm3, %v7964_v31, %v7939_v6  ;;  %v5559_v19 = vld [vmem:[%s6812_s23 + $0xb4] sm:$0xf] }
 0x103   : > { %v3883_v1 = vsel %vm6833_vm3, %v3878_v20, %v7946_v55  ;;  %v3986_v25 = vrot.slane %v3984_v40, 5  ;;  %v8779_v29 = vor.u32 %v7412_v57, %v7410_v17  ;;  %v8780_v51 = vcombine.low %v7693_v14, %v7705_v2 }
 0x104   : > { %6134 = vmatpush3.bf16.msra.mxu0 %v4667_v13  ;;  %v3983_v13 = vrot.slane %v3981_v22, 4  ;;  %v3897_v55 = vsel %vm6833_vm3, %v3892_v63, %v7949_v11  ;;  %v3907_v31 = vsel %vm6833_vm3, %v3902_v44, %v3906_v36  ;;  %v3921_v57 = vsel %vm6833_vm3, %v3916_v12, %v7957_v41  ;;  %v8046_v11 = vld [vmem:[%s6812_s23 + $0xb0] sm:$0x1]  ;;  %v5611_v44 = vld [vmem:[%s6812_s23 + $0x60] sm:$0xe] }
 0x105   : > { %v8016_v45 = vrot.slane %v8779_v29, 4  ;;  %v8781_v14 = vcombine.low %v7761_v47, %v7813_v34  ;;  %v3931_v2 = vsel %vm6833_vm3, %v3926_v61, %v3930_v59  ;;  %v3945_v6 = vsel %vm6833_vm3, %v3940_v52, %v7959_v37  ;;  %v8786_v29 = vld [vmem:[#allocation14_spill] sm:$0xff] }
 0x106   : > { %v3976_v41 = vshll.u32 %v8001_v60, 16  ;;  %v3955_v47 = vsel %vm6833_vm3, %v3950_v62, %v3954_v54  ;;  %v3964_v34 = vrot.slane %v3963_v10, 4  ;;  %v3994_v16 = vshrl.u32 %v8011_v5, 16 }
 0x107   : > { %6104 = vmatmul.mubr.msk.bf16.gmra.mrb[4].mxu0 %vm703_vm4, %v7873_v28  ;;  %v3973_v28 = vor.u32 %v3972_v7, %v7994_v35  ;;  %v8782_v37 = vsel %vm6833_vm3, %v7841_v15, %v7843_v46  ;;  %v8783_v26 = vsel %vm6833_vm3, %v7839_v9, %v7789_v50  ;;  %v8784_v4 = vsel %vm6833_vm3, %v7862_v42, %v7806_v48  ;;  %v8078_v50 = vld [vmem:[%s6812_s23 + $0xb8] sm:$0xf]  ;;  %v5610_v9 = vld [vmem:[%s6812_s23 + $0x54] sm:$0xe] }
 0x108   : > { %5940 = vmatmul.mubr.msk.bf16.gmra.mrb[20].mxu1 %vm703_vm4, %v8780_v51  ;;  %6107 = vmatprep.mubr.msk.bf16.mxu0 %vm703_vm4, %v7881_v23  ;;  %v3990_v23 = vshll.u32 %v8011_v5, 16  ;;  %v5576_v27 = vcombine.low %v8783_v26, %v8782_v37  ;;  %v5577_v38 = vcombine.low %v8784_v4, %v3859_v39  ;;  %v5209_v18 = vcombine.low %v7904_v3, %v7918_v43  ;;  %v8787_v51 = vld [vmem:[#allocation15_spill] sm:$0xff] }
 0x109   : > { %5943 = vmatprep.mubr.msk.bf16.mxu1 %vm703_vm4, %v8781_v14  ;;  %v3987_v20 = vor.u32 %v3986_v25, %v3983_v13  ;;  %v8070_v36 = vcombine.low %v3873_v49, %v3883_v1  ;;  %v8072_v22 = vcombine.low %v3897_v55, %v3907_v31  ;;  %v8074_v15 = vcombine.low %v3921_v57, %v3931_v2  ;;  %v5612_v25 = vld [vmem:[%s6812_s23 + $0x6c] sm:$0xe]  ;;  %v8790_v2 = vld [vmem:[#allocation13_spill] sm:$0xff] }
 0x10a   : > { %v4000_v46 = vshll.u32 %v8046_v11, 16  ;;  %v8081_v40 = vcombine.low %v3945_v6, %v3955_v47  ;;  %v3974_v63 = vrot.slane %v3973_v28, 4  ;;  %v3978_v48 = vrot.slane %v3976_v41, 5  ;;  %v5562_v41 = vld [vmem:[%s6812_s23 + $0xc0] sm:$0xf] }
 0x10b   : > { %v4005_v42 = vshrl.u32 %v5559_v19, 16  ;;  %v3969_v12 = vsel %vm6833_vm3, %v3964_v34, %v7994_v35  ;;  %v8087_v59 = vrot.slane %v3990_v23, 5  ;;  %v3996_v61 = vrot.slane %v3994_v16, 4  ;;  %v8791_v34 = vld [vmem:[#allocation16_spill] sm:$0xff]  ;;  %v8792_v16 = vld [vmem:[#allocation17_spill] sm:$0xff] }
 0x10c   : > { %v4008_v52 = vshll.u32 %v5559_v19, 16  ;;  %v8089_v7 = vrot.slane %v3987_v20, 4  ;;  %v4014_v39 = vshll.u32 %v8078_v50, 16  ;;  %v5626_v62 = vrot.slane %v5610_v9, 9  ;;  %v6544_v20 = vld [vmem:[%s6812_s23 + $0xc] sm:$0xff]  }
 0x10d   : > { %v4482_v54 = vrot.slane %v7735_v24, 5  ;;  %v8785_v10 = vcombine.low %v7817_v33, %v7830_v58  ;;  %v8098_v49 = vrot.slane %v4000_v46, 5  ;;  %v4485_v35 = vrot.slane %v7787_v53, 5  ;;  %v8141_v46 = vld [vmem:[%s6812_s23 + $0xbc] sm:$0x1] }
 0x10e   : > { %v5627_v1 = vrot.slane %v5611_v44, 9  ;;  %v4489_v13 = vrot.slane %v7766_v8, 5  ;;  %v8788_v55 = vcombine.low %v8786_v29, %v8787_v51  ;;  %v3979_v24 = vsel %vm6833_vm3, %v3974_v63, %v3978_v48  ;;  %v8144_v9 = vld [vmem:[%s6812_s23 + $0xc4] sm:$0xf]  ;;  %v6609_v53 = vld [vmem:[%s6812_s23 + $0x88] sm:$0xf] }
 0x10f   : > { %6108 = vmatmul.mubr.msk.bf16.gmra.mrb[8].mxu0 %vm703_vm4, %v5576_v27  ;;  %v8110_v33 = vrot.slane %v4005_v42, 4  ;;  %v4018_v58 = vshrl.u32 %v8078_v50, 16  ;;  %v8115_v8 = vsel %vm7073_vm7, %v5626_v62, %v4482_v54  ;;  %v4484_v31 = vrot.slane %v4482_v54, 4 }
 0x110   : > { %5944 = vmatmul.mubr.msk.bf16.gmra.mrb[24].mxu1 %vm703_vm4, %v8785_v10  ;;  %6111 = vmatprep.mubr.msk.bf16.mxu0 %vm703_vm4, %v5577_v38  ;;  %v8119_v57 = vsel %vm7073_vm7, %v5627_v1, %v4489_v13  ;;  %v4491_v14 = vrot.slane %v4489_v13, 4  ;;  %v4492_v6 = vrot.slane %v8790_v2, 5  ;;  %v3997_v28 = vor.u32 %v3996_v61, %v8087_v59  ;;  %v5613_v38 = vld [vmem:[%s6812_s23 + $0x78] sm:$0xe]  ;;  %v8793_v1 = vld [vmem:[#allocation18_spill] sm:$0xff] }
 0x111   : > { %5947 = vmatprep.mubr.msk.bf16.mxu1 %vm703_vm4, %v8788_v55  ;;  %v5628_v47 = vrot.slane %v5612_v25, 9  ;;  %v4496_v23 = vrot.slane %v8791_v34, 5  ;;  %v4499_v19 = vrot.slane %v8792_v16, 5  ;;  %v8126_v37 = vrot.slane %v4008_v52, 5  ;;  %v5324_v25 = vld [vmem:[%s6812_s23 + $0x78] sm:$0xf] }
 0x112   : > { %v8128_v26 = vrot.slane %v4014_v39, 5  ;;  %v8132_v27 = vsel %vm7073_vm7, %v4484_v31, %v4485_v35  ;;  %v8136_v4 = vsel %vm7073_vm7, %v4491_v14, %v4492_v6  ;;  %v8154_v61 = vcombine.low %v3969_v12, %v3979_v24  ;;  %v5614_v24 = vld [vmem:[%s6812_s23 + $0x84] sm:$0xe] }
 0x113   : > { %v5645_v63 = vcombine.low %v8115_v8, %v8132_v27  ;;  %v5646_v48 = vcombine.low %v8119_v57, %v8136_v4  ;;  %v8152_v42 = vsel %vm7073_vm7, %v5628_v47, %v4496_v23  ;;  %v4498_v44 = vrot.slane %v4496_v23, 4  ;;  %v8795_v47 = vld [vmem:[#allocation19_spill] sm:$0xff]  ;;  %v6546_v23 = vld [vmem:[%s6812_s23 + $0x18] sm:$0xff]   ;;  %v6560_v57 = vld [vmem:[%s6812_s23 + $0xc0] sm:$0xff]  }
 0x114   : > { %v3993_v52 = vsel %vm6833_vm3, %v8089_v7, %v8087_v59  ;;  %v4029_v39 = vshrl.u32 %v5562_v41, 16  ;;  %v4032_v62 = vshll.u32 %v5562_v41, 16  ;;  %v8160_v54 = vrot.slane %v4018_v58, 4  ;;  %v8794_v41 = vld [vmem:[#allocation7_spill] sm:$0xff] }
 0x115   : > { %v8164_v10 = vsel %vm7073_vm7, %v4498_v44, %v4499_v19  ;;  %v5629_v35 = vrot.slane %v5613_v38, 9  ;;  %v4503_v13 = vrot.slane %v8793_v1, 5  ;;  %v4024_v12 = vshll.u32 %v8141_v46, 16  ;;  %v6547_v44 = vld [vmem:[%s6812_s23 + $0x24] sm:$0xff]  }
 0x116   : > { %v4038_v29 = vshll.u32 %v8144_v9, 16  ;;  %v4042_v51 = vshrl.u32 %v8144_v9, 16  ;;  %v5647_v55 = vcombine.low %v8152_v42, %v8164_v10  ;;  %v3998_v3 = vrot.slane %v3997_v28, 4 }
 0x117   : > { %6112 = vmatmul.mubr.msk.bf16.gmra.mrb[12].mxu0 %vm703_vm4, %v8070_v36  ;;  %v8185_v43 = vsel %vm7073_vm7, %v5629_v35, %v4503_v13  ;;  %v4506_v36 = vrot.slane %v7942_v0, 5  ;;  %v4031_v58 = vrot.slane %v4029_v39, 4  ;;  %v4034_v31 = vrot.slane %v4032_v62, 5  ;;  %v8199_v0 = vld [vmem:[%s6812_s23 + $0xc8] sm:$0x1] }
 0x118   : > { %5948 = vmatmul.mubr.msk.bf16.gmra.mrb[28].mxu1 %vm703_vm4, %v5209_v18  ;;  %6115 = vmatprep.mubr.msk.bf16.mxu0 %vm703_vm4, %v8072_v22  ;;  %v4505_v18 = vrot.slane %v4503_v13, 4  ;;  %v2321_v14 = vshrl.u32 %v5324_v25, 16  ;;  %v2324_v2 = vshll.u32 %v5324_v25, 16  ;;  %v2343_v22 = vsel %vm6833_vm3, %v8016_v45, %v8794_v41  ;;  %v5565_v39 = vld [vmem:[%s6812_s23 + $0xcc] sm:$0xf] }
 0x119   : > { %5955 = vmatprep.mubr.msk.bf16.mxu1 %vm703_vm4, %v6544_v20  ;;  %v5630_v28 = vrot.slane %v5614_v24, 9  ;;  %v4510_v34 = vrot.slane %v8795_v47, 5  ;;  %v8201_v16 = vrot.slane %v4038_v29, 5  ;;  %v4044_v19 = vrot.slane %v4042_v51, 4  ;;  %v8222_v24 = vld [vmem:[%s6812_s23 + $0xd0] sm:$0xf] }
 0x11a   : > { %v8190_v6 = vsel %vm7073_vm7, %v4505_v18, %v4506_v36  ;;  %v2323_v20 = vrot.slane %v2321_v14, 4  ;;  %v2326_v62 = vrot.slane %v2324_v2, 5  ;;  %v4513_v1 = vrot.slane %v7955_v21, 5  ;;  %v5615_v18 = vld [vmem:[%s6812_s23 + $0x90] sm:$0xe] }
 0x11b   : > { %v5648_v38 = vcombine.low %v8185_v43, %v8190_v6  ;;  %v8209_v45 = vsel %vm7073_vm7, %v5630_v28, %v4510_v34  ;;  %v4512_v35 = vrot.slane %v4510_v34, 4  ;;  %v4003_v13 = vsel %vm6833_vm3, %v3998_v3, %v8098_v49  ;;  %v6600_v34 = vld [vmem:[%s8725_s1 + $0x38] ss:$0 sps:$4 sm:$0xff]  }
 0x11c   : > { %v4011_v25 = vor.u32 %v8126_v37, %v8110_v33  ;;  %v4021_v29 = vor.u32 %v8160_v54, %v8128_v26  ;;  %v8219_v51 = vrot.slane %v4024_v12, 5  ;;  %v4035_v36 = vor.u32 %v4034_v31, %v4031_v58  ;;  %v8796_v12 = vld [vmem:[#allocation12_spill] sm:$0xff] }
 0x11d   : > { %v4048_v14 = vshll.u32 %v8199_v0, 16  ;;  %v2327_v2 = vor.u32 %v2326_v62, %v2323_v20  ;;  %v8228_v21 = vsel %vm7073_vm7, %v4512_v35, %v4513_v1  ;;  %v4045_v49 = vor.u32 %v4044_v19, %v8201_v16  ;;  %v5616_v1 = vld [vmem:[%s6812_s23 + $0x9c] sm:$0xe] }
 0x11e   : > { %v4053_v33 = vshrl.u32 %v5565_v39, 16  ;;  %v4056_v37 = vshll.u32 %v5565_v39, 16  ;;  %v5649_v54 = vcombine.low %v8209_v45, %v8228_v21  ;;  %v4062_v3 = vshll.u32 %v8222_v24, 16  ;;  %v6618_v45 = vld [vmem:[%s6812_s23 + $0xc4] sm:$0xf] }
 0x11f   : > { %6116 = vmatmul.mubr.msk.bf16.gmra.mrb[16].mxu0 %vm703_vm4, %v8074_v15  ;;  %v4066_v58 = vshrl.u32 %v8222_v24, 16  ;;  %v2328_v31 = vrot.slane %v2327_v2, 4  ;;  %v5631_v41 = vrot.slane %v5615_v18, 9  ;;  %v5583_v15 = vcombine.low %v3993_v52, %v4003_v13  ;;  %v6548_v52 = vld [vmem:[%s6812_s23 + $0x30] sm:$0xff]   ;;  %v6549_v13 = vld [vmem:[%s6812_s23 + $0x3c] sm:$0xff]  }
 0x120   : > { %5956 = vmatmul.mubr.msk.bf16.vlgmr.msra.gmra.mrb[0].mxu1 %vm703_vm4, %v6546_v23  ;;  %6119 = vmatprep.mubr.msk.bf16.mxu0 %vm703_vm4, %v8081_v40  ;;  %v4012_v28 = vrot.slane %v4011_v25, 4  ;;  %v4022_v47 = vrot.slane %v4021_v29, 4  ;;  %v8797_v23 = vld [vmem:[#allocation20_spill] sm:$0xff]  ;;  %v4036_v40 = vrot.slane %v4035_v36, 4  ;;  %v4050_v20 = vrot.slane %v4048_v14, 5  ;;  %v8798_v36 = vld [vmem:[#allocation5_spill] sm:$0xff] }
 0x121   : > { %6169 = vmatpush3.bf16.msra.mxu1 %v8796_v12  ;;  %5959 = vmatprep.mubr.msk.bf16.mxu1 %vm703_vm4, %v6547_v44  ;;  %v4517_v19 = vrot.slane %v8797_v23, 5  ;;  %v2333_v59 = vsel %vm6833_vm3, %v2328_v31, %v7410_v17  ;;  %v4520_v7 = vrot.slane %v7969_v30, 5  ;;  %v4046_v44 = vrot.slane %v4045_v49, 4  ;;  %v8262_v25 = vld [vmem:[%s6812_s23 + $0xd4] sm:$0x1]  ;;  %v6550_v23 = vld [vmem:[%s6812_s23 + $0x48] sm:$0xff]  }
 0x122   : > { %6432 = vmatprep.subr.msk.bf16.mxu1 %vm752_vm0, %v6600_v34  ;;  %v4055_v39 = vrot.slane %v4053_v33, 4  ;;  %v4058_v62 = vrot.slane %v4056_v37, 5  ;;  %v8257_v35 = vcombine.low %v2333_v59, %v2343_v22  ;;  %v8264_v29 = vrot.slane %v4062_v3, 5  ;;  %v5605_v3 = vld [vmem:[%s6812_s23 + $0x18] sm:$0xe] }
 0x123   : > { %v4068_v18 = vrot.slane %v4066_v58, 4  ;;  %v8269_v17 = vsel %vm7073_vm7, %v5631_v41, %v4517_v19  ;;  %v4519_v30 = vrot.slane %v4517_v19, 4  ;;  %v4017_v22 = vsel %vm6833_vm3, %v4012_v28, %v8128_v26  ;;  %v6601_v31 = vld [vmem:[%s6812_s23 + $0x1c] sm:$0xf]  ;;  %v5617_v28 = vld [vmem:[%s6812_s23 + $0xa8] sm:$0xe] }
 0x124   : > { %v4027_v14 = vsel %vm6833_vm3, %v4022_v47, %v8219_v51  ;;  %v5632_v49 = vrot.slane %v5616_v1, 9  ;;  %v4041_v26 = vsel %vm6833_vm3, %v4036_v40, %v8201_v16  ;;  %v4051_v51 = vsel %vm6833_vm3, %v4046_v44, %v4050_v20  ;;  %v6551_v59 = vld [vmem:[%s6812_s23 + $0x54] sm:$0xff]  }
 0x125   : > { %6170 = vmatpush3.bf16.msra.mxu1 %v8798_v36  ;;  %v8279_v2 = vsel %vm7073_vm7, %v4519_v30, %v4520_v7  ;;  %v4072_v33 = vshll.u32 %v8262_v25, 16  ;;  %v4059_v12 = vor.u32 %v4058_v62, %v4055_v39  ;;  %v4524_v16 = vrot.slane %v7962_v56, 5  ;;  %v6602_v39 = vld [vmem:[%s6812_s23 + $0x20] sm:$0x1]  ;;  %v5606_v36 = vld [vmem:[%s6812_s23 + $0x24] sm:$0xe] }
 0x126   : > { %v5650_v37 = vcombine.low %v8269_v17, %v8279_v2  ;;  %v4527_v58 = vrot.slane %v8001_v60, 5  ;;  %v4447_v41 = vrot.slane %v6601_v31, 5  ;;  %v5585_v19 = vcombine.low %v4041_v26, %v4051_v51  ;;  %v5607_v26 = vld [vmem:[%s6812_s23 + $0x30] sm:$0xe]  ;;  %v5618_v51 = vld [vmem:[%s6812_s23 + $0xb4] sm:$0xe] }
 0x127   : > { %6120 = vmatmul.mubr.msk.bf16.gmra.mrb[20].mxu0 %vm703_vm4, %v8154_v61  ;;  %v4069_v61 = vor.u32 %v4068_v18, %v8264_v29  ;;  %v8302_v47 = vsel %vm7073_vm7, %v5632_v49, %v4524_v16  ;;  %v4526_v34 = vrot.slane %v4524_v16, 4  ;;  %v4074_v40 = vrot.slane %v4072_v33, 5  ;;  %v6552_v31 = vld [vmem:[%s6812_s23 + $0x60] sm:$0xff]  }
 0x128   : > { %5960 = vmatmul.mubr.msk.bf16.gmra.mrb[4].mxu1 %vm703_vm4, %v6548_v52  ;;  %6123 = vmatprep.mubr.msk.bf16.mxu0 %vm703_vm4, %v5583_v15  ;;  %v5584_v15 = vcombine.low %v4017_v22, %v4027_v14  ;;  %v5621_v20 = vrot.slane %v5605_v3, 9  ;;  %v4060_v7 = vrot.slane %v4059_v12, 4  ;;  %v5633_v52 = vrot.slane %v5617_v28, 9  ;;  %v6603_v14 = vld [vmem:[%s6812_s23 + $0x28] sm:$0xf] }
 0x129   : > { %5963 = vmatprep.mubr.msk.bf16.mxu1 %vm703_vm4, %v6549_v13  ;;  %v4070_v56 = vrot.slane %v4069_v61, 4  ;;  %v8308_v60 = vsel %vm7073_vm7, %v4526_v34, %v4527_v58  ;;  %v4449_v44 = vrot.slane %v4447_v41, 4  ;;  %v4450_v62 = vrot.slane %v6602_v39, 5  ;;  %v6604_v61 = vld [vmem:[%s6812_s23 + $0x34] sm:$0xf] }
 0x12a   : > { %v5651_v1 = vcombine.low %v8302_v47, %v8308_v60  ;;  %v4531_v13 = vrot.slane %v8011_v5, 5  ;;  %v4534_v18 = vrot.slane %v8046_v11, 5  ;;  %v4065_v5 = vsel %vm6833_vm3, %v4060_v7, %v8264_v29  ;;  %v6605_v34 = vld [vmem:[%s6812_s23 + $0x2c] sm:$0x1]  ;;  %v5619_v39 = vld [vmem:[%s6812_s23 + $0xc0] sm:$0xe] }
 0x12b   : > { %v4075_v11 = vsel %vm6833_vm3, %v4070_v56, %v4074_v40  ;;  %v4454_v49 = vrot.slane %v6603_v14, 5  ;;  %v4448_v33 = vsel %vm7073_vm7, %v5621_v20, %v4447_v41  ;;  %v4451_v12 = vsel %vm7073_vm7, %v4449_v44, %v4450_v62  ;;  %v5608_v62 = vld [vmem:[%s6812_s23 + $0x3c] sm:$0xe] }
 0x12c   : > { %v8320_v30 = vsel %vm7073_vm7, %v5633_v52, %v4531_v13  ;;  %v4533_v22 = vrot.slane %v4531_v13, 4  ;;  %v4461_v3 = vrot.slane %v6604_v61, 5  ;;  %v5622_v16 = vrot.slane %v5606_v36, 9  ;;  %v6606_v52 = vld [vmem:[%s6812_s23 + $0x38] sm:$0x1] }
 0x12d   : > { %v5586_v28 = vcombine.low %v4065_v5, %v4075_v11  ;;  %v4457_v41 = vrot.slane %v6605_v34, 5  ;;  %v5640_v40 = vcombine.low %v4448_v33, %v4451_v12  ;;  %v4456_v20 = vrot.slane %v4454_v49, 4  ;;  %v8799_v13 = vld [vmem:[#allocation8_spill] sm:$0xff] }
 0x12e   : > { %v8339_v29 = vsel %vm7073_vm7, %v4533_v22, %v4534_v18  ;;  %v4541_v7 = vrot.slane %v8141_v46, 5  ;;  %v4463_v56 = vrot.slane %v4461_v3, 4  ;;  %v4464_v44 = vrot.slane %v6606_v52, 5 }
 0x12f   : > { %6124 = vmatmul.mubr.msk.bf16.gmra.mrb[24].mxu0 %vm703_vm4, %v5584_v15  ;;  %v5652_v58 = vcombine.low %v8320_v30, %v8339_v29  ;;  %v5634_v15 = vrot.slane %v5618_v51, 9  ;;  %v4468_v18 = vrot.slane %v8799_v13, 5  ;;  %v4458_v46 = vsel %vm7073_vm7, %v4456_v20, %v4457_v41  ;;  %v8800_v51 = vld [vmem:[#allocation9_spill] sm:$0xff]  ;;  %v6554_v41 = vld [vmem:[%s6812_s23 + $0x78] sm:$0xff]  }
 0x130   : > { %5964 = vmatmul.mubr.msk.bf16.gmra.mrb[8].mxu1 %vm703_vm4, %v6550_v23  ;;  %6127 = vmatprep.mubr.msk.bf16.mxu0 %vm703_vm4, %v5585_v19  ;;  %v5623_v23 = vrot.slane %v5607_v26, 9  ;;  %v6553_v19 = vld [vmem:[%s6812_s23 + $0x6c] sm:$0xff]   ;;  %v5635_v14 = vrot.slane %v5619_v39, 9  ;;  %v5624_v26 = vrot.slane %v5608_v62, 9  ;;  %v4475_v33 = vrot.slane %v8800_v51, 5 }
 0x131   : > { %5967 = vmatprep.mubr.msk.bf16.mxu1 %vm703_vm4, %v6551_v59  ;;  %v4538_v59 = vrot.slane %v8078_v50, 5  ;;  %v4455_v50 = vsel %vm7073_vm7, %v5622_v16, %v4454_v49  ;;  %v4465_v49 = vsel %vm7073_vm7, %v4463_v56, %v4464_v44  ;;  %v4470_v61 = vrot.slane %v4468_v18, 4  ;;  %v8801_v16 = vld [vmem:[#allocation10_spill] sm:$0xff] }
 0x132   : > { %v4462_v5 = vsel %vm7073_vm7, %v5623_v23, %v4461_v3  ;;  %v4545_v3 = vrot.slane %v8144_v9, 5  ;;  %v4548_v34 = vrot.slane %v8199_v0, 5  ;;  %v5641_v23 = vcombine.low %v4455_v50, %v4458_v46  ;;  %v8802_v9 = vld [vmem:[#allocation11_spill] sm:$0xff] }
 0x133   : > { %v8354_v36 = vsel %vm7073_vm7, %v5634_v15, %v4538_v59  ;;  %v4540_v22 = vrot.slane %v4538_v59, 4  ;;  %v5321_v15 = vld [vmem:[%s6812_s23 + $0x6c] sm:$0xf]  ;;  %v4469_v56 = vsel %vm7073_vm7, %v5624_v26, %v4468_v18  ;;  %v4477_v44 = vrot.slane %v4475_v33, 4  ;;  %v6607_v50 = vld [vmem:[%s6812_s23 + $0x70] sm:$0xf] }
 0x134   : > { %v8384_v20 = vsel %vm7073_vm7, %v5635_v14, %v4545_v3  ;;  %v4547_v59 = vrot.slane %v4545_v3, 4  ;;  %v4478_v39 = vrot.slane %v8802_v9, 5  ;;  %v2297_v62 = vshrl.u32 %v5321_v15, 16  ;;  %v6556_v3 = vld [vmem:[%s6812_s23 + $0x90] sm:$0xff]  }
 0x135   : > { %v8368_v11 = vsel %vm7073_vm7, %v4540_v22, %v4541_v7  ;;  %v5620_v7 = vld [vmem:[%s6812_s23 + $0xcc] sm:$0xe]  ;;  %v2300_v13 = vshll.u32 %v5321_v15, 16  ;;  %v2306_v18 = vshll.u32 %v6607_v50, 16  ;;  %v2310_v46 = vshrl.u32 %v6607_v50, 16 }
 0x136   : > { %v5653_v12 = vcombine.low %v8354_v36, %v8368_v11  ;;  %v8394_v22 = vsel %vm7073_vm7, %v4547_v59, %v4548_v34  ;;  %v5636_v14 = vrot.slane %v5620_v7, 9  ;;  %v4555_v26 = vrot.slane %v8262_v25, 5  ;;  %v6557_v25 = vld [vmem:[%s6812_s23 + $0x9c] sm:$0xff]   ;;  %v6608_v59 = vld [vmem:[%s6812_s23 + $0x74] sm:$0x1] }
 0x137   : > { %6128 = vmatmul.mubr.msk.bf16.gmra.mrb[28].mxu0 %vm703_vm4, %v5586_v28  ;;  %v5609_v28 = vld [vmem:[%s6812_s23 + $0x48] sm:$0xe]  ;;  %v2299_v34 = vrot.slane %v2297_v62, 4  ;;  %v2316_v7 = vshll.u32 %v6608_v59, 16  ;;  %v5330_v62 = vld [vmem:[%s6812_s23 + $0x90] sm:$0xf] }
 0x138   : > { %5968 = vmatmul.mubr.msk.bf16.gmra.mrb[12].mxu1 %vm703_vm4, %v6552_v31  ;;  %6135 = vmatprep.mubr.msk.bf16.mxu0 %vm703_vm4, %v5640_v40  ;;  %v4471_v31 = vrot.slane %v8801_v16, 5  ;;  %v5642_v40 = vcombine.low %v4462_v5, %v4465_v49  ;;  %v5625_v52 = vrot.slane %v5609_v28, 9  ;;  %v5654_v5 = vcombine.low %v8384_v20, %v8394_v22 }
 0x139   : > { %5971 = vmatprep.mubr.msk.bf16.mxu1 %vm703_vm4, %v6553_v19  ;;  %v6555_v19 = vld [vmem:[%s6812_s23 + $0x84] sm:$0xff]   ;;  %v4552_v49 = vrot.slane %v8222_v24, 5  ;;  %v2312_v24 = vrot.slane %v2310_v46, 4  ;;  %v2318_v50 = vrot.slane %v2316_v7, 5  ;;  %v2474_v21 = vshll.u32 %v6618_v45, 16 }
 0x13a   : > { %v4472_v0 = vsel %vm7073_vm7, %v4470_v61, %v4471_v31  ;;  %v4476_v51 = vsel %vm7073_vm7, %v5625_v52, %v4475_v33  ;;  %v4479_v61 = vsel %vm7073_vm7, %v4477_v44, %v4478_v39  ;;  %v2354_v39 = vshll.u32 %v6609_v53, 16 }
 0x13b   : > { %v5643_v16 = vcombine.low %v4469_v56, %v4472_v0  ;;  %v8411_v31 = vsel %vm7073_vm7, %v5636_v14, %v4552_v49  ;;  %v4554_v28 = vrot.slane %v4552_v49, 4  ;;  %v5644_v15 = vcombine.low %v4476_v51, %v4479_v61  ;;  %v6559_v51 = vld [vmem:[%s6812_s23 + $0xb4] sm:$0xff]  }
 0x13c   : > { %v2358_v0 = vshrl.u32 %v6609_v53, 16  ;;  %v8432_v61 = vrot.slane %v2354_v39, 5  ;;  %v2476_v17 = vrot.slane %v2474_v21, 5 }
 0x13d   : > { %v8418_v33 = vsel %vm7073_vm7, %v4554_v28, %v4555_v26  ;;  %v5333_v26 = vld [vmem:[%s6812_s23 + $0x9c] sm:$0xf]  ;;  %v2369_v28 = vshrl.u32 %v5330_v62, 16 }
 0x13f   : > { %6136 = vmatmul.mubr.msk.bf16.vlgmr.msra.gmra.mrb[0].mxu0 %vm703_vm4, %v5641_v23  ;;  %v2308_v23 = vrot.slane %v2306_v18, 5  ;;  %v2371_v27 = vrot.slane %v2369_v28, 4 }
 0x140   : > { %5972 = vmatmul.mubr.msk.bf16.gmra.mrb[16].mxu1 %vm703_vm4, %v6554_v41  ;;  %6139 = vmatprep.mubr.msk.bf16.mxu0 %vm703_vm4, %v5642_v40  ;;  %v2302_v41 = vrot.slane %v2300_v13, 5  ;;  %v5655_v40 = vcombine.low %v8411_v31, %v8418_v33  ;;  %v6558_v13 = vld [vmem:[%s6812_s23 + $0xa8] sm:$0xff]  }
 0x141   : > { %5975 = vmatprep.mubr.msk.bf16.mxu1 %vm703_vm4, %v6555_v19  ;;  %v5327_v19 = vld [vmem:[%s6812_s23 + $0x84] sm:$0xf]  ;;  %v2313_v52 = vor.u32 %v2312_v24, %v2308_v23 }
 0x142   : > { %v2303_v56 = vor.u32 %v2302_v41, %v2299_v34  ;;  %v2345_v44 = vshrl.u32 %v5327_v19, 16  ;;  %v2348_v9 = vshll.u32 %v5327_v19, 16  ;;  %v6610_v34 = vld [vmem:[%s6812_s23 + $0x94] sm:$0xf]  ;;  %v6611_v19 = vld [vmem:[%s6812_s23 + $0xa0] sm:$0xf] }
 0x143   : > { %v2314_v46 = vrot.slane %v2313_v52, 4  ;;  %v2378_v41 = vshll.u32 %v6610_v34, 16  ;;  %v2382_v24 = vshrl.u32 %v6610_v34, 16  ;;  %v2402_v59 = vshll.u32 %v6611_v19, 16  ;;  %v6614_v34 = vld [vmem:[%s6812_s23 + $0xa4] sm:$0x1] }
 0x144   : > { %v2304_v18 = vrot.slane %v2303_v56, 4  ;;  %v2347_v14 = vrot.slane %v2345_v44, 4  ;;  %v2350_v49 = vrot.slane %v2348_v9, 5  ;;  %v2406_v7 = vshrl.u32 %v6611_v19, 16  ;;  %v6612_v44 = vld [vmem:[%s6812_s23 + $0x8c] sm:$0x1] }
 0x145   : > { %v2319_v52 = vsel %vm6833_vm3, %v2314_v46, %v2318_v50  ;;  %v2364_v9 = vshll.u32 %v6612_v44, 16  ;;  %v2384_v39 = vrot.slane %v2382_v24, 4  ;;  %v5339_v24 = vld [vmem:[%s6812_s23 + $0xb4] sm:$0xf]  ;;  %v6615_v19 = vld [vmem:[%s6812_s23 + $0xac] sm:$0xf] }
 0x146   : > { %v2309_v56 = vsel %vm6833_vm3, %v2304_v18, %v2308_v23  ;;  %v2351_v53 = vor.u32 %v2350_v49, %v2347_v14  ;;  %v8452_v23 = vrot.slane %v2378_v41, 5  ;;  %v2408_v50 = vrot.slane %v2406_v7, 4  ;;  %v6613_v49 = vld [vmem:[%s6812_s23 + $0x98] sm:$0x1] }
 0x147   : > { %6140 = vmatmul.mubr.msk.bf16.gmra.mrb[4].mxu0 %vm703_vm4, %v5643_v16  ;;  %v2360_v16 = vrot.slane %v2358_v0, 4  ;;  %v5356_v4 = vcombine.low %v2309_v56, %v2319_v52  ;;  %v2412_v41 = vshll.u32 %v6614_v34, 16  ;;  %v2430_v7 = vshrl.u32 %v6615_v19, 16 }
 0x148   : > { %5976 = vmatmul.mubr.msk.bf16.gmra.mrb[20].mxu1 %vm703_vm4, %v6556_v3  ;;  %6143 = vmatprep.mubr.msk.bf16.mxu0 %vm703_vm4, %v5644_v15  ;;  %v2372_v3 = vshll.u32 %v5330_v62, 16  ;;  %v2396_v15 = vshll.u32 %v5333_v26, 16  ;;  %v2352_v18 = vrot.slane %v2351_v53, 4  ;;  %v2441_v52 = vshrl.u32 %v5339_v24, 16 }
 0x149   : > { %5979 = vmatprep.mubr.msk.bf16.mxu1 %vm703_vm4, %v6557_v25  ;;  %v2393_v25 = vshrl.u32 %v5333_v26, 16  ;;  %v2361_v8 = vor.u32 %v2360_v16, %v8432_v61  ;;  %v2388_v26 = vshll.u32 %v6613_v49, 16  ;;  %v2385_v16 = vor.u32 %v2384_v39, %v8452_v23 }
 0x14a   : > { %v2398_v62 = vrot.slane %v2396_v15, 5  ;;  %v2357_v56 = vsel %vm6833_vm3, %v2352_v18, %v8432_v61  ;;  %v2444_v44 = vshll.u32 %v5339_v24, 16  ;;  %v2414_v6 = vrot.slane %v2412_v41, 5  ;;  %v5342_v18 = vld [vmem:[%s6812_s23 + $0xc0] sm:$0xf] }
 0x14b   : > { %v2395_v0 = vrot.slane %v2393_v25, 4  ;;  %v2362_v46 = vrot.slane %v2361_v8, 4  ;;  %v2432_v61 = vrot.slane %v2430_v7, 4  ;;  %v6619_v41 = vld [vmem:[%s6812_s23 + $0xbc] sm:$0x1] }
 0x14c   : > { %v2460_v24 = vshll.u32 %v6619_v41, 16 }
 0x14d   : > { %v2399_v28 = vor.u32 %v2398_v62, %v2395_v0 }
 0x14f   : > { %6144 = vmatmul.mubr.msk.bf16.gmra.mrb[8].mxu0 %vm703_vm4, %v5645_v63  ;;  %v2374_v63 = vrot.slane %v2372_v3, 5 }
 0x150   : > { %5980 = vmatmul.mubr.msk.bf16.gmra.mrb[24].mxu1 %vm703_vm4, %v6558_v13  ;;  %6147 = vmatprep.mubr.msk.bf16.mxu0 %vm703_vm4, %v5646_v48  ;;  %v8454_v13 = vrot.slane %v2402_v59, 5  ;;  %v2366_v48 = vrot.slane %v2364_v9, 5  ;;  %v2426_v59 = vshll.u32 %v6615_v19, 16  ;;  %v6616_v9 = vld [vmem:[%s6812_s23 + $0xb8] sm:$0xf] }
 0x151   : > { %5983 = vmatprep.mubr.msk.bf16.mxu1 %vm703_vm4, %v6559_v51  ;;  %v2375_v14 = vor.u32 %v2374_v63, %v2371_v27  ;;  %v5336_v51 = vld [vmem:[%s6812_s23 + $0xa8] sm:$0xf]  ;;  %v2450_v53 = vshll.u32 %v6616_v9, 16  ;;  %v2454_v8 = vshrl.u32 %v6616_v9, 16  ;;  %v2386_v27 = vrot.slane %v2385_v16, 4 }
 0x152   : > { %v2409_v3 = vor.u32 %v2408_v50, %v8454_v13  ;;  %v2417_v25 = vshrl.u32 %v5336_v51, 16  ;;  %v2420_v15 = vshll.u32 %v5336_v51, 16  ;;  %v2367_v42 = vsel %vm6833_vm3, %v2362_v46, %v2366_v48  ;;  %v6617_v16 = vld [vmem:[%s6812_s23 + $0xb0] sm:$0x1] }
 0x153   : > { %v2376_v10 = vrot.slane %v2375_v14, 4  ;;  %v2400_v63 = vrot.slane %v2399_v28, 4  ;;  %v2428_v0 = vrot.slane %v2426_v59, 5  ;;  %v5358_v62 = vcombine.low %v2357_v56, %v2367_v42 }
 0x154   : > { %v2410_v43 = vrot.slane %v2409_v3, 4  ;;  %v2422_v39 = vrot.slane %v2420_v15, 5  ;;  %v2443_v50 = vrot.slane %v2441_v52, 4  ;;  %v2456_v48 = vrot.slane %v2454_v8, 4  ;;  %v6620_v8 = vld [vmem:[%s6812_s23 + $0xc8] sm:$0x1] }
 0x155   : > { %v2381_v46 = vsel %vm6833_vm3, %v2376_v10, %v8452_v23  ;;  %v2405_v49 = vsel %vm6833_vm3, %v2400_v63, %v8454_v13  ;;  %v2433_v51 = vor.u32 %v2432_v61, %v2428_v0  ;;  %v2436_v28 = vshll.u32 %v6617_v16, 16  ;;  %s188_s23 = sand.u32 1, %s6683_s13  }
 0x156   : > { %v2468_v13 = vshll.u32 %v5342_v18, 16  ;;  %v2478_v3 = vshrl.u32 %v6618_v45, 16  ;;  %s5102_s19 = sshll.u32 %s188_s23, 8  ;;  %s8678_s15 = scalar_lea.sflag [#allocation3], %s188_s23 }
 0x157   : > { %6148 = vmatmul.mubr.msk.bf16.gmra.mrb[12].mxu0 %vm703_vm4, %v5647_v55  ;;  %v2390_v55 = vrot.slane %v2388_v26, 5  ;;  %v2415_v26 = vsel %vm6833_vm3, %v2410_v43, %v2414_v6  ;;  %v2434_v59 = vrot.slane %v2433_v51, 4  ;;  %v2438_v7 = vrot.slane %v2436_v28, 5  ;;  %s8567_s21 = scalar_lea.vmem [#allocation2], %s5102_s19 }
 0x158   : > { %5984 = vmatmul.mubr.msk.bf16.gmra.mrb[28].mxu1 %vm703_vm4, %v6560_v57  ;;  %6151 = vmatprep.mubr.msk.bf16.mxu0 %vm703_vm4, %v5648_v38  ;;  %v2419_v38 = vrot.slane %v2417_v25, 4  ;;  %v2446_v57 = vrot.slane %v2444_v44, 5  ;;  %v5360_v15 = vcombine.low %v2405_v49, %v2415_v26  ;;  %v2470_v42 = vrot.slane %v2468_v13, 5  ;;  %s5015_s27 = sshll.u32 %s8567_s21, 4  ;;  %s8668_s27 = int_to_ptr.vmem [resolvable:$true] %s5015_s27 }
 0x159   : > { %6007 = vmatprep.mubr.msk.bf16.mxu1 %vm703_vm4, %v5356_v4  ;;  %v2452_v4 = vrot.slane %v2450_v53, 5  ;;  %v2391_v14 = vsel %vm6833_vm3, %v2386_v27, %v2390_v55  ;;  %v2480_v2 = vrot.slane %v2478_v3, 4  ;;  %v2462_v55 = vrot.slane %v2460_v24, 5  ;;  %s6621_s4 = scalar_lea.vmem %s8668_s27, 4096  ;;  %p6628_p1 = scmp.lt.s32.totalorder %s8668_s27, %s6626_s6 }
 0x15a   : > { %v2423_v23 = vor.u32 %v2422_v39, %v2419_v38  ;;  %v5359_v25 = vcombine.low %v2381_v46, %v2391_v14  ;;  %v2439_v44 = vsel %vm6833_vm3, %v2434_v59, %v2438_v7  ;;  %v2484_v27 = vshll.u32 %v6620_v8, 16  ;;  %p6622_p12 = scmp.ne.s32.totalorder %s8668_s27, %s6621_s4  ;;  %p6629_p2 = scmp.lt.s32.totalorder %s6627_s7, %s6621_s4 }
 0x15b   : > { %v2457_v34 = vor.u32 %v2456_v48, %v2452_v4  ;;  %v2481_v53 = vor.u32 %v2480_v2, %v2476_v17  ;;  %v8559_v48 = vld [vmem:[%s8726_s2] ss:$0 sm:$0xff] }
 0x15c   : > { %v2424_v19 = vrot.slane %v2423_v23, 4  ;;  %v2486_v30 = vrot.slane %v2484_v27, 5  ;;  %p6623_p13 = pnand %p6622_p12, %p6764_p4  ;;  %p6630_p3 = por %p6629_p2, %p6628_p1 }
 0x15d   : > { %v2458_v10 = vrot.slane %v2457_v34, 4  ;;  %v2482_v6 = vrot.slane %v2481_v53, 4 }
 0x15e   : > { %v2429_v52 = vsel %vm6833_vm3, %v2424_v19, %v2428_v0  ;;  %p6624_p0 = pneg %p6623_p13 }
 0x15f   : > { %6152 = vmatmul.mubr.msk.bf16.gmra.mrb[16].mxu0 %vm703_vm4, %v5649_v54  ;;  %v2447_v54 = vor.u32 %v2446_v57, %v2443_v50  ;;  %v2463_v60 = vsel %vm6833_vm3, %v2458_v10, %v2462_v55 }
 0x160   : > { %6008 = vmatmul.mubr.msk.bf16.vlgmr.msra.gmra.mrb[16].mxu1 %vm703_vm4, %v8257_v35  ;;  %6155 = vmatprep.mubr.msk.bf16.mxu0 %vm703_vm4, %v5650_v37  ;;  %v2465_v35 = vshrl.u32 %v5342_v18, 16  ;;  %p6631_p5 = pnand %p6630_p3, %p6624_p0 }
 0x161   : > { %6011 = vmatprep.mubr.msk.bf16.mxu1 %vm703_vm4, %v5358_v62  ;;  %v2448_v37 = vrot.slane %v2447_v54, 4 }
 0x162   : > { %v2467_v56 = vrot.slane %v2465_v35, 4 }
 0x163   : > { %v2453_v47 = vsel %vm6833_vm3, %v2448_v37, %v2452_v4 }
 0x164   : > { %v2471_v9 = vor.u32 %v2470_v42, %v2467_v56  ;;  %v5362_v63 = vcombine.low %v2453_v47, %v2463_v60 }
 0x166   : > { %v2472_v43 = vrot.slane %v2471_v9, 4 }
 0x167   : > { %6156 = vmatmul.mubr.msk.bf16.gmra.mrb[20].mxu0 %vm703_vm4, %v5651_v1  ;;  %v5361_v1 = vcombine.low %v2429_v52, %v2439_v44 }
 0x168   : > { %6012 = vmatmul.mubr.msk.bf16.gmra.mrb[20].mxu1 %vm703_vm4, %v5359_v25  ;;  %6159 = vmatprep.mubr.msk.bf16.mxu0 %vm703_vm4, %v5652_v58  ;;  %v2477_v29 = vsel %vm6833_vm3, %v2472_v43, %v2476_v17  ;;  %v2487_v58 = vsel %vm6833_vm3, %v2482_v6, %v2486_v30 }
 0x169   : > { %6015 = vmatprep.mubr.msk.bf16.mxu1 %vm703_vm4, %v5360_v15  ;;  %v5363_v38 = vcombine.low %v2477_v29, %v2487_v58 }
 0x16f   : > { %6160 = vmatmul.mubr.msk.bf16.gmra.mrb[24].mxu0 %vm703_vm4, %v5653_v12 }
 0x170   : > { %6016 = vmatmul.mubr.msk.bf16.gmra.mrb[24].mxu1 %vm703_vm4, %v5361_v1  ;;  %6163 = vmatprep.mubr.msk.bf16.mxu0 %vm703_vm4, %v5654_v5 }
 0x171   : > { %6019 = vmatprep.mubr.msk.bf16.mxu1 %vm703_vm4, %v5362_v63 }
 0x177   : > { %6164 = vmatmul.mubr.msk.bf16.gmra.mrb[28].mxu0 %vm703_vm4, %v5655_v40 }
 0x178   : > { %6020 = vmatmul.mubr.msk.bf16.gmra.mrb[28].mxu1 %vm703_vm4, %v5363_v38 }
 0x1f3   : > { %v5957_v36 = vpop.f32.mrb[0].mxu1 }
 0x1f4   : > { %v1897_v11 = vpop.f32.mrb[1].mxu1 }
 0x1f5   : > { %v5958_v12 = vpop.f32.mrb[2].mxu1 }
 0x1f6   : > { %v1900_v20 = vpop.f32.mrb[3].mxu1 }
 0x1fb   : > { %v5961_v22 = vpop.f32.mrb[4].mxu1 }
 0x1fc   : > { %v1913_v5 = vpop.f32.mrb[5].mxu1 }
 0x1fd   : > { %v5962_v39 = vpop.f32.mrb[6].mxu1 }
 0x1fe   : > { %v1916_v0 = vpop.f32.mrb[7].mxu1 }
 0x203   : > { %v5965_v32 = vpop.f32.mrb[8].mxu1 }
 0x204   : > { %v1929_v61 = vpop.f32.mrb[9].mxu1 }
 0x205   : > { %v8543_v62 = vpop.f32.mrb[10].mxu1 }
 0x206   : > { %v8545_v50 = vpop.f32.mrb[11].mxu1 }
 0x20b   : > { %v8547_v57 = vpop.f32.mrb[12].mxu1 }
 0x20c   : > { %v8549_v31 = vpop.f32.mrb[13].mxu1 }
 0x20d   : > { %v8551_v33 = vpop.f32.mrb[14].mxu1 }
 0x20e   : > { %v8553_v40 = vpop.f32.mrb[15].mxu1 }
 0x212   : > { %v6137_v4 = vpop.f32.mrb[0].mxu0 }
 0x213   : > { %v6171_v18 = vadd.f32 %v6137_v4, %v5957_v36  ;;  %v4703_v46 = vpop.f32.mrb[1].mxu0 }
 0x214   : > { %v6172_v14 = vadd.f32 %v4703_v46, %v1897_v11  ;;  %v6138_v49 = vpop.f32.mrb[2].mxu0 }
 0x215   : > { %v4871_v26 = vadd.f32 %v6171_v18, %v8559_v48  ;;  %v6173_v23 = vadd.f32 %v6138_v49, %v5958_v12  ;;  %v4706_v51 = vpop.f32.mrb[3].mxu0 }
 0x216   : > { %v4869_v16 = vadd.f32 %v6172_v14, %v8559_v48  ;;  %v6174_v28 = vadd.f32 %v4706_v51, %v1900_v20 }
 0x217   : > { %v4903_v35 = vmul.f32 0.1, %v4871_v26  ;;  %v4872_v13 = vadd.f32 %v6173_v23, %v8559_v48 }
 0x218   : > { %v4901_v45 = vmul.f32 0.1, %v4869_v16  ;;  %v4870_v21 = vadd.f32 %v6174_v28, %v8559_v48 }
 0x219   : > { %v4935_v3 = vmax.f32 %v4871_v26, %v4903_v35  ;;  %v4904_v54 = vmul.f32 0.1, %v4872_v13 }
 0x21a   : > { %v4933_v34 = vmax.f32 %v4869_v16, %v4901_v45  ;;  %v4902_v41 = vmul.f32 0.1, %v4870_v21  ;;  %v6141_v24 = vpop.f32.mrb[4].mxu0 }
 0x21b   : > { %4968 = vst.msk [vmem:[%s8567_s21 + $0x10] sm:$0xff] %vm4965_vm8, %v4935_v3  ;;  %v4936_v25 = vmax.f32 %v4872_v13, %v4904_v54  ;;  %v6175_v15 = vadd.f32 %v6141_v24, %v5961_v22  ;;  %v4719_v19 = vpop.f32.mrb[5].mxu0 }
 0x21c   : > { %4966 = vst.msk [vmem:[%s8567_s21] sm:$0xff] %vm4965_vm8, %v4933_v34  ;;  %v4934_v59 = vmax.f32 %v4870_v21, %v4902_v41  ;;  %v6176_v7 = vadd.f32 %v4719_v19, %v1913_v5  ;;  %v6142_v56 = vpop.f32.mrb[6].mxu0 }
 0x21d   : > { %4969 = vst.msk [vmem:[%s8567_s21 + $0x18] sm:$0xff] %vm4965_vm8, %v4936_v25  ;;  %v4875_v42 = vadd.f32 %v6175_v15, %v8559_v48  ;;  %v6177_v17 = vadd.f32 %v6142_v56, %v5962_v39  ;;  %v4722_v2 = vpop.f32.mrb[7].mxu0 }
 0x21e   : > { %4967 = vst.msk [vmem:[%s8567_s21 + $0x8] sm:$0xff] %vm4965_vm8, %v4934_v59  ;;  %v4873_v37 = vadd.f32 %v6176_v7, %v8559_v48  ;;  %v6178_v10 = vadd.f32 %v4722_v2, %v1916_v0 }
 0x21f   : > { %v4907_v55 = vmul.f32 0.1, %v4875_v42  ;;  %v4876_v52 = vadd.f32 %v6177_v17, %v8559_v48 }
 0x220   : > { %v4905_v44 = vmul.f32 0.1, %v4873_v37  ;;  %v4874_v9 = vadd.f32 %v6178_v10, %v8559_v48 }
 0x221   : > { %v4939_v53 = vmax.f32 %v4875_v42, %v4907_v55  ;;  %v4908_v8 = vmul.f32 0.1, %v4876_v52 }
 0x222   : > { %v4937_v27 = vmax.f32 %v4873_v37, %v4905_v44  ;;  %v4906_v47 = vmul.f32 0.1, %v4874_v9  ;;  %v6145_v60 = vpop.f32.mrb[8].mxu0 }
 0x223   : > { %4972 = vst.msk [vmem:[%s8567_s21 + $0x30] sm:$0xff] %vm4965_vm8, %v4939_v53  ;;  %v4940_v1 = vmax.f32 %v4876_v52, %v4908_v8  ;;  %v6179_v63 = vadd.f32 %v6145_v60, %v5965_v32  ;;  %v4735_v43 = vpop.f32.mrb[9].mxu0 }
 0x224   : > { %4970 = vst.msk [vmem:[%s8567_s21 + $0x20] sm:$0xff] %vm4965_vm8, %v4937_v27  ;;  %v4938_v6 = vmax.f32 %v4874_v9, %v4906_v47  ;;  %v6180_v30 = vadd.f32 %v4735_v43, %v1929_v61  ;;  %v6146_v29 = vpop.f32.mrb[10].mxu0 }
 0x225   : > { %4973 = vst.msk [vmem:[%s8567_s21 + $0x38] sm:$0xff] %vm4965_vm8, %v4940_v1  ;;  %v4879_v58 = vadd.f32 %v6179_v63, %v8559_v48  ;;  %v6181_v38 = vadd.f32 %v6146_v29, %v8543_v62  ;;  %v4738_v36 = vpop.f32.mrb[11].mxu0 }
 0x226   : > { %4971 = vst.msk [vmem:[%s8567_s21 + $0x28] sm:$0xff] %vm4965_vm8, %v4938_v6  ;;  %v4877_v11 = vadd.f32 %v6180_v30, %v8559_v48  ;;  %v6182_v12 = vadd.f32 %v4738_v36, %v8545_v50 }
 0x227   : > { %v4911_v20 = vmul.f32 0.1, %v4879_v58  ;;  %v4880_v22 = vadd.f32 %v6181_v38, %v8559_v48 }
 0x228   : > { %v4909_v5 = vmul.f32 0.1, %v4877_v11  ;;  %v4878_v39 = vadd.f32 %v6182_v12, %v8559_v48 }
 0x229   : > { %v4943_v0 = vmax.f32 %v4879_v58, %v4911_v20  ;;  %v4912_v32 = vmul.f32 0.1, %v4880_v22 }
 0x22a   : > { %v4941_v61 = vmax.f32 %v4877_v11, %v4909_v5  ;;  %v4910_v62 = vmul.f32 0.1, %v4878_v39  ;;  %v6149_v4 = vpop.f32.mrb[12].mxu0 }
 0x22b   : > { %4976 = vst.msk [vmem:[%s8567_s21 + $0x50] sm:$0xff] %vm4965_vm8, %v4943_v0  ;;  %v4944_v18 = vmax.f32 %v4880_v22, %v4912_v32  ;;  %v6183_v46 = vadd.f32 %v6149_v4, %v8547_v57  ;;  %v4751_v14 = vpop.f32.mrb[13].mxu0 }
 0x22c   : > { %4974 = vst.msk [vmem:[%s8567_s21 + $0x40] sm:$0xff] %vm4965_vm8, %v4941_v61  ;;  %v4942_v50 = vmax.f32 %v4878_v39, %v4910_v62  ;;  %v6184_v49 = vadd.f32 %v4751_v14, %v8549_v31  ;;  %v6150_v26 = vpop.f32.mrb[14].mxu0 }
 0x22d   : > { %4977 = vst.msk [vmem:[%s8567_s21 + $0x58] sm:$0xff] %vm4965_vm8, %v4944_v18  ;;  %v4883_v23 = vadd.f32 %v6183_v46, %v8559_v48  ;;  %v6185_v51 = vadd.f32 %v6150_v26, %v8551_v33  ;;  %v4754_v16 = vpop.f32.mrb[15].mxu0 }
 0x22e   : > { %4975 = vst.msk [vmem:[%s8567_s21 + $0x48] sm:$0xff] %vm4965_vm8, %v4942_v50  ;;  %v4881_v28 = vadd.f32 %v6184_v49, %v8559_v48  ;;  %v6186_v57 = vadd.f32 %v4754_v16, %v8553_v40 }
 0x22f   : > { %v4915_v35 = vmul.f32 0.1, %v4883_v23  ;;  %v4884_v13 = vadd.f32 %v6185_v51, %v8559_v48 }
 0x230   : > { %v4913_v31 = vmul.f32 0.1, %v4881_v28  ;;  %v4882_v45 = vadd.f32 %v6186_v57, %v8559_v48 }
 0x231   : > { %v4947_v21 = vmax.f32 %v4883_v23, %v4915_v35  ;;  %v4916_v3 = vmul.f32 0.1, %v4884_v13 }
 0x232   : > { %v4945_v54 = vmax.f32 %v4881_v28, %v4913_v31  ;;  %v4914_v34 = vmul.f32 0.1, %v4882_v45  ;;  %v6153_v41 = vpop.f32.mrb[16].mxu0 }
 0x233   : > { %v6009_v33 = vpop.f32.mrb[16].mxu1  ;;  %4980 = vst.msk [vmem:[%s8567_s21 + $0x70] sm:$0xff] %vm4965_vm8, %v4947_v21  ;;  %v4948_v24 = vmax.f32 %v4884_v13, %v4916_v3  ;;  %v4767_v15 = vpop.f32.mrb[17].mxu0 }
 0x234   : > { %v6187_v25 = vadd.f32 %v6153_v41, %v6009_v33  ;;  %v2698_v40 = vpop.f32.mrb[17].mxu1  ;;  %4978 = vst.msk [vmem:[%s8567_s21 + $0x60] sm:$0xff] %vm4965_vm8, %v4945_v54  ;;  %v4946_v19 = vmax.f32 %v4882_v45, %v4914_v34  ;;  %v6154_v56 = vpop.f32.mrb[18].mxu0 }
 0x235   : > { %v6188_v59 = vadd.f32 %v4767_v15, %v2698_v40  ;;  %v6010_v7 = vpop.f32.mrb[18].mxu1  ;;  %4981 = vst.msk [vmem:[%s8567_s21 + $0x78] sm:$0xff] %vm4965_vm8, %v4948_v24  ;;  %v4770_v37 = vpop.f32.mrb[19].mxu0 }
 0x236   : > { %v4887_v42 = vadd.f32 %v6187_v25, %v8559_v48  ;;  %v6189_v17 = vadd.f32 %v6154_v56, %v6010_v7  ;;  %v2701_v2 = vpop.f32.mrb[19].mxu1  ;;  %4979 = vst.msk [vmem:[%s8567_s21 + $0x68] sm:$0xff] %vm4965_vm8, %v4946_v19 }
 0x237   : > { %v4885_v10 = vadd.f32 %v6188_v59, %v8559_v48  ;;  %v6190_v55 = vadd.f32 %v4770_v37, %v2701_v2 }
 0x238   : > { %v4919_v52 = vmul.f32 0.1, %v4887_v42  ;;  %v4888_v44 = vadd.f32 %v6189_v17, %v8559_v48 }
 0x239   : > { %v4917_v9 = vmul.f32 0.1, %v4885_v10  ;;  %v4886_v53 = vadd.f32 %v6190_v55, %v8559_v48 }
 0x23a   : > { %v4951_v8 = vmax.f32 %v4887_v42, %v4919_v52  ;;  %v4920_v27 = vmul.f32 0.1, %v4888_v44  ;;  %v6157_v63 = vpop.f32.mrb[20].mxu0 }
 0x23b   : > { %v4949_v47 = vmax.f32 %v4885_v10, %v4917_v9  ;;  %v4918_v60 = vmul.f32 0.1, %v4886_v53  ;;  %v6013_v1 = vpop.f32.mrb[20].mxu1  ;;  %v4783_v29 = vpop.f32.mrb[21].mxu0 }
 0x23c   : > { %4984 = vst.msk [vmem:[%s8567_s21 + $0x90] sm:$0xff] %vm4965_vm8, %v4951_v8  ;;  %v4952_v43 = vmax.f32 %v4888_v44, %v4920_v27  ;;  %v6191_v6 = vadd.f32 %v6157_v63, %v6013_v1  ;;  %v2714_v30 = vpop.f32.mrb[21].mxu1  ;;  %v6158_v11 = vpop.f32.mrb[22].mxu0 }
 0x23d   : > { %4982 = vst.msk [vmem:[%s8567_s21 + $0x80] sm:$0xff] %vm4965_vm8, %v4949_v47  ;;  %v4950_v58 = vmax.f32 %v4886_v53, %v4918_v60  ;;  %v6192_v38 = vadd.f32 %v4783_v29, %v2714_v30  ;;  %v6014_v36 = vpop.f32.mrb[22].mxu1  ;;  %v4786_v5 = vpop.f32.mrb[23].mxu0 }
 0x23e   : > { %4985 = vst.msk [vmem:[%s8567_s21 + $0x98] sm:$0xff] %vm4965_vm8, %v4952_v43  ;;  %v4891_v12 = vadd.f32 %v6191_v6, %v8559_v48  ;;  %v6193_v20 = vadd.f32 %v6158_v11, %v6014_v36  ;;  %v2717_v22 = vpop.f32.mrb[23].mxu1 }
 0x23f   : > { %4983 = vst.msk [vmem:[%s8567_s21 + $0x88] sm:$0xff] %vm4965_vm8, %v4950_v58  ;;  %v4889_v39 = vadd.f32 %v6192_v38, %v8559_v48  ;;  %v6194_v0 = vadd.f32 %v4786_v5, %v2717_v22 }
 0x240   : > { %v4923_v32 = vmul.f32 0.1, %v4891_v12  ;;  %v4892_v61 = vadd.f32 %v6193_v20, %v8559_v48 }
 0x241   : > { %v4921_v62 = vmul.f32 0.1, %v4889_v39  ;;  %v4890_v4 = vadd.f32 %v6194_v0, %v8559_v48 }
 0x242   : > { %v4955_v18 = vmax.f32 %v4891_v12, %v4923_v32  ;;  %v4924_v46 = vmul.f32 0.1, %v4892_v61  ;;  %v6161_v26 = vpop.f32.mrb[24].mxu0 }
 0x243   : > { %v4953_v14 = vmax.f32 %v4889_v39, %v4921_v62  ;;  %v4922_v50 = vmul.f32 0.1, %v4890_v4  ;;  %v6017_v49 = vpop.f32.mrb[24].mxu1  ;;  %v4799_v28 = vpop.f32.mrb[25].mxu0 }
 0x244   : > { %4988 = vst.msk [vmem:[%s8567_s21 + $0xb0] sm:$0xff] %vm4965_vm8, %v4955_v18  ;;  %v4956_v23 = vmax.f32 %v4892_v61, %v4924_v46  ;;  %v6195_v51 = vadd.f32 %v6161_v26, %v6017_v49  ;;  %v2730_v16 = vpop.f32.mrb[25].mxu1  ;;  %v6162_v31 = vpop.f32.mrb[26].mxu0 }
 0x245   : > { %4986 = vst.msk [vmem:[%s8567_s21 + $0xa0] sm:$0xff] %vm4965_vm8, %v4953_v14  ;;  %v4954_v57 = vmax.f32 %v4890_v4, %v4922_v50  ;;  %v6196_v35 = vadd.f32 %v4799_v28, %v2730_v16  ;;  %v6018_v13 = vpop.f32.mrb[26].mxu1  ;;  %v4802_v54 = vpop.f32.mrb[27].mxu0 }
 0x246   : > { %4989 = vst.msk [vmem:[%s8567_s21 + $0xb8] sm:$0xff] %vm4965_vm8, %v4956_v23  ;;  %v4895_v45 = vadd.f32 %v6195_v51, %v8559_v48  ;;  %v6197_v21 = vadd.f32 %v6162_v31, %v6018_v13  ;;  %v2733_v3 = vpop.f32.mrb[27].mxu1 }
 0x247   : > { %4987 = vst.msk [vmem:[%s8567_s21 + $0xa8] sm:$0xff] %vm4965_vm8, %v4954_v57  ;;  %v4893_v34 = vadd.f32 %v6196_v35, %v8559_v48  ;;  %v6198_v33 = vadd.f32 %v4802_v54, %v2733_v3 }
 0x248   : > { %v4927_v41 = vmul.f32 0.1, %v4895_v45  ;;  %v4896_v24 = vadd.f32 %v6197_v21, %v8559_v48 }
 0x249   : > { %v4925_v25 = vmul.f32 0.1, %v4893_v34  ;;  %v4894_v40 = vadd.f32 %v6198_v33, %v8559_v48 }
 0x24a   : > { %v4959_v15 = vmax.f32 %v4895_v45, %v4927_v41  ;;  %v4928_v19 = vmul.f32 0.1, %v4896_v24  ;;  %v6165_v42 = vpop.f32.mrb[28].mxu0 }
 0x24b   : > { %v4957_v59 = vmax.f32 %v4893_v34, %v4925_v25  ;;  %v4926_v7 = vmul.f32 0.1, %v4894_v40  ;;  %v6021_v56 = vpop.f32.mrb[28].mxu1  ;;  %v4815_v10 = vpop.f32.mrb[29].mxu0 }
 0x24c   : > { %4992 = vst.msk [vmem:[%s8567_s21 + $0xd0] sm:$0xff] %vm4965_vm8, %v4959_v15  ;;  %v4960_v17 = vmax.f32 %v4896_v24, %v4928_v19  ;;  %v6199_v2 = vadd.f32 %v6165_v42, %v6021_v56  ;;  %v2746_v37 = vpop.f32.mrb[29].mxu1  ;;  %v6166_v9 = vpop.f32.mrb[30].mxu0 }
 0x24d   : > { %4990 = vst.msk [vmem:[%s8567_s21 + $0xc0] sm:$0xff] %vm4965_vm8, %v4957_v59  ;;  %v4958_v55 = vmax.f32 %v4894_v40, %v4926_v7  ;;  %v6200_v52 = vadd.f32 %v4815_v10, %v2746_v37  ;;  %v6022_v44 = vpop.f32.mrb[30].mxu1  ;;  %v4818_v47 = vpop.f32.mrb[31].mxu0 }
 0x24e   : > { %4993 = vst.msk [vmem:[%s8567_s21 + $0xd8] sm:$0xff] %vm4965_vm8, %v4960_v17  ;;  %v4899_v53 = vadd.f32 %v6199_v2, %v8559_v48  ;;  %v6201_v8 = vadd.f32 %v6166_v9, %v6022_v44  ;;  %v2749_v27 = vpop.f32.mrb[31].mxu1 }
 0x24f   : > { %4991 = vst.msk [vmem:[%s8567_s21 + $0xc8] sm:$0xff] %vm4965_vm8, %v4958_v55  ;;  %v4897_v60 = vadd.f32 %v6200_v52, %v8559_v48  ;;  %v6202_v1 = vadd.f32 %v4818_v47, %v2749_v27 }
 0x250   : > { %v4931_v63 = vmul.f32 0.1, %v4899_v53  ;;  %v4900_v43 = vadd.f32 %v6201_v8, %v8559_v48 }
 0x251   : > { %v4929_v6 = vmul.f32 0.1, %v4897_v60  ;;  %v4898_v30 = vadd.f32 %v6202_v1, %v8559_v48 }
 0x252   : > { %v4963_v29 = vmax.f32 %v4899_v53, %v4931_v63  ;;  %v4932_v58 = vmul.f32 0.1, %v4900_v43 }
 0x253   : > { %v4961_v38 = vmax.f32 %v4897_v60, %v4929_v6  ;;  %v4930_v36 = vmul.f32 0.1, %v4898_v30 }
 0x254   : > { %4996 = vst.msk [vmem:[%s8567_s21 + $0xf0] sm:$0xff] %vm4965_vm8, %v4963_v29  ;;  %v4964_v11 = vmax.f32 %v4900_v43, %v4932_v58 }
 0x255   : > { %4994 = vst.msk [vmem:[%s8567_s21 + $0xe0] sm:$0xff] %vm4965_vm8, %v4961_v38  ;;  %v4962_v48 = vmax.f32 %v4898_v30, %v4930_v36 }
 0x256   : > { %4997 = vst.msk [vmem:[%s8567_s21 + $0xf8] sm:$0xff] %vm4965_vm8, %v4964_v11 }
 0x257   : > { %4995 = vst.msk [vmem:[%s8567_s21 + $0xe8] sm:$0xff] %vm4965_vm8, %v4962_v48 }
 0x258   : > { %6634 = shalt.err (!%p6631_p5)
}
 0x259   : > { %s6635_s8 = scalar_lea.hbm %s8666_s30, 4096  ;;  %s6639_s23 = scalar_lea.hbm %s8727_s3, 8192 }
 0x25a   : > { %p6636_p6 = scmp.ne.s32.totalorder %s8666_s30, %s6635_s8  ;;  %p6640_p10 = scmp.lt.u32.totalorder %s8666_s30, %s8727_s3 }
 0x25b   : > { %p6641_p11 = scmp.lt.u32.totalorder %s6639_s23, %s6635_s8  ;;  %p6643_p13 = scmp.lt.u32.totalorder %s6635_s8, %s8666_s30 }
 0x25c   : > { %p6637_p7 = pnand %p6636_p6, %p6764_p4 }
 0x25d   : > { %p6642_p12 = por %p6641_p11, %p6640_p10 }
 0x25e   : > { %p6638_p9 = pneg %p6637_p7 }
 0x25f   : > { %p6644_p0 = por %p6643_p13, %p6642_p12 }
 0x261   : > { %p6645_p1 = pnand %p6644_p0, %p6638_p9 }
 0x263   : > { %6648 = shalt.err (!%p6645_p1)
}
 0x264   : > { %s6702_s19 = smov 128   ;;  %s6703_s21 = smov 8  }
 0x265   : > { %6438 = dma.vmem_to_hbm [thread:$0]  (%p6764_p4), %s8668_s27, 4096, %s8666_s30, %s8678_s15, %s6702_s19, %s6702_s19, %s6703_s21  }
 0x266 PF: > { %p6444_p2 = scmp.ge.s32.totalorder %s6699_s17, 2  ;;  %s5030_s26 = sand.u32 1, %s6679_s12  }
 0x267   : > { %s5031_s28 = scalar_lea.sflag [#allocation3], %s5030_s26 }
 0x268   : > { %p6441_p3 = pnand %p6444_p2, %p6771_p8 }
 0x26a   : > { %6674 = dma.done.wait (!%p6441_p3), %s5031_s28, 4096  }
 0x26b   : > { %6676 = vsyncadd (!%p6441_p3), %s5031_s28, 4294963200  ;;  %s16_s17 = sadd.s32 1, %s6699_s17   ;;  %s8803_s12 = smov %s6683_s13 }
 0x26c   : > { %p13_p5 = scmp.ge.s32.totalorder %s16_s17, 4   ;;  %s8804_s13 = smov %s6687_s14 }
 0x26d   : > { %s8805_s14 = smov %s6777_s25  ;;  %s8806_s15 = smov %s6695_s16 }
 0x26e   : > { %s8807_s16 = smov %s8809_s20  ;;  %15 = sbr.rel (!%p13_p5) target bundleno = 4 (0x4), region = 77 }
 0x275   :  { %5036 = vsyncpa [#allocation3], 1 }
 0x276   :  { %5038 = vsyncpa [#allocation3 + $0x1], 1 }

</bundles_post_ra>
